<compile_context>
chip_gen: v7x
topology: tpu7x:2x2x1
jax: 0.10.0
libtpu: 0.0.40
codegen_flags: <defaults>
</compile_context>

<pallas_src>
import functools

import jax
import jax.numpy as jnp
from jax import lax
from jax.experimental import pallas as pl
from jax.experimental.pallas import tpu as pltpu

_SUBLANE = 8
_MAX_BP = 256                        # MXU LHS rows (v6e/v7x); 2 fills on v5e's 128
_VMEM_BUDGET = 36 * 1024 * 1024      # working budget used to size the batch block
_VMEM_LIMIT = 48 * 1024 * 1024       # < v7x physical 64 MiB; well under v5e/v6e 128 MiB


# ----------------------------------------------------------------------------
# Fused autoencoder kernel: one grid step per batch block of Bp rows.
# ----------------------------------------------------------------------------
def _fused_ae_kernel(*refs, T, H, Din, n_layers, Bp):
    it = iter(refs)
    x_ref = next(it)                                           # (1, T*Bp, Din) bf16
    enc = [(next(it), next(it), next(it)) for _ in range(n_layers)]
    fce_w, fce_b = next(it), next(it)                          # (H, L) f32, (1, L) f32
    fcd_w, fcd_b = next(it), next(it)                          # (L, H) f32, (1, H) f32
    dec = [(next(it), next(it), next(it)) for _ in range(n_layers)]
    out_ref = next(it)                                         # (1, T*Bp, Din) f32
    gx_enc = next(it)                                          # (T*Bp, 4H)  f32 scratch
    gx_dec0 = next(it)                                         # (Bp, 4*Din) f32 scratch

    def lstm_cell(g, c, hidden):
        # one full-tile sigmoid (covers i, f, o lanes) + one tanh on the g slice
        sg = jax.nn.sigmoid(g)
        i = sg[:, 0 * hidden:1 * hidden]
        f = sg[:, 1 * hidden:2 * hidden]
        o = sg[:, 3 * hidden:4 * hidden]
        gg = jnp.tanh(g[:, 2 * hidden:3 * hidden])
        c_new = f * c + i * gg
        h_new = o * jnp.tanh(c_new)
        return h_new, c_new

    def run_stack(layers, gx0_fn, hidden, store_fn):
        """Wavefront-interleaved LSTM stack: loop step s runs layer l at t = s - l."""
        n = len(layers)
        total = T + n - 1
        unroll = True if total <= 16 else 8   # partial unroll for long T

        def step(s, carry):
            hs, cs = carry                     # previous-iteration h/c per layer (f32)
            new_h, new_c = [], []
            for l in range(n):
                t = s - l
                if l == 0:
                    gx = gx0_fn(jnp.clip(t, 0, T - 1))
                else:
                    wih, _, b = layers[l]
                    gx = jnp.dot(hs[l - 1], wih[...],
                                 preferred_element_type=jnp.float32) + b[...]
                whh = layers[l][1]
                g = gx + jnp.dot(hs[l], whh[...], preferred_element_type=jnp.float32)
                h_new, c_new = lstm_cell(g, cs[l], hidden)
                if n > 1:  # mask ragged wavefront edges (t < 0 or t >= T)
                    valid = jnp.logical_and(t >= 0, t < T)
                    h_new = jnp.where(valid, h_new, hs[l])
                    c_new = jnp.where(valid, c_new, cs[l])
                new_h.append(h_new)
                new_c.append(c_new)
                if l == n - 1 and store_fn is not None:
                    h_st = h_new

                    @pl.when(t >= 0)          # last layer: t <= T-1 always holds
                    def _():
                        row = pl.multiple_of(jnp.maximum(t, 0) * Bp, Bp)
                        store_fn(row, h_st)
            return tuple(new_h), tuple(new_c)

        zeros = tuple(jnp.zeros((Bp, hidden), jnp.float32) for _ in range(n))
        hs, _ = lax.fori_loop(0, total, step, (zeros, zeros), unroll=unroll)
        return hs[-1]                          # last layer's h at t = T-1

    # ---- encoder: sequence-wide layer-0 input projection (one big bf16 MXU matmul) ---
    gx_enc[...] = (jnp.dot(x_ref[0], enc[0][0][...],
                           preferred_element_type=jnp.float32) + enc[0][2][...])

    def enc_gx0(t0):
        row = pl.multiple_of(t0 * Bp, Bp)
        return gx_enc[pl.ds(row, Bp), :]

    h_final = run_stack(enc, enc_gx0, H, None)   # only the final-step h is needed

    # ---- bottleneck: z = fc_enc(h_final); h_dec = fc_dec(z)  (all f32) ----------------
    z = jnp.dot(h_final, fce_w[...], preferred_element_type=jnp.float32) + fce_b[...]
    hd = jnp.dot(z, fcd_w[...], preferred_element_type=jnp.float32) + fcd_b[...]

    # ---- decoder: layer-0 input is h_dec repeated over time -> projection computed once
    gx_dec0[...] = (jnp.dot(hd, dec[0][0][...],
                            preferred_element_type=jnp.float32) + dec[0][2][...])

    def dec_store(row, h):
        # last decoder layer writes straight into the output block (no staging copy)
        out_ref[0, pl.ds(row, Bp), :] = h.astype(out_ref.dtype)

    run_stack(dec, lambda t0: gx_dec0[...], Din, dec_store)


# ----------------------------------------------------------------------------
# Wrapper: batch-block sizing, time-major packing, one pallas_call.
# ----------------------------------------------------------------------------
def _round_up(x, m):
    return ((x + m - 1) // m) * m


def _choose_batch_block(B, T, H, Din):
    """Largest batch block (multiple of 8, <= 256) whose VMEM working set fits budget."""
    b_pad = _round_up(B, _SUBLANE)
    # Per-batch-row bytes that scale with Bp inside one grid step:
    #   x block (bf16, double-buffered) + out block (f32, double-buffered)
    #   + gx_enc scratch (f32, T x 4H) + gx_dec0 scratch (f32, 4*Din).
    per_row = T * (Din * 2 * 2 + Din * 4 * 2 + 4 * H * 4) + 4 * 4 * Din
    cap = max(_SUBLANE, (_VMEM_BUDGET // max(per_row, 1)) // _SUBLANE * _SUBLANE)
    return min(b_pad, _MAX_BP, cap)


def _flatten_params(params):
    flat = []
    for (wih, whh, b) in params["enc_lstm"]:
        flat += [wih, whh, b]
    flat += [params["fc_enc"][0], params["fc_enc"][1],
             params["fc_dec"][0], params["fc_dec"][1]]
    for (wih, whh, b) in params["dec_lstm"]:
        flat += [wih, whh, b]
    return flat


@jax.jit
def lstm_autoencoder_forward(x, params):
    """x: (B, T, input_dim) float32 -> (B, T, input_dim) float32."""
    B, T, Din = x.shape
    H = params["enc_lstm"][0][1].shape[0]            # w_hh_t: (H, 4H)
    n_layers = len(params["enc_lstm"])
    assert params["dec_lstm"][0][1].shape[0] == Din  # decoder hidden == input_dim

    Bp = _choose_batch_block(B, T, H, Din)
    nb = pl.cdiv(B, Bp)
    B_tot = nb * Bp
    TB = T * Bp

    # (B,T,D) -> pad batch -> (nb, Bp, T, D) -> (nb, T, Bp, D) -> (nb, T*Bp, D), bf16
    xp = jnp.pad(x, ((0, B_tot - B), (0, 0), (0, 0)))
    xp = xp.reshape(nb, Bp, T, Din).transpose(0, 2, 1, 3).reshape(nb, TB, Din)
    xp = xp.astype(jnp.bfloat16)

    flat_w = _flatten_params(params)

    def full_spec(a):
        return pl.BlockSpec(a.shape, lambda b: (0,) * a.ndim)

    in_specs = ([pl.BlockSpec((1, TB, Din), lambda b: (b, 0, 0))]
                + [full_spec(a) for a in flat_w])

    kernel = functools.partial(_fused_ae_kernel, T=T, H=H, Din=Din,
                               n_layers=n_layers, Bp=Bp)

    out = pl.pallas_call(
        kernel,
        out_shape=jax.ShapeDtypeStruct((nb, TB, Din), jnp.float32),
        grid_spec=pltpu.PrefetchScalarGridSpec(
            num_scalar_prefetch=0,
            grid=(nb,),
            in_specs=in_specs,
            out_specs=pl.BlockSpec((1, TB, Din), lambda b: (b, 0, 0)),
            scratch_shapes=[
                pltpu.VMEM((TB, 4 * H), jnp.float32),     # encoder layer-0 gates_x
                pltpu.VMEM((Bp, 4 * Din), jnp.float32),   # decoder layer-0 gates_x (constant over t)
            ],
        ),
        compiler_params=pltpu.CompilerParams(
            dimension_semantics=("parallel",),            # batch blocks are independent
            vmem_limit_bytes=_VMEM_LIMIT,
        ),
    )(xp, *flat_w)

    # (nb, T*Bp, D) -> (B, T, D)
    out = out.reshape(nb, T, Bp, Din).transpose(0, 2, 1, 3).reshape(B_tot, T, Din)
    return out[:B]


# ----------------------------------------------------------------------------
# Parameter construction (PyTorch-style shapes/init).  Recurrent / small weights
# are kept in f32 (accuracy); only encoder layer-0 W_ih (the big sequence-wide
# MXU matmul operand) is stored in bf16.
# ----------------------------------------------------------------------------
def _init_lstm_params(key, input_dim, hidden_dim, num_layers, first_wih_dtype=jnp.float32):
    layers = []
    scale = 1.0 / float(hidden_dim) ** 0.5
    for layer in range(num_layers):
        d_in = input_dim if layer == 0 else hidden_dim
        key, k1, k2, k3, k4 = jax.random.split(key, 5)
        w_ih = jax.random.uniform(k1, (4 * hidden_dim, d_in), jnp.float32, -scale, scale)
        w_hh = jax.random.uniform(k2, (4 * hidden_dim, hidden_dim), jnp.float32, -scale, scale)
        b_ih = jax.random.uniform(k3, (4 * hidden_dim,), jnp.float32, -scale, scale)
        b_hh = jax.random.uniform(k4, (4 * hidden_dim,), jnp.float32, -scale, scale)
        wih_dtype = first_wih_dtype if layer == 0 else jnp.float32
        layers.append((w_ih.T.astype(wih_dtype),
                       w_hh.T.astype(jnp.float32),
                       (b_ih + b_hh)[None, :]))
    return layers, key


def init_params(key, input_dim, hidden_dim, latent_dim, num_layers):
    params = {}
    params["enc_lstm"], key = _init_lstm_params(
        key, input_dim, hidden_dim, num_layers, first_wih_dtype=jnp.bfloat16)
    params["dec_lstm"], key = _init_lstm_params(
        key, hidden_dim, input_dim, num_layers)

    def _linear_init(key, d_in, d_out):
        scale = 1.0 / float(d_in) ** 0.5
        key, k1, k2 = jax.random.split(key, 3)
        w = jax.random.uniform(k1, (d_out, d_in), jnp.float32, -scale, scale)
        b = jax.random.uniform(k2, (d_out,), jnp.float32, -scale, scale)
        return (w.T, b[None, :]), key

    params["fc_enc"], key = _linear_init(key, hidden_dim, latent_dim)
    params["fc_dec"], key = _linear_init(key, latent_dim, hidden_dim)
    return params


# ----------------------------------------------------------------------------
# Pure-JAX f32 reference (same stored weights) for a sanity check.
# ----------------------------------------------------------------------------
def _reference_forward(x, params):
    def run_lstm(seq, layers):
        out = seq
        for (wih_t, whh_t, b) in layers:
            wih_t = wih_t.astype(jnp.float32)
            whh_t = whh_t.astype(jnp.float32)
            Hh = whh_t.shape[0]
            Bt = out.shape[0]

            def step(carry, x_t):
                h, c = carry
                g = x_t @ wih_t + h @ whh_t + b[0]
                i = jax.nn.sigmoid(g[:, :Hh])
                f = jax.nn.sigmoid(g[:, Hh:2 * Hh])
                gg = jnp.tanh(g[:, 2 * Hh:3 * Hh])
                o = jax.nn.sigmoid(g[:, 3 * Hh:])
                c = f * c + i * gg
                h = o * jnp.tanh(c)
                return (h, c), h

            init = (jnp.zeros((Bt, Hh), jnp.float32), jnp.zeros((Bt, Hh), jnp.float32))
            _, hs = lax.scan(step, init, jnp.swapaxes(out, 0, 1))
            out = jnp.swapaxes(hs, 0, 1)
        return out

    enc_out = run_lstm(x, params["enc_lstm"])
    h_final = enc_out[:, -1, :]
    z = h_final @ params["fc_enc"][0].astype(jnp.float32) + params["fc_enc"][1][0]
    hd = z @ params["fc_dec"][0].astype(jnp.float32) + params["fc_dec"][1][0]
    hd_rep = jnp.repeat(hd[:, None, :], x.shape[1], axis=1)
    return run_lstm(hd_rep, params["dec_lstm"])


if __name__ == "__main__":
    # Small, module-consistent shapes.
    batch, seq, input_dim = 2, 8, 16
    hidden_dim, latent_dim, num_layers = 32, 8, 2

    key = jax.random.PRNGKey(0)
    key, xkey = jax.random.split(key)
    x = jax.random.normal(xkey, (batch, seq, input_dim), dtype=jnp.float32)

    params = init_params(key, input_dim, hidden_dim, latent_dim, num_layers)

    out = lstm_autoencoder_forward(x, params)
    out = jax.block_until_ready(out)
    assert out.shape == (batch, seq, input_dim), out.shape
    assert out.dtype == jnp.float32
    assert bool(jnp.all(jnp.isfinite(out)))

    ref = _reference_forward(x, params)
    max_err = float(jnp.max(jnp.abs(out - ref)))
    # only the bf16 x / bf16 W_ih layer-0 projection differs from the f32 reference
    assert max_err < 1e-1, f"mismatch vs reference: {max_err}"
    print("KERNEL_OK")
</pallas_src>

<mosaic_0001>
module attributes {stable_mosaic.version = 11 : i64} {
  func.func @_fused_ae_kernel(%arg0: i32, %arg1: memref<1x64x16xbf16, #tpu.memory_space<vmem>>, %arg2: memref<16x128xbf16, #tpu.memory_space<vmem>>, %arg3: memref<32x128xf32, #tpu.memory_space<vmem>>, %arg4: memref<1x128xf32, #tpu.memory_space<vmem>>, %arg5: memref<32x128xf32, #tpu.memory_space<vmem>>, %arg6: memref<32x128xf32, #tpu.memory_space<vmem>>, %arg7: memref<1x128xf32, #tpu.memory_space<vmem>>, %arg8: memref<32x8xf32, #tpu.memory_space<vmem>>, %arg9: memref<1x8xf32, #tpu.memory_space<vmem>>, %arg10: memref<8x32xf32, #tpu.memory_space<vmem>>, %arg11: memref<1x32xf32, #tpu.memory_space<vmem>>, %arg12: memref<32x64xf32, #tpu.memory_space<vmem>>, %arg13: memref<16x64xf32, #tpu.memory_space<vmem>>, %arg14: memref<1x64xf32, #tpu.memory_space<vmem>>, %arg15: memref<16x64xf32, #tpu.memory_space<vmem>>, %arg16: memref<16x64xf32, #tpu.memory_space<vmem>>, %arg17: memref<1x64xf32, #tpu.memory_space<vmem>>, %arg18: memref<1x64x16xf32, #tpu.memory_space<vmem>>, %arg19: memref<64x128xf32, #tpu.memory_space<vmem>>, %arg20: memref<8x64xf32, #tpu.memory_space<vmem>>) attributes {dimension_semantics = [#tpu.dimension_semantics<parallel>], iteration_bounds = array<i64: 1>, scalar_prefetch = 0 : i64, scratch_operands = 2 : i64, tpu.core_type = #tpu.core_type<tc>, window_params = [{transform_indices = @transform_0, window_bounds = array<i64: 1, 64, 16>}, {pipeline_mode = #tpu.pipeline_mode<synchronous>, transform_indices = @transform_1, window_bounds = array<i64: 16, 128>}, {pipeline_mode = #tpu.pipeline_mode<synchronous>, transform_indices = @transform_2, window_bounds = array<i64: 32, 128>}, {pipeline_mode = #tpu.pipeline_mode<synchronous>, transform_indices = @transform_3, window_bounds = array<i64: 1, 128>}, {pipeline_mode = #tpu.pipeline_mode<synchronous>, transform_indices = @transform_4, window_bounds = array<i64: 32, 128>}, {pipeline_mode = #tpu.pipeline_mode<synchronous>, transform_indices = @transform_5, window_bounds = array<i64: 32, 128>}, {pipeline_mode = #tpu.pipeline_mode<synchronous>, transform_indices = @transform_6, window_bounds = array<i64: 1, 128>}, {pipeline_mode = #tpu.pipeline_mode<synchronous>, transform_indices = @transform_7, window_bounds = array<i64: 32, 8>}, {pipeline_mode = #tpu.pipeline_mode<synchronous>, transform_indices = @transform_8, window_bounds = array<i64: 1, 8>}, {pipeline_mode = #tpu.pipeline_mode<synchronous>, transform_indices = @transform_9, window_bounds = array<i64: 8, 32>}, {pipeline_mode = #tpu.pipeline_mode<synchronous>, transform_indices = @transform_10, window_bounds = array<i64: 1, 32>}, {pipeline_mode = #tpu.pipeline_mode<synchronous>, transform_indices = @transform_11, window_bounds = array<i64: 32, 64>}, {pipeline_mode = #tpu.pipeline_mode<synchronous>, transform_indices = @transform_12, window_bounds = array<i64: 16, 64>}, {pipeline_mode = #tpu.pipeline_mode<synchronous>, transform_indices = @transform_13, window_bounds = array<i64: 1, 64>}, {pipeline_mode = #tpu.pipeline_mode<synchronous>, transform_indices = @transform_14, window_bounds = array<i64: 16, 64>}, {pipeline_mode = #tpu.pipeline_mode<synchronous>, transform_indices = @transform_15, window_bounds = array<i64: 16, 64>}, {pipeline_mode = #tpu.pipeline_mode<synchronous>, transform_indices = @transform_16, window_bounds = array<i64: 1, 64>}, {transform_indices = @transform_17, window_bounds = array<i64: 1, 64, 16>}]} {
    %c0 = arith.constant 0 : index
    %c0_0 = arith.constant 0 : index
    %c0_1 = arith.constant 0 : index
    %0 = vector.load %arg1[%c0, %c0_0, %c0_1] : memref<1x64x16xbf16, #tpu.memory_space<vmem>>, vector<1x64x16xbf16>
    %1 = vector.shape_cast %0 : vector<1x64x16xbf16> to vector<64x16xbf16>
    %c0_2 = arith.constant 0 : index
    %c0_3 = arith.constant 0 : index
    %2 = vector.load %arg2[%c0_2, %c0_3] : memref<16x128xbf16, #tpu.memory_space<vmem>>, vector<16x128xbf16>
    %cst = arith.constant dense<0.000000e+00> : vector<64x128xf32>
    %3 = tpu.matmul %1, %2, %cst {dimension_numbers = #tpu.dot_dimension_numbers<[1], [0], [0], [1], [0, 0, 1, 1], [], []>} : vector<64x16xbf16>, vector<16x128xbf16>, vector<64x128xf32> -> vector<64x128xf32>
    %c0_4 = arith.constant 0 : index
    %c0_5 = arith.constant 0 : index
    %4 = vector.load %arg4[%c0_4, %c0_5] : memref<1x128xf32, #tpu.memory_space<vmem>>, vector<1x128xf32>
    %5 = vector.broadcast %4 : vector<1x128xf32> to vector<64x128xf32>
    %6 = arith.addf %3, %5 : vector<64x128xf32>
    %c0_6 = arith.constant 0 : index
    %c0_7 = arith.constant 0 : index
    %7 = vector.load %arg19[%c0_6, %c0_7] : memref<64x128xf32, #tpu.memory_space<vmem>>, vector<64x128xf32>
    tpu.vector_store %arg19[%c0_6, %c0_7], %6 {strides = array<i32>} : memref<64x128xf32, #tpu.memory_space<vmem>>, vector<64x128xf32>,
    %cst_8 = arith.constant 0.000000e+00 : f32
    %8 = vector.broadcast %cst_8 : f32 to vector<8x32xf32>
    %cst_9 = arith.constant 0.000000e+00 : f32
    %9 = vector.broadcast %cst_9 : f32 to vector<8x32xf32>
    %c0_i32 = arith.constant 0 : i32
    %c0_i32_10 = arith.constant 0 : i32
    %10 = arith.subi %c0_i32, %c0_i32_10 : i32
    %c0_i32_11 = arith.constant 0 : i32
    %c7_i32 = arith.constant 7 : i32
    %11 = arith.maxsi %c0_i32_11, %10 : i32
    %12 = arith.minsi %c7_i32, %11 : i32
    %c8_i32 = arith.constant 8 : i32
    %13 = arith.muli %12, %c8_i32 : i32
    %14 = tpu.assume_multiple %13, 8 : i32
    %15 = arith.index_cast %14 : i32 to index
    %c0_12 = arith.constant 0 : index
    %16 = vector.load %arg19[%15, %c0_12] : memref<64x128xf32, #tpu.memory_space<vmem>>, vector<8x128xf32>
    %c0_13 = arith.constant 0 : index
    %c0_14 = arith.constant 0 : index
    %17 = vector.load %arg3[%c0_13, %c0_14] : memref<32x128xf32, #tpu.memory_space<vmem>>, vector<32x128xf32>
    %cst_15 = arith.constant dense<0.000000e+00> : vector<8x128xf32>
    %18 = tpu.matmul %8, %17, %cst_15 {dimension_numbers = #tpu.dot_dimension_numbers<[1], [0], [0], [1], [0, 0, 1, 1], [], []>} : vector<8x32xf32>, vector<32x128xf32>, vector<8x128xf32> -> vector<8x128xf32>
    %19 = arith.addf %16, %18 : vector<8x128xf32>
    %20 = arith.negf %19 : vector<8x128xf32>
    %21 = math.exp %20 : vector<8x128xf32>
    %cst_16 = arith.constant 1.000000e+00 : f32
    %22 = vector.broadcast %cst_16 : f32 to vector<8x128xf32>
    %23 = arith.addf %22, %21 : vector<8x128xf32>
    %24 = arith.divf %22, %23 : vector<8x128xf32>
    %25 = vector.extract_strided_slice %24 {offsets = [0, 0], sizes = [8, 32], strides = [1, 1]} : vector<8x128xf32> to vector<8x32xf32>
    %26 = vector.extract_strided_slice %24 {offsets = [0, 32], sizes = [8, 32], strides = [1, 1]} : vector<8x128xf32> to vector<8x32xf32>
    %27 = vector.extract_strided_slice %24 {offsets = [0, 96], sizes = [8, 32], strides = [1, 1]} : vector<8x128xf32> to vector<8x32xf32>
    %28 = vector.extract_strided_slice %19 {offsets = [0, 64], sizes = [8, 32], strides = [1, 1]} : vector<8x128xf32> to vector<8x32xf32>
    %29 = math.tanh %28 : vector<8x32xf32>
    %30 = arith.mulf %26, %8 : vector<8x32xf32>
    %31 = arith.mulf %25, %29 : vector<8x32xf32>
    %32 = arith.addf %30, %31 : vector<8x32xf32>
    %33 = math.tanh %32 : vector<8x32xf32>
    %34 = arith.mulf %27, %33 : vector<8x32xf32>
    %c0_i32_17 = arith.constant 0 : i32
    %35 = arith.cmpi sge, %10, %c0_i32_17 : i32
    %c8_i32_18 = arith.constant 8 : i32
    %36 = arith.cmpi slt, %10, %c8_i32_18 : i32
    %37 = arith.andi %35, %36 : i1
    %38 = arith.select %37, %34, %8 : vector<8x32xf32>
    %39 = arith.select %37, %32, %8 : vector<8x32xf32>
    %c1_i32 = arith.constant 1 : i32
    %40 = arith.subi %c0_i32, %c1_i32 : i32
    %c0_19 = arith.constant 0 : index
    %c0_20 = arith.constant 0 : index
    %41 = vector.load %arg5[%c0_19, %c0_20] : memref<32x128xf32, #tpu.memory_space<vmem>>, vector<32x128xf32>
    %cst_21 = arith.constant dense<0.000000e+00> : vector<8x128xf32>
    %42 = tpu.matmul %8, %41, %cst_21 {dimension_numbers = #tpu.dot_dimension_numbers<[1], [0], [0], [1], [0, 0, 1, 1], [], []>} : vector<8x32xf32>, vector<32x128xf32>, vector<8x128xf32> -> vector<8x128xf32>
    %c0_22 = arith.constant 0 : index
    %c0_23 = arith.constant 0 : index
    %43 = vector.load %arg7[%c0_22, %c0_23] : memref<1x128xf32, #tpu.memory_space<vmem>>, vector<1x128xf32>
    %44 = vector.broadcast %43 : vector<1x128xf32> to vector<8x128xf32>
    %45 = arith.addf %42, %44 : vector<8x128xf32>
    %c0_24 = arith.constant 0 : index
    %c0_25 = arith.constant 0 : index
    %46 = vector.load %arg6[%c0_24, %c0_25] : memref<32x128xf32, #tpu.memory_space<vmem>>, vector<32x128xf32>
    %cst_26 = arith.constant dense<0.000000e+00> : vector<8x128xf32>
    %47 = tpu.matmul %9, %46, %cst_26 {dimension_numbers = #tpu.dot_dimension_numbers<[1], [0], [0], [1], [0, 0, 1, 1], [], []>} : vector<8x32xf32>, vector<32x128xf32>, vector<8x128xf32> -> vector<8x128xf32>
    %48 = arith.addf %45, %47 : vector<8x128xf32>
    %49 = arith.negf %48 : vector<8x128xf32>
    %50 = math.exp %49 : vector<8x128xf32>
    %cst_27 = arith.constant 1.000000e+00 : f32
    %51 = vector.broadcast %cst_27 : f32 to vector<8x128xf32>
    %52 = arith.addf %51, %50 : vector<8x128xf32>
    %53 = arith.divf %51, %52 : vector<8x128xf32>
    %54 = vector.extract_strided_slice %53 {offsets = [0, 0], sizes = [8, 32], strides = [1, 1]} : vector<8x128xf32> to vector<8x32xf32>
    %55 = vector.extract_strided_slice %53 {offsets = [0, 32], sizes = [8, 32], strides = [1, 1]} : vector<8x128xf32> to vector<8x32xf32>
    %56 = vector.extract_strided_slice %53 {offsets = [0, 96], sizes = [8, 32], strides = [1, 1]} : vector<8x128xf32> to vector<8x32xf32>
    %57 = vector.extract_strided_slice %48 {offsets = [0, 64], sizes = [8, 32], strides = [1, 1]} : vector<8x128xf32> to vector<8x32xf32>
    %58 = math.tanh %57 : vector<8x32xf32>
    %59 = arith.mulf %55, %9 : vector<8x32xf32>
    %60 = arith.mulf %54, %58 : vector<8x32xf32>
    %61 = arith.addf %59, %60 : vector<8x32xf32>
    %62 = math.tanh %61 : vector<8x32xf32>
    %63 = arith.mulf %56, %62 : vector<8x32xf32>
    %c0_i32_28 = arith.constant 0 : i32
    %64 = arith.cmpi sge, %40, %c0_i32_28 : i32
    %c8_i32_29 = arith.constant 8 : i32
    %65 = arith.cmpi slt, %40, %c8_i32_29 : i32
    %66 = arith.andi %64, %65 : i1
    %67 = arith.select %66, %63, %9 : vector<8x32xf32>
    %68 = arith.select %66, %61, %9 : vector<8x32xf32>
    %c1_i32_30 = arith.constant 1 : i32
    %c0_i32_31 = arith.constant 0 : i32
    %69 = arith.subi %c1_i32_30, %c0_i32_31 : i32
    %c0_i32_32 = arith.constant 0 : i32
    %c7_i32_33 = arith.constant 7 : i32
    %70 = arith.maxsi %c0_i32_32, %69 : i32
    %71 = arith.minsi %c7_i32_33, %70 : i32
    %c8_i32_34 = arith.constant 8 : i32
    %72 = arith.muli %71, %c8_i32_34 : i32
    %73 = tpu.assume_multiple %72, 8 : i32
    %74 = arith.index_cast %73 : i32 to index
    %c0_35 = arith.constant 0 : index
    %75 = vector.load %arg19[%74, %c0_35] : memref<64x128xf32, #tpu.memory_space<vmem>>, vector<8x128xf32>
    %c0_36 = arith.constant 0 : index
    %c0_37 = arith.constant 0 : index
    %76 = vector.load %arg3[%c0_36, %c0_37] : memref<32x128xf32, #tpu.memory_space<vmem>>, vector<32x128xf32>
    %cst_38 = arith.constant dense<0.000000e+00> : vector<8x128xf32>
    %77 = tpu.matmul %38, %76, %cst_38 {dimension_numbers = #tpu.dot_dimension_numbers<[1], [0], [0], [1], [0, 0, 1, 1], [], []>} : vector<8x32xf32>, vector<32x128xf32>, vector<8x128xf32> -> vector<8x128xf32>
    %78 = arith.addf %75, %77 : vector<8x128xf32>
    %79 = arith.negf %78 : vector<8x128xf32>
    %80 = math.exp %79 : vector<8x128xf32>
    %cst_39 = arith.constant 1.000000e+00 : f32
    %81 = vector.broadcast %cst_39 : f32 to vector<8x128xf32>
    %82 = arith.addf %81, %80 : vector<8x128xf32>
    %83 = arith.divf %81, %82 : vector<8x128xf32>
    %84 = vector.extract_strided_slice %83 {offsets = [0, 0], sizes = [8, 32], strides = [1, 1]} : vector<8x128xf32> to vector<8x32xf32>
    %85 = vector.extract_strided_slice %83 {offsets = [0, 32], sizes = [8, 32], strides = [1, 1]} : vector<8x128xf32> to vector<8x32xf32>
    %86 = vector.extract_strided_slice %83 {offsets = [0, 96], sizes = [8, 32], strides = [1, 1]} : vector<8x128xf32> to vector<8x32xf32>
    %87 = vector.extract_strided_slice %78 {offsets = [0, 64], sizes = [8, 32], strides = [1, 1]} : vector<8x128xf32> to vector<8x32xf32>
    %88 = math.tanh %87 : vector<8x32xf32>
    %89 = arith.mulf %85, %39 : vector<8x32xf32>
    %90 = arith.mulf %84, %88 : vector<8x32xf32>
    %91 = arith.addf %89, %90 : vector<8x32xf32>
    %92 = math.tanh %91 : vector<8x32xf32>
    %93 = arith.mulf %86, %92 : vector<8x32xf32>
    %c0_i32_40 = arith.constant 0 : i32
    %94 = arith.cmpi sge, %69, %c0_i32_40 : i32
    %c8_i32_41 = arith.constant 8 : i32
    %95 = arith.cmpi slt, %69, %c8_i32_41 : i32
    %96 = arith.andi %94, %95 : i1
    %97 = arith.select %96, %93, %38 : vector<8x32xf32>
    %98 = arith.select %96, %91, %39 : vector<8x32xf32>
    %c1_i32_42 = arith.constant 1 : i32
    %99 = arith.subi %c1_i32_30, %c1_i32_42 : i32
    %c0_43 = arith.constant 0 : index
    %c0_44 = arith.constant 0 : index
    %100 = vector.load %arg5[%c0_43, %c0_44] : memref<32x128xf32, #tpu.memory_space<vmem>>, vector<32x128xf32>
    %cst_45 = arith.constant dense<0.000000e+00> : vector<8x128xf32>
    %101 = tpu.matmul %38, %100, %cst_45 {dimension_numbers = #tpu.dot_dimension_numbers<[1], [0], [0], [1], [0, 0, 1, 1], [], []>} : vector<8x32xf32>, vector<32x128xf32>, vector<8x128xf32> -> vector<8x128xf32>
    %c0_46 = arith.constant 0 : index
    %c0_47 = arith.constant 0 : index
    %102 = vector.load %arg7[%c0_46, %c0_47] : memref<1x128xf32, #tpu.memory_space<vmem>>, vector<1x128xf32>
    %103 = vector.broadcast %102 : vector<1x128xf32> to vector<8x128xf32>
    %104 = arith.addf %101, %103 : vector<8x128xf32>
    %c0_48 = arith.constant 0 : index
    %c0_49 = arith.constant 0 : index
    %105 = vector.load %arg6[%c0_48, %c0_49] : memref<32x128xf32, #tpu.memory_space<vmem>>, vector<32x128xf32>
    %cst_50 = arith.constant dense<0.000000e+00> : vector<8x128xf32>
    %106 = tpu.matmul %67, %105, %cst_50 {dimension_numbers = #tpu.dot_dimension_numbers<[1], [0], [0], [1], [0, 0, 1, 1], [], []>} : vector<8x32xf32>, vector<32x128xf32>, vector<8x128xf32> -> vector<8x128xf32>
    %107 = arith.addf %104, %106 : vector<8x128xf32>
    %108 = arith.negf %107 : vector<8x128xf32>
    %109 = math.exp %108 : vector<8x128xf32>
    %cst_51 = arith.constant 1.000000e+00 : f32
    %110 = vector.broadcast %cst_51 : f32 to vector<8x128xf32>
    %111 = arith.addf %110, %109 : vector<8x128xf32>
    %112 = arith.divf %110, %111 : vector<8x128xf32>
    %113 = vector.extract_strided_slice %112 {offsets = [0, 0], sizes = [8, 32], strides = [1, 1]} : vector<8x128xf32> to vector<8x32xf32>
    %114 = vector.extract_strided_slice %112 {offsets = [0, 32], sizes = [8, 32], strides = [1, 1]} : vector<8x128xf32> to vector<8x32xf32>
    %115 = vector.extract_strided_slice %112 {offsets = [0, 96], sizes = [8, 32], strides = [1, 1]} : vector<8x128xf32> to vector<8x32xf32>
    %116 = vector.extract_strided_slice %107 {offsets = [0, 64], sizes = [8, 32], strides = [1, 1]} : vector<8x128xf32> to vector<8x32xf32>
    %117 = math.tanh %116 : vector<8x32xf32>
    %118 = arith.mulf %114, %68 : vector<8x32xf32>
    %119 = arith.mulf %113, %117 : vector<8x32xf32>
    %120 = arith.addf %118, %119 : vector<8x32xf32>
    %121 = math.tanh %120 : vector<8x32xf32>
    %122 = arith.mulf %115, %121 : vector<8x32xf32>
    %c0_i32_52 = arith.constant 0 : i32
    %123 = arith.cmpi sge, %99, %c0_i32_52 : i32
    %c8_i32_53 = arith.constant 8 : i32
    %124 = arith.cmpi slt, %99, %c8_i32_53 : i32
    %125 = arith.andi %123, %124 : i1
    %126 = arith.select %125, %122, %67 : vector<8x32xf32>
    %127 = arith.select %125, %120, %68 : vector<8x32xf32>
    %c2_i32 = arith.constant 2 : i32
    %c0_i32_54 = arith.constant 0 : i32
    %128 = arith.subi %c2_i32, %c0_i32_54 : i32
    %c0_i32_55 = arith.constant 0 : i32
    %c7_i32_56 = arith.constant 7 : i32
    %129 = arith.maxsi %c0_i32_55, %128 : i32
    %130 = arith.minsi %c7_i32_56, %129 : i32
    %c8_i32_57 = arith.constant 8 : i32
    %131 = arith.muli %130, %c8_i32_57 : i32
    %132 = tpu.assume_multiple %131, 8 : i32
    %133 = arith.index_cast %132 : i32 to index
    %c0_58 = arith.constant 0 : index
    %134 = vector.load %arg19[%133, %c0_58] : memref<64x128xf32, #tpu.memory_space<vmem>>, vector<8x128xf32>
    %c0_59 = arith.constant 0 : index
    %c0_60 = arith.constant 0 : index
    %135 = vector.load %arg3[%c0_59, %c0_60] : memref<32x128xf32, #tpu.memory_space<vmem>>, vector<32x128xf32>
    %cst_61 = arith.constant dense<0.000000e+00> : vector<8x128xf32>
    %136 = tpu.matmul %97, %135, %cst_61 {dimension_numbers = #tpu.dot_dimension_numbers<[1], [0], [0], [1], [0, 0, 1, 1], [], []>} : vector<8x32xf32>, vector<32x128xf32>, vector<8x128xf32> -> vector<8x128xf32>
    %137 = arith.addf %134, %136 : vector<8x128xf32>
    %138 = arith.negf %137 : vector<8x128xf32>
    %139 = math.exp %138 : vector<8x128xf32>
    %cst_62 = arith.constant 1.000000e+00 : f32
    %140 = vector.broadcast %cst_62 : f32 to vector<8x128xf32>
    %141 = arith.addf %140, %139 : vector<8x128xf32>
    %142 = arith.divf %140, %141 : vector<8x128xf32>
    %143 = vector.extract_strided_slice %142 {offsets = [0, 0], sizes = [8, 32], strides = [1, 1]} : vector<8x128xf32> to vector<8x32xf32>
    %144 = vector.extract_strided_slice %142 {offsets = [0, 32], sizes = [8, 32], strides = [1, 1]} : vector<8x128xf32> to vector<8x32xf32>
    %145 = vector.extract_strided_slice %142 {offsets = [0, 96], sizes = [8, 32], strides = [1, 1]} : vector<8x128xf32> to vector<8x32xf32>
    %146 = vector.extract_strided_slice %137 {offsets = [0, 64], sizes = [8, 32], strides = [1, 1]} : vector<8x128xf32> to vector<8x32xf32>
    %147 = math.tanh %146 : vector<8x32xf32>
    %148 = arith.mulf %144, %98 : vector<8x32xf32>
    %149 = arith.mulf %143, %147 : vector<8x32xf32>
    %150 = arith.addf %148, %149 : vector<8x32xf32>
    %151 = math.tanh %150 : vector<8x32xf32>
    %152 = arith.mulf %145, %151 : vector<8x32xf32>
    %c0_i32_63 = arith.constant 0 : i32
    %153 = arith.cmpi sge, %128, %c0_i32_63 : i32
    %c8_i32_64 = arith.constant 8 : i32
    %154 = arith.cmpi slt, %128, %c8_i32_64 : i32
    %155 = arith.andi %153, %154 : i1
    %156 = arith.select %155, %152, %97 : vector<8x32xf32>
    %157 = arith.select %155, %150, %98 : vector<8x32xf32>
    %c1_i32_65 = arith.constant 1 : i32
    %158 = arith.subi %c2_i32, %c1_i32_65 : i32
    %c0_66 = arith.constant 0 : index
    %c0_67 = arith.constant 0 : index
    %159 = vector.load %arg5[%c0_66, %c0_67] : memref<32x128xf32, #tpu.memory_space<vmem>>, vector<32x128xf32>
    %cst_68 = arith.constant dense<0.000000e+00> : vector<8x128xf32>
    %160 = tpu.matmul %97, %159, %cst_68 {dimension_numbers = #tpu.dot_dimension_numbers<[1], [0], [0], [1], [0, 0, 1, 1], [], []>} : vector<8x32xf32>, vector<32x128xf32>, vector<8x128xf32> -> vector<8x128xf32>
    %c0_69 = arith.constant 0 : index
    %c0_70 = arith.constant 0 : index
    %161 = vector.load %arg7[%c0_69, %c0_70] : memref<1x128xf32, #tpu.memory_space<vmem>>, vector<1x128xf32>
    %162 = vector.broadcast %161 : vector<1x128xf32> to vector<8x128xf32>
    %163 = arith.addf %160, %162 : vector<8x128xf32>
    %c0_71 = arith.constant 0 : index
    %c0_72 = arith.constant 0 : index
    %164 = vector.load %arg6[%c0_71, %c0_72] : memref<32x128xf32, #tpu.memory_space<vmem>>, vector<32x128xf32>
    %cst_73 = arith.constant dense<0.000000e+00> : vector<8x128xf32>
    %165 = tpu.matmul %126, %164, %cst_73 {dimension_numbers = #tpu.dot_dimension_numbers<[1], [0], [0], [1], [0, 0, 1, 1], [], []>} : vector<8x32xf32>, vector<32x128xf32>, vector<8x128xf32> -> vector<8x128xf32>
    %166 = arith.addf %163, %165 : vector<8x128xf32>
    %167 = arith.negf %166 : vector<8x128xf32>
    %168 = math.exp %167 : vector<8x128xf32>
    %cst_74 = arith.constant 1.000000e+00 : f32
    %169 = vector.broadcast %cst_74 : f32 to vector<8x128xf32>
    %170 = arith.addf %169, %168 : vector<8x128xf32>
    %171 = arith.divf %169, %170 : vector<8x128xf32>
    %172 = vector.extract_strided_slice %171 {offsets = [0, 0], sizes = [8, 32], strides = [1, 1]} : vector<8x128xf32> to vector<8x32xf32>
    %173 = vector.extract_strided_slice %171 {offsets = [0, 32], sizes = [8, 32], strides = [1, 1]} : vector<8x128xf32> to vector<8x32xf32>
    %174 = vector.extract_strided_slice %171 {offsets = [0, 96], sizes = [8, 32], strides = [1, 1]} : vector<8x128xf32> to vector<8x32xf32>
    %175 = vector.extract_strided_slice %166 {offsets = [0, 64], sizes = [8, 32], strides = [1, 1]} : vector<8x128xf32> to vector<8x32xf32>
    %176 = math.tanh %175 : vector<8x32xf32>
    %177 = arith.mulf %173, %127 : vector<8x32xf32>
    %178 = arith.mulf %172, %176 : vector<8x32xf32>
    %179 = arith.addf %177, %178 : vector<8x32xf32>
    %180 = math.tanh %179 : vector<8x32xf32>
    %181 = arith.mulf %174, %180 : vector<8x32xf32>
    %c0_i32_75 = arith.constant 0 : i32
    %182 = arith.cmpi sge, %158, %c0_i32_75 : i32
    %c8_i32_76 = arith.constant 8 : i32
    %183 = arith.cmpi slt, %158, %c8_i32_76 : i32
    %184 = arith.andi %182, %183 : i1
    %185 = arith.select %184, %181, %126 : vector<8x32xf32>
    %186 = arith.select %184, %179, %127 : vector<8x32xf32>
    %c3_i32 = arith.constant 3 : i32
    %c0_i32_77 = arith.constant 0 : i32
    %187 = arith.subi %c3_i32, %c0_i32_77 : i32
    %c0_i32_78 = arith.constant 0 : i32
    %c7_i32_79 = arith.constant 7 : i32
    %188 = arith.maxsi %c0_i32_78, %187 : i32
    %189 = arith.minsi %c7_i32_79, %188 : i32
    %c8_i32_80 = arith.constant 8 : i32
    %190 = arith.muli %189, %c8_i32_80 : i32
    %191 = tpu.assume_multiple %190, 8 : i32
    %192 = arith.index_cast %191 : i32 to index
    %c0_81 = arith.constant 0 : index
    %193 = vector.load %arg19[%192, %c0_81] : memref<64x128xf32, #tpu.memory_space<vmem>>, vector<8x128xf32>
    %c0_82 = arith.constant 0 : index
    %c0_83 = arith.constant 0 : index
    %194 = vector.load %arg3[%c0_82, %c0_83] : memref<32x128xf32, #tpu.memory_space<vmem>>, vector<32x128xf32>
    %cst_84 = arith.constant dense<0.000000e+00> : vector<8x128xf32>
    %195 = tpu.matmul %156, %194, %cst_84 {dimension_numbers = #tpu.dot_dimension_numbers<[1], [0], [0], [1], [0, 0, 1, 1], [], []>} : vector<8x32xf32>, vector<32x128xf32>, vector<8x128xf32> -> vector<8x128xf32>
    %196 = arith.addf %193, %195 : vector<8x128xf32>
    %197 = arith.negf %196 : vector<8x128xf32>
    %198 = math.exp %197 : vector<8x128xf32>
    %cst_85 = arith.constant 1.000000e+00 : f32
    %199 = vector.broadcast %cst_85 : f32 to vector<8x128xf32>
    %200 = arith.addf %199, %198 : vector<8x128xf32>
    %201 = arith.divf %199, %200 : vector<8x128xf32>
    %202 = vector.extract_strided_slice %201 {offsets = [0, 0], sizes = [8, 32], strides = [1, 1]} : vector<8x128xf32> to vector<8x32xf32>
    %203 = vector.extract_strided_slice %201 {offsets = [0, 32], sizes = [8, 32], strides = [1, 1]} : vector<8x128xf32> to vector<8x32xf32>
    %204 = vector.extract_strided_slice %201 {offsets = [0, 96], sizes = [8, 32], strides = [1, 1]} : vector<8x128xf32> to vector<8x32xf32>
    %205 = vector.extract_strided_slice %196 {offsets = [0, 64], sizes = [8, 32], strides = [1, 1]} : vector<8x128xf32> to vector<8x32xf32>
    %206 = math.tanh %205 : vector<8x32xf32>
    %207 = arith.mulf %203, %157 : vector<8x32xf32>
    %208 = arith.mulf %202, %206 : vector<8x32xf32>
    %209 = arith.addf %207, %208 : vector<8x32xf32>
    %210 = math.tanh %209 : vector<8x32xf32>
    %211 = arith.mulf %204, %210 : vector<8x32xf32>
    %c0_i32_86 = arith.constant 0 : i32
    %212 = arith.cmpi sge, %187, %c0_i32_86 : i32
    %c8_i32_87 = arith.constant 8 : i32
    %213 = arith.cmpi slt, %187, %c8_i32_87 : i32
    %214 = arith.andi %212, %213 : i1
    %215 = arith.select %214, %211, %156 : vector<8x32xf32>
    %216 = arith.select %214, %209, %157 : vector<8x32xf32>
    %c1_i32_88 = arith.constant 1 : i32
    %217 = arith.subi %c3_i32, %c1_i32_88 : i32
    %c0_89 = arith.constant 0 : index
    %c0_90 = arith.constant 0 : index
    %218 = vector.load %arg5[%c0_89, %c0_90] : memref<32x128xf32, #tpu.memory_space<vmem>>, vector<32x128xf32>
    %cst_91 = arith.constant dense<0.000000e+00> : vector<8x128xf32>
    %219 = tpu.matmul %156, %218, %cst_91 {dimension_numbers = #tpu.dot_dimension_numbers<[1], [0], [0], [1], [0, 0, 1, 1], [], []>} : vector<8x32xf32>, vector<32x128xf32>, vector<8x128xf32> -> vector<8x128xf32>
    %c0_92 = arith.constant 0 : index
    %c0_93 = arith.constant 0 : index
    %220 = vector.load %arg7[%c0_92, %c0_93] : memref<1x128xf32, #tpu.memory_space<vmem>>, vector<1x128xf32>
    %221 = vector.broadcast %220 : vector<1x128xf32> to vector<8x128xf32>
    %222 = arith.addf %219, %221 : vector<8x128xf32>
    %c0_94 = arith.constant 0 : index
    %c0_95 = arith.constant 0 : index
    %223 = vector.load %arg6[%c0_94, %c0_95] : memref<32x128xf32, #tpu.memory_space<vmem>>, vector<32x128xf32>
    %cst_96 = arith.constant dense<0.000000e+00> : vector<8x128xf32>
    %224 = tpu.matmul %185, %223, %cst_96 {dimension_numbers = #tpu.dot_dimension_numbers<[1], [0], [0], [1], [0, 0, 1, 1], [], []>} : vector<8x32xf32>, vector<32x128xf32>, vector<8x128xf32> -> vector<8x128xf32>
    %225 = arith.addf %222, %224 : vector<8x128xf32>
    %226 = arith.negf %225 : vector<8x128xf32>
    %227 = math.exp %226 : vector<8x128xf32>
    %cst_97 = arith.constant 1.000000e+00 : f32
    %228 = vector.broadcast %cst_97 : f32 to vector<8x128xf32>
    %229 = arith.addf %228, %227 : vector<8x128xf32>
    %230 = arith.divf %228, %229 : vector<8x128xf32>
    %231 = vector.extract_strided_slice %230 {offsets = [0, 0], sizes = [8, 32], strides = [1, 1]} : vector<8x128xf32> to vector<8x32xf32>
    %232 = vector.extract_strided_slice %230 {offsets = [0, 32], sizes = [8, 32], strides = [1, 1]} : vector<8x128xf32> to vector<8x32xf32>
    %233 = vector.extract_strided_slice %230 {offsets = [0, 96], sizes = [8, 32], strides = [1, 1]} : vector<8x128xf32> to vector<8x32xf32>
    %234 = vector.extract_strided_slice %225 {offsets = [0, 64], sizes = [8, 32], strides = [1, 1]} : vector<8x128xf32> to vector<8x32xf32>
    %235 = math.tanh %234 : vector<8x32xf32>
    %236 = arith.mulf %232, %186 : vector<8x32xf32>
    %237 = arith.mulf %231, %235 : vector<8x32xf32>
    %238 = arith.addf %236, %237 : vector<8x32xf32>
    %239 = math.tanh %238 : vector<8x32xf32>
    %240 = arith.mulf %233, %239 : vector<8x32xf32>
    %c0_i32_98 = arith.constant 0 : i32
    %241 = arith.cmpi sge, %217, %c0_i32_98 : i32
    %c8_i32_99 = arith.constant 8 : i32
    %242 = arith.cmpi slt, %217, %c8_i32_99 : i32
    %243 = arith.andi %241, %242 : i1
    %244 = arith.select %243, %240, %185 : vector<8x32xf32>
    %245 = arith.select %243, %238, %186 : vector<8x32xf32>
    %c4_i32 = arith.constant 4 : i32
    %c0_i32_100 = arith.constant 0 : i32
    %246 = arith.subi %c4_i32, %c0_i32_100 : i32
    %c0_i32_101 = arith.constant 0 : i32
    %c7_i32_102 = arith.constant 7 : i32
    %247 = arith.maxsi %c0_i32_101, %246 : i32
    %248 = arith.minsi %c7_i32_102, %247 : i32
    %c8_i32_103 = arith.constant 8 : i32
    %249 = arith.muli %248, %c8_i32_103 : i32
    %250 = tpu.assume_multiple %249, 8 : i32
    %251 = arith.index_cast %250 : i32 to index
    %c0_104 = arith.constant 0 : index
    %252 = vector.load %arg19[%251, %c0_104] : memref<64x128xf32, #tpu.memory_space<vmem>>, vector<8x128xf32>
    %c0_105 = arith.constant 0 : index
    %c0_106 = arith.constant 0 : index
    %253 = vector.load %arg3[%c0_105, %c0_106] : memref<32x128xf32, #tpu.memory_space<vmem>>, vector<32x128xf32>
    %cst_107 = arith.constant dense<0.000000e+00> : vector<8x128xf32>
    %254 = tpu.matmul %215, %253, %cst_107 {dimension_numbers = #tpu.dot_dimension_numbers<[1], [0], [0], [1], [0, 0, 1, 1], [], []>} : vector<8x32xf32>, vector<32x128xf32>, vector<8x128xf32> -> vector<8x128xf32>
    %255 = arith.addf %252, %254 : vector<8x128xf32>
    %256 = arith.negf %255 : vector<8x128xf32>
    %257 = math.exp %256 : vector<8x128xf32>
    %cst_108 = arith.constant 1.000000e+00 : f32
    %258 = vector.broadcast %cst_108 : f32 to vector<8x128xf32>
    %259 = arith.addf %258, %257 : vector<8x128xf32>
    %260 = arith.divf %258, %259 : vector<8x128xf32>
    %261 = vector.extract_strided_slice %260 {offsets = [0, 0], sizes = [8, 32], strides = [1, 1]} : vector<8x128xf32> to vector<8x32xf32>
    %262 = vector.extract_strided_slice %260 {offsets = [0, 32], sizes = [8, 32], strides = [1, 1]} : vector<8x128xf32> to vector<8x32xf32>
    %263 = vector.extract_strided_slice %260 {offsets = [0, 96], sizes = [8, 32], strides = [1, 1]} : vector<8x128xf32> to vector<8x32xf32>
    %264 = vector.extract_strided_slice %255 {offsets = [0, 64], sizes = [8, 32], strides = [1, 1]} : vector<8x128xf32> to vector<8x32xf32>
    %265 = math.tanh %264 : vector<8x32xf32>
    %266 = arith.mulf %262, %216 : vector<8x32xf32>
    %267 = arith.mulf %261, %265 : vector<8x32xf32>
    %268 = arith.addf %266, %267 : vector<8x32xf32>
    %269 = math.tanh %268 : vector<8x32xf32>
    %270 = arith.mulf %263, %269 : vector<8x32xf32>
    %c0_i32_109 = arith.constant 0 : i32
    %271 = arith.cmpi sge, %246, %c0_i32_109 : i32
    %c8_i32_110 = arith.constant 8 : i32
    %272 = arith.cmpi slt, %246, %c8_i32_110 : i32
    %273 = arith.andi %271, %272 : i1
    %274 = arith.select %273, %270, %215 : vector<8x32xf32>
    %275 = arith.select %273, %268, %216 : vector<8x32xf32>
    %c1_i32_111 = arith.constant 1 : i32
    %276 = arith.subi %c4_i32, %c1_i32_111 : i32
    %c0_112 = arith.constant 0 : index
    %c0_113 = arith.constant 0 : index
    %277 = vector.load %arg5[%c0_112, %c0_113] : memref<32x128xf32, #tpu.memory_space<vmem>>, vector<32x128xf32>
    %cst_114 = arith.constant dense<0.000000e+00> : vector<8x128xf32>
    %278 = tpu.matmul %215, %277, %cst_114 {dimension_numbers = #tpu.dot_dimension_numbers<[1], [0], [0], [1], [0, 0, 1, 1], [], []>} : vector<8x32xf32>, vector<32x128xf32>, vector<8x128xf32> -> vector<8x128xf32>
    %c0_115 = arith.constant 0 : index
    %c0_116 = arith.constant 0 : index
    %279 = vector.load %arg7[%c0_115, %c0_116] : memref<1x128xf32, #tpu.memory_space<vmem>>, vector<1x128xf32>
    %280 = vector.broadcast %279 : vector<1x128xf32> to vector<8x128xf32>
    %281 = arith.addf %278, %280 : vector<8x128xf32>
    %c0_117 = arith.constant 0 : index
    %c0_118 = arith.constant 0 : index
    %282 = vector.load %arg6[%c0_117, %c0_118] : memref<32x128xf32, #tpu.memory_space<vmem>>, vector<32x128xf32>
    %cst_119 = arith.constant dense<0.000000e+00> : vector<8x128xf32>
    %283 = tpu.matmul %244, %282, %cst_119 {dimension_numbers = #tpu.dot_dimension_numbers<[1], [0], [0], [1], [0, 0, 1, 1], [], []>} : vector<8x32xf32>, vector<32x128xf32>, vector<8x128xf32> -> vector<8x128xf32>
    %284 = arith.addf %281, %283 : vector<8x128xf32>
    %285 = arith.negf %284 : vector<8x128xf32>
    %286 = math.exp %285 : vector<8x128xf32>
    %cst_120 = arith.constant 1.000000e+00 : f32
    %287 = vector.broadcast %cst_120 : f32 to vector<8x128xf32>
    %288 = arith.addf %287, %286 : vector<8x128xf32>
    %289 = arith.divf %287, %288 : vector<8x128xf32>
    %290 = vector.extract_strided_slice %289 {offsets = [0, 0], sizes = [8, 32], strides = [1, 1]} : vector<8x128xf32> to vector<8x32xf32>
    %291 = vector.extract_strided_slice %289 {offsets = [0, 32], sizes = [8, 32], strides = [1, 1]} : vector<8x128xf32> to vector<8x32xf32>
    %292 = vector.extract_strided_slice %289 {offsets = [0, 96], sizes = [8, 32], strides = [1, 1]} : vector<8x128xf32> to vector<8x32xf32>
    %293 = vector.extract_strided_slice %284 {offsets = [0, 64], sizes = [8, 32], strides = [1, 1]} : vector<8x128xf32> to vector<8x32xf32>
    %294 = math.tanh %293 : vector<8x32xf32>
    %295 = arith.mulf %291, %245 : vector<8x32xf32>
    %296 = arith.mulf %290, %294 : vector<8x32xf32>
    %297 = arith.addf %295, %296 : vector<8x32xf32>
    %298 = math.tanh %297 : vector<8x32xf32>
    %299 = arith.mulf %292, %298 : vector<8x32xf32>
    %c0_i32_121 = arith.constant 0 : i32
    %300 = arith.cmpi sge, %276, %c0_i32_121 : i32
    %c8_i32_122 = arith.constant 8 : i32
    %301 = arith.cmpi slt, %276, %c8_i32_122 : i32
    %302 = arith.andi %300, %301 : i1
    %303 = arith.select %302, %299, %244 : vector<8x32xf32>
    %304 = arith.select %302, %297, %245 : vector<8x32xf32>
    %c5_i32 = arith.constant 5 : i32
    %c0_i32_123 = arith.constant 0 : i32
    %305 = arith.subi %c5_i32, %c0_i32_123 : i32
    %c0_i32_124 = arith.constant 0 : i32
    %c7_i32_125 = arith.constant 7 : i32
    %306 = arith.maxsi %c0_i32_124, %305 : i32
    %307 = arith.minsi %c7_i32_125, %306 : i32
    %c8_i32_126 = arith.constant 8 : i32
    %308 = arith.muli %307, %c8_i32_126 : i32
    %309 = tpu.assume_multiple %308, 8 : i32
    %310 = arith.index_cast %309 : i32 to index
    %c0_127 = arith.constant 0 : index
    %311 = vector.load %arg19[%310, %c0_127] : memref<64x128xf32, #tpu.memory_space<vmem>>, vector<8x128xf32>
    %c0_128 = arith.constant 0 : index
    %c0_129 = arith.constant 0 : index
    %312 = vector.load %arg3[%c0_128, %c0_129] : memref<32x128xf32, #tpu.memory_space<vmem>>, vector<32x128xf32>
    %cst_130 = arith.constant dense<0.000000e+00> : vector<8x128xf32>
    %313 = tpu.matmul %274, %312, %cst_130 {dimension_numbers = #tpu.dot_dimension_numbers<[1], [0], [0], [1], [0, 0, 1, 1], [], []>} : vector<8x32xf32>, vector<32x128xf32>, vector<8x128xf32> -> vector<8x128xf32>
    %314 = arith.addf %311, %313 : vector<8x128xf32>
    %315 = arith.negf %314 : vector<8x128xf32>
    %316 = math.exp %315 : vector<8x128xf32>
    %cst_131 = arith.constant 1.000000e+00 : f32
    %317 = vector.broadcast %cst_131 : f32 to vector<8x128xf32>
    %318 = arith.addf %317, %316 : vector<8x128xf32>
    %319 = arith.divf %317, %318 : vector<8x128xf32>
    %320 = vector.extract_strided_slice %319 {offsets = [0, 0], sizes = [8, 32], strides = [1, 1]} : vector<8x128xf32> to vector<8x32xf32>
    %321 = vector.extract_strided_slice %319 {offsets = [0, 32], sizes = [8, 32], strides = [1, 1]} : vector<8x128xf32> to vector<8x32xf32>
    %322 = vector.extract_strided_slice %319 {offsets = [0, 96], sizes = [8, 32], strides = [1, 1]} : vector<8x128xf32> to vector<8x32xf32>
    %323 = vector.extract_strided_slice %314 {offsets = [0, 64], sizes = [8, 32], strides = [1, 1]} : vector<8x128xf32> to vector<8x32xf32>
    %324 = math.tanh %323 : vector<8x32xf32>
    %325 = arith.mulf %321, %275 : vector<8x32xf32>
    %326 = arith.mulf %320, %324 : vector<8x32xf32>
    %327 = arith.addf %325, %326 : vector<8x32xf32>
    %328 = math.tanh %327 : vector<8x32xf32>
    %329 = arith.mulf %322, %328 : vector<8x32xf32>
    %c0_i32_132 = arith.constant 0 : i32
    %330 = arith.cmpi sge, %305, %c0_i32_132 : i32
    %c8_i32_133 = arith.constant 8 : i32
    %331 = arith.cmpi slt, %305, %c8_i32_133 : i32
    %332 = arith.andi %330, %331 : i1
    %333 = arith.select %332, %329, %274 : vector<8x32xf32>
    %334 = arith.select %332, %327, %275 : vector<8x32xf32>
    %c1_i32_134 = arith.constant 1 : i32
    %335 = arith.subi %c5_i32, %c1_i32_134 : i32
    %c0_135 = arith.constant 0 : index
    %c0_136 = arith.constant 0 : index
    %336 = vector.load %arg5[%c0_135, %c0_136] : memref<32x128xf32, #tpu.memory_space<vmem>>, vector<32x128xf32>
    %cst_137 = arith.constant dense<0.000000e+00> : vector<8x128xf32>
    %337 = tpu.matmul %274, %336, %cst_137 {dimension_numbers = #tpu.dot_dimension_numbers<[1], [0], [0], [1], [0, 0, 1, 1], [], []>} : vector<8x32xf32>, vector<32x128xf32>, vector<8x128xf32> -> vector<8x128xf32>
    %c0_138 = arith.constant 0 : index
    %c0_139 = arith.constant 0 : index
    %338 = vector.load %arg7[%c0_138, %c0_139] : memref<1x128xf32, #tpu.memory_space<vmem>>, vector<1x128xf32>
    %339 = vector.broadcast %338 : vector<1x128xf32> to vector<8x128xf32>
    %340 = arith.addf %337, %339 : vector<8x128xf32>
    %c0_140 = arith.constant 0 : index
    %c0_141 = arith.constant 0 : index
    %341 = vector.load %arg6[%c0_140, %c0_141] : memref<32x128xf32, #tpu.memory_space<vmem>>, vector<32x128xf32>
    %cst_142 = arith.constant dense<0.000000e+00> : vector<8x128xf32>
    %342 = tpu.matmul %303, %341, %cst_142 {dimension_numbers = #tpu.dot_dimension_numbers<[1], [0], [0], [1], [0, 0, 1, 1], [], []>} : vector<8x32xf32>, vector<32x128xf32>, vector<8x128xf32> -> vector<8x128xf32>
    %343 = arith.addf %340, %342 : vector<8x128xf32>
    %344 = arith.negf %343 : vector<8x128xf32>
    %345 = math.exp %344 : vector<8x128xf32>
    %cst_143 = arith.constant 1.000000e+00 : f32
    %346 = vector.broadcast %cst_143 : f32 to vector<8x128xf32>
    %347 = arith.addf %346, %345 : vector<8x128xf32>
    %348 = arith.divf %346, %347 : vector<8x128xf32>
    %349 = vector.extract_strided_slice %348 {offsets = [0, 0], sizes = [8, 32], strides = [1, 1]} : vector<8x128xf32> to vector<8x32xf32>
    %350 = vector.extract_strided_slice %348 {offsets = [0, 32], sizes = [8, 32], strides = [1, 1]} : vector<8x128xf32> to vector<8x32xf32>
    %351 = vector.extract_strided_slice %348 {offsets = [0, 96], sizes = [8, 32], strides = [1, 1]} : vector<8x128xf32> to vector<8x32xf32>
    %352 = vector.extract_strided_slice %343 {offsets = [0, 64], sizes = [8, 32], strides = [1, 1]} : vector<8x128xf32> to vector<8x32xf32>
    %353 = math.tanh %352 : vector<8x32xf32>
    %354 = arith.mulf %350, %304 : vector<8x32xf32>
    %355 = arith.mulf %349, %353 : vector<8x32xf32>
    %356 = arith.addf %354, %355 : vector<8x32xf32>
    %357 = math.tanh %356 : vector<8x32xf32>
    %358 = arith.mulf %351, %357 : vector<8x32xf32>
    %c0_i32_144 = arith.constant 0 : i32
    %359 = arith.cmpi sge, %335, %c0_i32_144 : i32
    %c8_i32_145 = arith.constant 8 : i32
    %360 = arith.cmpi slt, %335, %c8_i32_145 : i32
    %361 = arith.andi %359, %360 : i1
    %362 = arith.select %361, %358, %303 : vector<8x32xf32>
    %363 = arith.select %361, %356, %304 : vector<8x32xf32>
    %c6_i32 = arith.constant 6 : i32
    %c0_i32_146 = arith.constant 0 : i32
    %364 = arith.subi %c6_i32, %c0_i32_146 : i32
    %c0_i32_147 = arith.constant 0 : i32
    %c7_i32_148 = arith.constant 7 : i32
    %365 = arith.maxsi %c0_i32_147, %364 : i32
    %366 = arith.minsi %c7_i32_148, %365 : i32
    %c8_i32_149 = arith.constant 8 : i32
    %367 = arith.muli %366, %c8_i32_149 : i32
    %368 = tpu.assume_multiple %367, 8 : i32
    %369 = arith.index_cast %368 : i32 to index
    %c0_150 = arith.constant 0 : index
    %370 = vector.load %arg19[%369, %c0_150] : memref<64x128xf32, #tpu.memory_space<vmem>>, vector<8x128xf32>
    %c0_151 = arith.constant 0 : index
    %c0_152 = arith.constant 0 : index
    %371 = vector.load %arg3[%c0_151, %c0_152] : memref<32x128xf32, #tpu.memory_space<vmem>>, vector<32x128xf32>
    %cst_153 = arith.constant dense<0.000000e+00> : vector<8x128xf32>
    %372 = tpu.matmul %333, %371, %cst_153 {dimension_numbers = #tpu.dot_dimension_numbers<[1], [0], [0], [1], [0, 0, 1, 1], [], []>} : vector<8x32xf32>, vector<32x128xf32>, vector<8x128xf32> -> vector<8x128xf32>
    %373 = arith.addf %370, %372 : vector<8x128xf32>
    %374 = arith.negf %373 : vector<8x128xf32>
    %375 = math.exp %374 : vector<8x128xf32>
    %cst_154 = arith.constant 1.000000e+00 : f32
    %376 = vector.broadcast %cst_154 : f32 to vector<8x128xf32>
    %377 = arith.addf %376, %375 : vector<8x128xf32>
    %378 = arith.divf %376, %377 : vector<8x128xf32>
    %379 = vector.extract_strided_slice %378 {offsets = [0, 0], sizes = [8, 32], strides = [1, 1]} : vector<8x128xf32> to vector<8x32xf32>
    %380 = vector.extract_strided_slice %378 {offsets = [0, 32], sizes = [8, 32], strides = [1, 1]} : vector<8x128xf32> to vector<8x32xf32>
    %381 = vector.extract_strided_slice %378 {offsets = [0, 96], sizes = [8, 32], strides = [1, 1]} : vector<8x128xf32> to vector<8x32xf32>
    %382 = vector.extract_strided_slice %373 {offsets = [0, 64], sizes = [8, 32], strides = [1, 1]} : vector<8x128xf32> to vector<8x32xf32>
    %383 = math.tanh %382 : vector<8x32xf32>
    %384 = arith.mulf %380, %334 : vector<8x32xf32>
    %385 = arith.mulf %379, %383 : vector<8x32xf32>
    %386 = arith.addf %384, %385 : vector<8x32xf32>
    %387 = math.tanh %386 : vector<8x32xf32>
    %388 = arith.mulf %381, %387 : vector<8x32xf32>
    %c0_i32_155 = arith.constant 0 : i32
    %389 = arith.cmpi sge, %364, %c0_i32_155 : i32
    %c8_i32_156 = arith.constant 8 : i32
    %390 = arith.cmpi slt, %364, %c8_i32_156 : i32
    %391 = arith.andi %389, %390 : i1
    %392 = arith.select %391, %388, %333 : vector<8x32xf32>
    %393 = arith.select %391, %386, %334 : vector<8x32xf32>
    %c1_i32_157 = arith.constant 1 : i32
    %394 = arith.subi %c6_i32, %c1_i32_157 : i32
    %c0_158 = arith.constant 0 : index
    %c0_159 = arith.constant 0 : index
    %395 = vector.load %arg5[%c0_158, %c0_159] : memref<32x128xf32, #tpu.memory_space<vmem>>, vector<32x128xf32>
    %cst_160 = arith.constant dense<0.000000e+00> : vector<8x128xf32>
    %396 = tpu.matmul %333, %395, %cst_160 {dimension_numbers = #tpu.dot_dimension_numbers<[1], [0], [0], [1], [0, 0, 1, 1], [], []>} : vector<8x32xf32>, vector<32x128xf32>, vector<8x128xf32> -> vector<8x128xf32>
    %c0_161 = arith.constant 0 : index
    %c0_162 = arith.constant 0 : index
    %397 = vector.load %arg7[%c0_161, %c0_162] : memref<1x128xf32, #tpu.memory_space<vmem>>, vector<1x128xf32>
    %398 = vector.broadcast %397 : vector<1x128xf32> to vector<8x128xf32>
    %399 = arith.addf %396, %398 : vector<8x128xf32>
    %c0_163 = arith.constant 0 : index
    %c0_164 = arith.constant 0 : index
    %400 = vector.load %arg6[%c0_163, %c0_164] : memref<32x128xf32, #tpu.memory_space<vmem>>, vector<32x128xf32>
    %cst_165 = arith.constant dense<0.000000e+00> : vector<8x128xf32>
    %401 = tpu.matmul %362, %400, %cst_165 {dimension_numbers = #tpu.dot_dimension_numbers<[1], [0], [0], [1], [0, 0, 1, 1], [], []>} : vector<8x32xf32>, vector<32x128xf32>, vector<8x128xf32> -> vector<8x128xf32>
    %402 = arith.addf %399, %401 : vector<8x128xf32>
    %403 = arith.negf %402 : vector<8x128xf32>
    %404 = math.exp %403 : vector<8x128xf32>
    %cst_166 = arith.constant 1.000000e+00 : f32
    %405 = vector.broadcast %cst_166 : f32 to vector<8x128xf32>
    %406 = arith.addf %405, %404 : vector<8x128xf32>
    %407 = arith.divf %405, %406 : vector<8x128xf32>
    %408 = vector.extract_strided_slice %407 {offsets = [0, 0], sizes = [8, 32], strides = [1, 1]} : vector<8x128xf32> to vector<8x32xf32>
    %409 = vector.extract_strided_slice %407 {offsets = [0, 32], sizes = [8, 32], strides = [1, 1]} : vector<8x128xf32> to vector<8x32xf32>
    %410 = vector.extract_strided_slice %407 {offsets = [0, 96], sizes = [8, 32], strides = [1, 1]} : vector<8x128xf32> to vector<8x32xf32>
    %411 = vector.extract_strided_slice %402 {offsets = [0, 64], sizes = [8, 32], strides = [1, 1]} : vector<8x128xf32> to vector<8x32xf32>
    %412 = math.tanh %411 : vector<8x32xf32>
    %413 = arith.mulf %409, %363 : vector<8x32xf32>
    %414 = arith.mulf %408, %412 : vector<8x32xf32>
    %415 = arith.addf %413, %414 : vector<8x32xf32>
    %416 = math.tanh %415 : vector<8x32xf32>
    %417 = arith.mulf %410, %416 : vector<8x32xf32>
    %c0_i32_167 = arith.constant 0 : i32
    %418 = arith.cmpi sge, %394, %c0_i32_167 : i32
    %c8_i32_168 = arith.constant 8 : i32
    %419 = arith.cmpi slt, %394, %c8_i32_168 : i32
    %420 = arith.andi %418, %419 : i1
    %421 = arith.select %420, %417, %362 : vector<8x32xf32>
    %422 = arith.select %420, %415, %363 : vector<8x32xf32>
    %c7_i32_169 = arith.constant 7 : i32
    %c0_i32_170 = arith.constant 0 : i32
    %423 = arith.subi %c7_i32_169, %c0_i32_170 : i32
    %c0_i32_171 = arith.constant 0 : i32
    %c7_i32_172 = arith.constant 7 : i32
    %424 = arith.maxsi %c0_i32_171, %423 : i32
    %425 = arith.minsi %c7_i32_172, %424 : i32
    %c8_i32_173 = arith.constant 8 : i32
    %426 = arith.muli %425, %c8_i32_173 : i32
    %427 = tpu.assume_multiple %426, 8 : i32
    %428 = arith.index_cast %427 : i32 to index
    %c0_174 = arith.constant 0 : index
    %429 = vector.load %arg19[%428, %c0_174] : memref<64x128xf32, #tpu.memory_space<vmem>>, vector<8x128xf32>
    %c0_175 = arith.constant 0 : index
    %c0_176 = arith.constant 0 : index
    %430 = vector.load %arg3[%c0_175, %c0_176] : memref<32x128xf32, #tpu.memory_space<vmem>>, vector<32x128xf32>
    %cst_177 = arith.constant dense<0.000000e+00> : vector<8x128xf32>
    %431 = tpu.matmul %392, %430, %cst_177 {dimension_numbers = #tpu.dot_dimension_numbers<[1], [0], [0], [1], [0, 0, 1, 1], [], []>} : vector<8x32xf32>, vector<32x128xf32>, vector<8x128xf32> -> vector<8x128xf32>
    %432 = arith.addf %429, %431 : vector<8x128xf32>
    %433 = arith.negf %432 : vector<8x128xf32>
    %434 = math.exp %433 : vector<8x128xf32>
    %cst_178 = arith.constant 1.000000e+00 : f32
    %435 = vector.broadcast %cst_178 : f32 to vector<8x128xf32>
    %436 = arith.addf %435, %434 : vector<8x128xf32>
    %437 = arith.divf %435, %436 : vector<8x128xf32>
    %438 = vector.extract_strided_slice %437 {offsets = [0, 0], sizes = [8, 32], strides = [1, 1]} : vector<8x128xf32> to vector<8x32xf32>
    %439 = vector.extract_strided_slice %437 {offsets = [0, 32], sizes = [8, 32], strides = [1, 1]} : vector<8x128xf32> to vector<8x32xf32>
    %440 = vector.extract_strided_slice %437 {offsets = [0, 96], sizes = [8, 32], strides = [1, 1]} : vector<8x128xf32> to vector<8x32xf32>
    %441 = vector.extract_strided_slice %432 {offsets = [0, 64], sizes = [8, 32], strides = [1, 1]} : vector<8x128xf32> to vector<8x32xf32>
    %442 = math.tanh %441 : vector<8x32xf32>
    %443 = arith.mulf %439, %393 : vector<8x32xf32>
    %444 = arith.mulf %438, %442 : vector<8x32xf32>
    %445 = arith.addf %443, %444 : vector<8x32xf32>
    %446 = math.tanh %445 : vector<8x32xf32>
    %447 = arith.mulf %440, %446 : vector<8x32xf32>
    %c0_i32_179 = arith.constant 0 : i32
    %448 = arith.cmpi sge, %423, %c0_i32_179 : i32
    %c8_i32_180 = arith.constant 8 : i32
    %449 = arith.cmpi slt, %423, %c8_i32_180 : i32
    %450 = arith.andi %448, %449 : i1
    %451 = arith.select %450, %447, %392 : vector<8x32xf32>
    %452 = arith.select %450, %445, %393 : vector<8x32xf32>
    %c1_i32_181 = arith.constant 1 : i32
    %453 = arith.subi %c7_i32_169, %c1_i32_181 : i32
    %c0_182 = arith.constant 0 : index
    %c0_183 = arith.constant 0 : index
    %454 = vector.load %arg5[%c0_182, %c0_183] : memref<32x128xf32, #tpu.memory_space<vmem>>, vector<32x128xf32>
    %cst_184 = arith.constant dense<0.000000e+00> : vector<8x128xf32>
    %455 = tpu.matmul %392, %454, %cst_184 {dimension_numbers = #tpu.dot_dimension_numbers<[1], [0], [0], [1], [0, 0, 1, 1], [], []>} : vector<8x32xf32>, vector<32x128xf32>, vector<8x128xf32> -> vector<8x128xf32>
    %c0_185 = arith.constant 0 : index
    %c0_186 = arith.constant 0 : index
    %456 = vector.load %arg7[%c0_185, %c0_186] : memref<1x128xf32, #tpu.memory_space<vmem>>, vector<1x128xf32>
    %457 = vector.broadcast %456 : vector<1x128xf32> to vector<8x128xf32>
    %458 = arith.addf %455, %457 : vector<8x128xf32>
    %c0_187 = arith.constant 0 : index
    %c0_188 = arith.constant 0 : index
    %459 = vector.load %arg6[%c0_187, %c0_188] : memref<32x128xf32, #tpu.memory_space<vmem>>, vector<32x128xf32>
    %cst_189 = arith.constant dense<0.000000e+00> : vector<8x128xf32>
    %460 = tpu.matmul %421, %459, %cst_189 {dimension_numbers = #tpu.dot_dimension_numbers<[1], [0], [0], [1], [0, 0, 1, 1], [], []>} : vector<8x32xf32>, vector<32x128xf32>, vector<8x128xf32> -> vector<8x128xf32>
    %461 = arith.addf %458, %460 : vector<8x128xf32>
    %462 = arith.negf %461 : vector<8x128xf32>
    %463 = math.exp %462 : vector<8x128xf32>
    %cst_190 = arith.constant 1.000000e+00 : f32
    %464 = vector.broadcast %cst_190 : f32 to vector<8x128xf32>
    %465 = arith.addf %464, %463 : vector<8x128xf32>
    %466 = arith.divf %464, %465 : vector<8x128xf32>
    %467 = vector.extract_strided_slice %466 {offsets = [0, 0], sizes = [8, 32], strides = [1, 1]} : vector<8x128xf32> to vector<8x32xf32>
    %468 = vector.extract_strided_slice %466 {offsets = [0, 32], sizes = [8, 32], strides = [1, 1]} : vector<8x128xf32> to vector<8x32xf32>
    %469 = vector.extract_strided_slice %466 {offsets = [0, 96], sizes = [8, 32], strides = [1, 1]} : vector<8x128xf32> to vector<8x32xf32>
    %470 = vector.extract_strided_slice %461 {offsets = [0, 64], sizes = [8, 32], strides = [1, 1]} : vector<8x128xf32> to vector<8x32xf32>
    %471 = math.tanh %470 : vector<8x32xf32>
    %472 = arith.mulf %468, %422 : vector<8x32xf32>
    %473 = arith.mulf %467, %471 : vector<8x32xf32>
    %474 = arith.addf %472, %473 : vector<8x32xf32>
    %475 = math.tanh %474 : vector<8x32xf32>
    %476 = arith.mulf %469, %475 : vector<8x32xf32>
    %c0_i32_191 = arith.constant 0 : i32
    %477 = arith.cmpi sge, %453, %c0_i32_191 : i32
    %c8_i32_192 = arith.constant 8 : i32
    %478 = arith.cmpi slt, %453, %c8_i32_192 : i32
    %479 = arith.andi %477, %478 : i1
    %480 = arith.select %479, %476, %421 : vector<8x32xf32>
    %481 = arith.select %479, %474, %422 : vector<8x32xf32>
    %c8_i32_193 = arith.constant 8 : i32
    %c0_i32_194 = arith.constant 0 : i32
    %482 = arith.subi %c8_i32_193, %c0_i32_194 : i32
    %c0_i32_195 = arith.constant 0 : i32
    %c7_i32_196 = arith.constant 7 : i32
    %483 = arith.maxsi %c0_i32_195, %482 : i32
    %484 = arith.minsi %c7_i32_196, %483 : i32
    %c8_i32_197 = arith.constant 8 : i32
    %485 = arith.muli %484, %c8_i32_197 : i32
    %486 = tpu.assume_multiple %485, 8 : i32
    %487 = arith.index_cast %486 : i32 to index
    %c0_198 = arith.constant 0 : index
    %488 = vector.load %arg19[%487, %c0_198] : memref<64x128xf32, #tpu.memory_space<vmem>>, vector<8x128xf32>
    %c0_199 = arith.constant 0 : index
    %c0_200 = arith.constant 0 : index
    %489 = vector.load %arg3[%c0_199, %c0_200] : memref<32x128xf32, #tpu.memory_space<vmem>>, vector<32x128xf32>
    %cst_201 = arith.constant dense<0.000000e+00> : vector<8x128xf32>
    %490 = tpu.matmul %451, %489, %cst_201 {dimension_numbers = #tpu.dot_dimension_numbers<[1], [0], [0], [1], [0, 0, 1, 1], [], []>} : vector<8x32xf32>, vector<32x128xf32>, vector<8x128xf32> -> vector<8x128xf32>
    %491 = arith.addf %488, %490 : vector<8x128xf32>
    %492 = arith.negf %491 : vector<8x128xf32>
    %493 = math.exp %492 : vector<8x128xf32>
    %cst_202 = arith.constant 1.000000e+00 : f32
    %494 = vector.broadcast %cst_202 : f32 to vector<8x128xf32>
    %495 = arith.addf %494, %493 : vector<8x128xf32>
    %496 = arith.divf %494, %495 : vector<8x128xf32>
    %497 = vector.extract_strided_slice %496 {offsets = [0, 0], sizes = [8, 32], strides = [1, 1]} : vector<8x128xf32> to vector<8x32xf32>
    %498 = vector.extract_strided_slice %496 {offsets = [0, 32], sizes = [8, 32], strides = [1, 1]} : vector<8x128xf32> to vector<8x32xf32>
    %499 = vector.extract_strided_slice %496 {offsets = [0, 96], sizes = [8, 32], strides = [1, 1]} : vector<8x128xf32> to vector<8x32xf32>
    %500 = vector.extract_strided_slice %491 {offsets = [0, 64], sizes = [8, 32], strides = [1, 1]} : vector<8x128xf32> to vector<8x32xf32>
    %501 = math.tanh %500 : vector<8x32xf32>
    %502 = arith.mulf %498, %452 : vector<8x32xf32>
    %503 = arith.mulf %497, %501 : vector<8x32xf32>
    %504 = arith.addf %502, %503 : vector<8x32xf32>
    %505 = math.tanh %504 : vector<8x32xf32>
    %506 = arith.mulf %499, %505 : vector<8x32xf32>
    %c0_i32_203 = arith.constant 0 : i32
    %507 = arith.cmpi sge, %482, %c0_i32_203 : i32
    %c8_i32_204 = arith.constant 8 : i32
    %508 = arith.cmpi slt, %482, %c8_i32_204 : i32
    %509 = arith.andi %507, %508 : i1
    %510 = arith.select %509, %506, %451 : vector<8x32xf32>
    %511 = arith.select %509, %504, %452 : vector<8x32xf32>
    %c1_i32_205 = arith.constant 1 : i32
    %512 = arith.subi %c8_i32_193, %c1_i32_205 : i32
    %c0_206 = arith.constant 0 : index
    %c0_207 = arith.constant 0 : index
    %513 = vector.load %arg5[%c0_206, %c0_207] : memref<32x128xf32, #tpu.memory_space<vmem>>, vector<32x128xf32>
    %cst_208 = arith.constant dense<0.000000e+00> : vector<8x128xf32>
    %514 = tpu.matmul %451, %513, %cst_208 {dimension_numbers = #tpu.dot_dimension_numbers<[1], [0], [0], [1], [0, 0, 1, 1], [], []>} : vector<8x32xf32>, vector<32x128xf32>, vector<8x128xf32> -> vector<8x128xf32>
    %c0_209 = arith.constant 0 : index
    %c0_210 = arith.constant 0 : index
    %515 = vector.load %arg7[%c0_209, %c0_210] : memref<1x128xf32, #tpu.memory_space<vmem>>, vector<1x128xf32>
    %516 = vector.broadcast %515 : vector<1x128xf32> to vector<8x128xf32>
    %517 = arith.addf %514, %516 : vector<8x128xf32>
    %c0_211 = arith.constant 0 : index
    %c0_212 = arith.constant 0 : index
    %518 = vector.load %arg6[%c0_211, %c0_212] : memref<32x128xf32, #tpu.memory_space<vmem>>, vector<32x128xf32>
    %cst_213 = arith.constant dense<0.000000e+00> : vector<8x128xf32>
    %519 = tpu.matmul %480, %518, %cst_213 {dimension_numbers = #tpu.dot_dimension_numbers<[1], [0], [0], [1], [0, 0, 1, 1], [], []>} : vector<8x32xf32>, vector<32x128xf32>, vector<8x128xf32> -> vector<8x128xf32>
    %520 = arith.addf %517, %519 : vector<8x128xf32>
    %521 = arith.negf %520 : vector<8x128xf32>
    %522 = math.exp %521 : vector<8x128xf32>
    %cst_214 = arith.constant 1.000000e+00 : f32
    %523 = vector.broadcast %cst_214 : f32 to vector<8x128xf32>
    %524 = arith.addf %523, %522 : vector<8x128xf32>
    %525 = arith.divf %523, %524 : vector<8x128xf32>
    %526 = vector.extract_strided_slice %525 {offsets = [0, 0], sizes = [8, 32], strides = [1, 1]} : vector<8x128xf32> to vector<8x32xf32>
    %527 = vector.extract_strided_slice %525 {offsets = [0, 32], sizes = [8, 32], strides = [1, 1]} : vector<8x128xf32> to vector<8x32xf32>
    %528 = vector.extract_strided_slice %525 {offsets = [0, 96], sizes = [8, 32], strides = [1, 1]} : vector<8x128xf32> to vector<8x32xf32>
    %529 = vector.extract_strided_slice %520 {offsets = [0, 64], sizes = [8, 32], strides = [1, 1]} : vector<8x128xf32> to vector<8x32xf32>
    %530 = math.tanh %529 : vector<8x32xf32>
    %531 = arith.mulf %527, %481 : vector<8x32xf32>
    %532 = arith.mulf %526, %530 : vector<8x32xf32>
    %533 = arith.addf %531, %532 : vector<8x32xf32>
    %534 = math.tanh %533 : vector<8x32xf32>
    %535 = arith.mulf %528, %534 : vector<8x32xf32>
    %c0_i32_215 = arith.constant 0 : i32
    %536 = arith.cmpi sge, %512, %c0_i32_215 : i32
    %c8_i32_216 = arith.constant 8 : i32
    %537 = arith.cmpi slt, %512, %c8_i32_216 : i32
    %538 = arith.andi %536, %537 : i1
    %539 = arith.select %538, %535, %480 : vector<8x32xf32>
    %540 = arith.select %538, %533, %481 : vector<8x32xf32>
    %c9_i32 = arith.constant 9 : i32
    %c0_217 = arith.constant 0 : index
    %c0_218 = arith.constant 0 : index
    %541 = vector.load %arg8[%c0_217, %c0_218] : memref<32x8xf32, #tpu.memory_space<vmem>>, vector<32x8xf32>
    %cst_219 = arith.constant dense<0.000000e+00> : vector<8x8xf32>
    %542 = tpu.matmul %539, %541, %cst_219 {dimension_numbers = #tpu.dot_dimension_numbers<[1], [0], [0], [1], [0, 0, 1, 1], [], []>} : vector<8x32xf32>, vector<32x8xf32>, vector<8x8xf32> -> vector<8x8xf32>
    %c0_220 = arith.constant 0 : index
    %c0_221 = arith.constant 0 : index
    %543 = vector.load %arg9[%c0_220, %c0_221] : memref<1x8xf32, #tpu.memory_space<vmem>>, vector<1x8xf32>
    %544 = vector.broadcast %543 : vector<1x8xf32> to vector<8x8xf32>
    %545 = arith.addf %542, %544 : vector<8x8xf32>
    %c0_222 = arith.constant 0 : index
    %c0_223 = arith.constant 0 : index
    %546 = vector.load %arg10[%c0_222, %c0_223] : memref<8x32xf32, #tpu.memory_space<vmem>>, vector<8x32xf32>
    %cst_224 = arith.constant dense<0.000000e+00> : vector<8x32xf32>
    %547 = tpu.matmul %545, %546, %cst_224 {dimension_numbers = #tpu.dot_dimension_numbers<[1], [0], [0], [1], [0, 0, 1, 1], [], []>} : vector<8x8xf32>, vector<8x32xf32>, vector<8x32xf32> -> vector<8x32xf32>
    %c0_225 = arith.constant 0 : index
    %c0_226 = arith.constant 0 : index
    %548 = vector.load %arg11[%c0_225, %c0_226] : memref<1x32xf32, #tpu.memory_space<vmem>>, vector<1x32xf32>
    %549 = vector.broadcast %548 : vector<1x32xf32> to vector<8x32xf32>
    %550 = arith.addf %547, %549 : vector<8x32xf32>
    %c0_227 = arith.constant 0 : index
    %c0_228 = arith.constant 0 : index
    %551 = vector.load %arg12[%c0_227, %c0_228] : memref<32x64xf32, #tpu.memory_space<vmem>>, vector<32x64xf32>
    %cst_229 = arith.constant dense<0.000000e+00> : vector<8x64xf32>
    %552 = tpu.matmul %550, %551, %cst_229 {dimension_numbers = #tpu.dot_dimension_numbers<[1], [0], [0], [1], [0, 0, 1, 1], [], []>} : vector<8x32xf32>, vector<32x64xf32>, vector<8x64xf32> -> vector<8x64xf32>
    %c0_230 = arith.constant 0 : index
    %c0_231 = arith.constant 0 : index
    %553 = vector.load %arg14[%c0_230, %c0_231] : memref<1x64xf32, #tpu.memory_space<vmem>>, vector<1x64xf32>
    %554 = vector.broadcast %553 : vector<1x64xf32> to vector<8x64xf32>
    %555 = arith.addf %552, %554 : vector<8x64xf32>
    %c0_232 = arith.constant 0 : index
    %c0_233 = arith.constant 0 : index
    %556 = vector.load %arg20[%c0_232, %c0_233] : memref<8x64xf32, #tpu.memory_space<vmem>>, vector<8x64xf32>
    tpu.vector_store %arg20[%c0_232, %c0_233], %555 {strides = array<i32>} : memref<8x64xf32, #tpu.memory_space<vmem>>, vector<8x64xf32>,
    %cst_234 = arith.constant 0.000000e+00 : f32
    %557 = vector.broadcast %cst_234 : f32 to vector<8x16xf32>
    %cst_235 = arith.constant 0.000000e+00 : f32
    %558 = vector.broadcast %cst_235 : f32 to vector<8x16xf32>
    %c0_i32_236 = arith.constant 0 : i32
    %c0_i32_237 = arith.constant 0 : i32
    %559 = arith.subi %c0_i32_236, %c0_i32_237 : i32
    %c0_238 = arith.constant 0 : index
    %c0_239 = arith.constant 0 : index
    %560 = vector.load %arg20[%c0_238, %c0_239] : memref<8x64xf32, #tpu.memory_space<vmem>>, vector<8x64xf32>
    %c0_240 = arith.constant 0 : index
    %c0_241 = arith.constant 0 : index
    %561 = vector.load %arg13[%c0_240, %c0_241] : memref<16x64xf32, #tpu.memory_space<vmem>>, vector<16x64xf32>
    %cst_242 = arith.constant dense<0.000000e+00> : vector<8x64xf32>
    %562 = tpu.matmul %557, %561, %cst_242 {dimension_numbers = #tpu.dot_dimension_numbers<[1], [0], [0], [1], [0, 0, 1, 1], [], []>} : vector<8x16xf32>, vector<16x64xf32>, vector<8x64xf32> -> vector<8x64xf32>
    %563 = arith.addf %560, %562 : vector<8x64xf32>
    %564 = arith.negf %563 : vector<8x64xf32>
    %565 = math.exp %564 : vector<8x64xf32>
    %cst_243 = arith.constant 1.000000e+00 : f32
    %566 = vector.broadcast %cst_243 : f32 to vector<8x64xf32>
    %567 = arith.addf %566, %565 : vector<8x64xf32>
    %568 = arith.divf %566, %567 : vector<8x64xf32>
    %569 = vector.extract_strided_slice %568 {offsets = [0, 0], sizes = [8, 16], strides = [1, 1]} : vector<8x64xf32> to vector<8x16xf32>
    %570 = vector.extract_strided_slice %568 {offsets = [0, 16], sizes = [8, 16], strides = [1, 1]} : vector<8x64xf32> to vector<8x16xf32>
    %571 = vector.extract_strided_slice %568 {offsets = [0, 48], sizes = [8, 16], strides = [1, 1]} : vector<8x64xf32> to vector<8x16xf32>
    %572 = vector.extract_strided_slice %563 {offsets = [0, 32], sizes = [8, 16], strides = [1, 1]} : vector<8x64xf32> to vector<8x16xf32>
    %573 = math.tanh %572 : vector<8x16xf32>
    %574 = arith.mulf %570, %557 : vector<8x16xf32>
    %575 = arith.mulf %569, %573 : vector<8x16xf32>
    %576 = arith.addf %574, %575 : vector<8x16xf32>
    %577 = math.tanh %576 : vector<8x16xf32>
    %578 = arith.mulf %571, %577 : vector<8x16xf32>
    %c0_i32_244 = arith.constant 0 : i32
    %579 = arith.cmpi sge, %559, %c0_i32_244 : i32
    %c8_i32_245 = arith.constant 8 : i32
    %580 = arith.cmpi slt, %559, %c8_i32_245 : i32
    %581 = arith.andi %579, %580 : i1
    %582 = arith.select %581, %578, %557 : vector<8x16xf32>
    %583 = arith.select %581, %576, %557 : vector<8x16xf32>
    %c1_i32_246 = arith.constant 1 : i32
    %584 = arith.subi %c0_i32_236, %c1_i32_246 : i32
    %c0_247 = arith.constant 0 : index
    %c0_248 = arith.constant 0 : index
    %585 = vector.load %arg15[%c0_247, %c0_248] : memref<16x64xf32, #tpu.memory_space<vmem>>, vector<16x64xf32>
    %cst_249 = arith.constant dense<0.000000e+00> : vector<8x64xf32>
    %586 = tpu.matmul %557, %585, %cst_249 {dimension_numbers = #tpu.dot_dimension_numbers<[1], [0], [0], [1], [0, 0, 1, 1], [], []>} : vector<8x16xf32>, vector<16x64xf32>, vector<8x64xf32> -> vector<8x64xf32>
    %c0_250 = arith.constant 0 : index
    %c0_251 = arith.constant 0 : index
    %587 = vector.load %arg17[%c0_250, %c0_251] : memref<1x64xf32, #tpu.memory_space<vmem>>, vector<1x64xf32>
    %588 = vector.broadcast %587 : vector<1x64xf32> to vector<8x64xf32>
    %589 = arith.addf %586, %588 : vector<8x64xf32>
    %c0_252 = arith.constant 0 : index
    %c0_253 = arith.constant 0 : index
    %590 = vector.load %arg16[%c0_252, %c0_253] : memref<16x64xf32, #tpu.memory_space<vmem>>, vector<16x64xf32>
    %cst_254 = arith.constant dense<0.000000e+00> : vector<8x64xf32>
    %591 = tpu.matmul %558, %590, %cst_254 {dimension_numbers = #tpu.dot_dimension_numbers<[1], [0], [0], [1], [0, 0, 1, 1], [], []>} : vector<8x16xf32>, vector<16x64xf32>, vector<8x64xf32> -> vector<8x64xf32>
    %592 = arith.addf %589, %591 : vector<8x64xf32>
    %593 = arith.negf %592 : vector<8x64xf32>
    %594 = math.exp %593 : vector<8x64xf32>
    %cst_255 = arith.constant 1.000000e+00 : f32
    %595 = vector.broadcast %cst_255 : f32 to vector<8x64xf32>
    %596 = arith.addf %595, %594 : vector<8x64xf32>
    %597 = arith.divf %595, %596 : vector<8x64xf32>
    %598 = vector.extract_strided_slice %597 {offsets = [0, 0], sizes = [8, 16], strides = [1, 1]} : vector<8x64xf32> to vector<8x16xf32>
    %599 = vector.extract_strided_slice %597 {offsets = [0, 16], sizes = [8, 16], strides = [1, 1]} : vector<8x64xf32> to vector<8x16xf32>
    %600 = vector.extract_strided_slice %597 {offsets = [0, 48], sizes = [8, 16], strides = [1, 1]} : vector<8x64xf32> to vector<8x16xf32>
    %601 = vector.extract_strided_slice %592 {offsets = [0, 32], sizes = [8, 16], strides = [1, 1]} : vector<8x64xf32> to vector<8x16xf32>
    %602 = math.tanh %601 : vector<8x16xf32>
    %603 = arith.mulf %599, %558 : vector<8x16xf32>
    %604 = arith.mulf %598, %602 : vector<8x16xf32>
    %605 = arith.addf %603, %604 : vector<8x16xf32>
    %606 = math.tanh %605 : vector<8x16xf32>
    %607 = arith.mulf %600, %606 : vector<8x16xf32>
    %c0_i32_256 = arith.constant 0 : i32
    %608 = arith.cmpi sge, %584, %c0_i32_256 : i32
    %c8_i32_257 = arith.constant 8 : i32
    %609 = arith.cmpi slt, %584, %c8_i32_257 : i32
    %610 = arith.andi %608, %609 : i1
    %611 = arith.select %610, %607, %558 : vector<8x16xf32>
    %612 = arith.select %610, %605, %558 : vector<8x16xf32>
    %c0_i32_258 = arith.constant 0 : i32
    %613 = arith.cmpi sge, %584, %c0_i32_258 : i32
    %614 = arith.extui %613 : i1 to i32
    %c0_i32_259 = arith.constant 0 : i32
    %615 = arith.cmpi ne, %614, %c0_i32_259 : i32
    scf.if %615 {
      %c0_i32_453 = arith.constant 0 : i32
      %1072 = arith.maxsi %584, %c0_i32_453 : i32
      %c8_i32_454 = arith.constant 8 : i32
      %1073 = arith.muli %1072, %c8_i32_454 : i32
      %1074 = tpu.assume_multiple %1073, 8 : i32
      %c0_455 = arith.constant 0 : index
      %1075 = arith.index_cast %1074 : i32 to index
      %c0_456 = arith.constant 0 : index
      %1076 = vector.load %arg18[%c0_455, %1075, %c0_456] : memref<1x64x16xf32, #tpu.memory_space<vmem>>, vector<1x8x16xf32>
      %1077 = vector.shape_cast %1076 : vector<1x8x16xf32> to vector<8x16xf32>
      %1078 = vector.shape_cast %611 : vector<8x16xf32> to vector<1x8x16xf32>
      tpu.vector_store %arg18[%c0_455, %1075, %c0_456], %1078 {strides = array<i32>} : memref<1x64x16xf32, #tpu.memory_space<vmem>>, vector<1x8x16xf32>,
    } else {
    }
    %c1_i32_260 = arith.constant 1 : i32
    %c0_i32_261 = arith.constant 0 : i32
    %616 = arith.subi %c1_i32_260, %c0_i32_261 : i32
    %c0_262 = arith.constant 0 : index
    %c0_263 = arith.constant 0 : index
    %617 = vector.load %arg20[%c0_262, %c0_263] : memref<8x64xf32, #tpu.memory_space<vmem>>, vector<8x64xf32>
    %c0_264 = arith.constant 0 : index
    %c0_265 = arith.constant 0 : index
    %618 = vector.load %arg13[%c0_264, %c0_265] : memref<16x64xf32, #tpu.memory_space<vmem>>, vector<16x64xf32>
    %cst_266 = arith.constant dense<0.000000e+00> : vector<8x64xf32>
    %619 = tpu.matmul %582, %618, %cst_266 {dimension_numbers = #tpu.dot_dimension_numbers<[1], [0], [0], [1], [0, 0, 1, 1], [], []>} : vector<8x16xf32>, vector<16x64xf32>, vector<8x64xf32> -> vector<8x64xf32>
    %620 = arith.addf %617, %619 : vector<8x64xf32>
    %621 = arith.negf %620 : vector<8x64xf32>
    %622 = math.exp %621 : vector<8x64xf32>
    %cst_267 = arith.constant 1.000000e+00 : f32
    %623 = vector.broadcast %cst_267 : f32 to vector<8x64xf32>
    %624 = arith.addf %623, %622 : vector<8x64xf32>
    %625 = arith.divf %623, %624 : vector<8x64xf32>
    %626 = vector.extract_strided_slice %625 {offsets = [0, 0], sizes = [8, 16], strides = [1, 1]} : vector<8x64xf32> to vector<8x16xf32>
    %627 = vector.extract_strided_slice %625 {offsets = [0, 16], sizes = [8, 16], strides = [1, 1]} : vector<8x64xf32> to vector<8x16xf32>
    %628 = vector.extract_strided_slice %625 {offsets = [0, 48], sizes = [8, 16], strides = [1, 1]} : vector<8x64xf32> to vector<8x16xf32>
    %629 = vector.extract_strided_slice %620 {offsets = [0, 32], sizes = [8, 16], strides = [1, 1]} : vector<8x64xf32> to vector<8x16xf32>
    %630 = math.tanh %629 : vector<8x16xf32>
    %631 = arith.mulf %627, %583 : vector<8x16xf32>
    %632 = arith.mulf %626, %630 : vector<8x16xf32>
    %633 = arith.addf %631, %632 : vector<8x16xf32>
    %634 = math.tanh %633 : vector<8x16xf32>
    %635 = arith.mulf %628, %634 : vector<8x16xf32>
    %c0_i32_268 = arith.constant 0 : i32
    %636 = arith.cmpi sge, %616, %c0_i32_268 : i32
    %c8_i32_269 = arith.constant 8 : i32
    %637 = arith.cmpi slt, %616, %c8_i32_269 : i32
    %638 = arith.andi %636, %637 : i1
    %639 = arith.select %638, %635, %582 : vector<8x16xf32>
    %640 = arith.select %638, %633, %583 : vector<8x16xf32>
    %c1_i32_270 = arith.constant 1 : i32
    %641 = arith.subi %c1_i32_260, %c1_i32_270 : i32
    %c0_271 = arith.constant 0 : index
    %c0_272 = arith.constant 0 : index
    %642 = vector.load %arg15[%c0_271, %c0_272] : memref<16x64xf32, #tpu.memory_space<vmem>>, vector<16x64xf32>
    %cst_273 = arith.constant dense<0.000000e+00> : vector<8x64xf32>
    %643 = tpu.matmul %582, %642, %cst_273 {dimension_numbers = #tpu.dot_dimension_numbers<[1], [0], [0], [1], [0, 0, 1, 1], [], []>} : vector<8x16xf32>, vector<16x64xf32>, vector<8x64xf32> -> vector<8x64xf32>
    %c0_274 = arith.constant 0 : index
    %c0_275 = arith.constant 0 : index
    %644 = vector.load %arg17[%c0_274, %c0_275] : memref<1x64xf32, #tpu.memory_space<vmem>>, vector<1x64xf32>
    %645 = vector.broadcast %644 : vector<1x64xf32> to vector<8x64xf32>
    %646 = arith.addf %643, %645 : vector<8x64xf32>
    %c0_276 = arith.constant 0 : index
    %c0_277 = arith.constant 0 : index
    %647 = vector.load %arg16[%c0_276, %c0_277] : memref<16x64xf32, #tpu.memory_space<vmem>>, vector<16x64xf32>
    %cst_278 = arith.constant dense<0.000000e+00> : vector<8x64xf32>
    %648 = tpu.matmul %611, %647, %cst_278 {dimension_numbers = #tpu.dot_dimension_numbers<[1], [0], [0], [1], [0, 0, 1, 1], [], []>} : vector<8x16xf32>, vector<16x64xf32>, vector<8x64xf32> -> vector<8x64xf32>
    %649 = arith.addf %646, %648 : vector<8x64xf32>
    %650 = arith.negf %649 : vector<8x64xf32>
    %651 = math.exp %650 : vector<8x64xf32>
    %cst_279 = arith.constant 1.000000e+00 : f32
    %652 = vector.broadcast %cst_279 : f32 to vector<8x64xf32>
    %653 = arith.addf %652, %651 : vector<8x64xf32>
    %654 = arith.divf %652, %653 : vector<8x64xf32>
    %655 = vector.extract_strided_slice %654 {offsets = [0, 0], sizes = [8, 16], strides = [1, 1]} : vector<8x64xf32> to vector<8x16xf32>
    %656 = vector.extract_strided_slice %654 {offsets = [0, 16], sizes = [8, 16], strides = [1, 1]} : vector<8x64xf32> to vector<8x16xf32>
    %657 = vector.extract_strided_slice %654 {offsets = [0, 48], sizes = [8, 16], strides = [1, 1]} : vector<8x64xf32> to vector<8x16xf32>
    %658 = vector.extract_strided_slice %649 {offsets = [0, 32], sizes = [8, 16], strides = [1, 1]} : vector<8x64xf32> to vector<8x16xf32>
    %659 = math.tanh %658 : vector<8x16xf32>
    %660 = arith.mulf %656, %612 : vector<8x16xf32>
    %661 = arith.mulf %655, %659 : vector<8x16xf32>
    %662 = arith.addf %660, %661 : vector<8x16xf32>
    %663 = math.tanh %662 : vector<8x16xf32>
    %664 = arith.mulf %657, %663 : vector<8x16xf32>
    %c0_i32_280 = arith.constant 0 : i32
    %665 = arith.cmpi sge, %641, %c0_i32_280 : i32
    %c8_i32_281 = arith.constant 8 : i32
    %666 = arith.cmpi slt, %641, %c8_i32_281 : i32
    %667 = arith.andi %665, %666 : i1
    %668 = arith.select %667, %664, %611 : vector<8x16xf32>
    %669 = arith.select %667, %662, %612 : vector<8x16xf32>
    %c0_i32_282 = arith.constant 0 : i32
    %670 = arith.cmpi sge, %641, %c0_i32_282 : i32
    %671 = arith.extui %670 : i1 to i32
    %c0_i32_283 = arith.constant 0 : i32
    %672 = arith.cmpi ne, %671, %c0_i32_283 : i32
    scf.if %672 {
      %c0_i32_453 = arith.constant 0 : i32
      %1072 = arith.maxsi %641, %c0_i32_453 : i32
      %c8_i32_454 = arith.constant 8 : i32
      %1073 = arith.muli %1072, %c8_i32_454 : i32
      %1074 = tpu.assume_multiple %1073, 8 : i32
      %c0_455 = arith.constant 0 : index
      %1075 = arith.index_cast %1074 : i32 to index
      %c0_456 = arith.constant 0 : index
      %1076 = vector.load %arg18[%c0_455, %1075, %c0_456] : memref<1x64x16xf32, #tpu.memory_space<vmem>>, vector<1x8x16xf32>
      %1077 = vector.shape_cast %1076 : vector<1x8x16xf32> to vector<8x16xf32>
      %1078 = vector.shape_cast %668 : vector<8x16xf32> to vector<1x8x16xf32>
      tpu.vector_store %arg18[%c0_455, %1075, %c0_456], %1078 {strides = array<i32>} : memref<1x64x16xf32, #tpu.memory_space<vmem>>, vector<1x8x16xf32>,
    } else {
    }
    %c2_i32_284 = arith.constant 2 : i32
    %c0_i32_285 = arith.constant 0 : i32
    %673 = arith.subi %c2_i32_284, %c0_i32_285 : i32
    %c0_286 = arith.constant 0 : index
    %c0_287 = arith.constant 0 : index
    %674 = vector.load %arg20[%c0_286, %c0_287] : memref<8x64xf32, #tpu.memory_space<vmem>>, vector<8x64xf32>
    %c0_288 = arith.constant 0 : index
    %c0_289 = arith.constant 0 : index
    %675 = vector.load %arg13[%c0_288, %c0_289] : memref<16x64xf32, #tpu.memory_space<vmem>>, vector<16x64xf32>
    %cst_290 = arith.constant dense<0.000000e+00> : vector<8x64xf32>
    %676 = tpu.matmul %639, %675, %cst_290 {dimension_numbers = #tpu.dot_dimension_numbers<[1], [0], [0], [1], [0, 0, 1, 1], [], []>} : vector<8x16xf32>, vector<16x64xf32>, vector<8x64xf32> -> vector<8x64xf32>
    %677 = arith.addf %674, %676 : vector<8x64xf32>
    %678 = arith.negf %677 : vector<8x64xf32>
    %679 = math.exp %678 : vector<8x64xf32>
    %cst_291 = arith.constant 1.000000e+00 : f32
    %680 = vector.broadcast %cst_291 : f32 to vector<8x64xf32>
    %681 = arith.addf %680, %679 : vector<8x64xf32>
    %682 = arith.divf %680, %681 : vector<8x64xf32>
    %683 = vector.extract_strided_slice %682 {offsets = [0, 0], sizes = [8, 16], strides = [1, 1]} : vector<8x64xf32> to vector<8x16xf32>
    %684 = vector.extract_strided_slice %682 {offsets = [0, 16], sizes = [8, 16], strides = [1, 1]} : vector<8x64xf32> to vector<8x16xf32>
    %685 = vector.extract_strided_slice %682 {offsets = [0, 48], sizes = [8, 16], strides = [1, 1]} : vector<8x64xf32> to vector<8x16xf32>
    %686 = vector.extract_strided_slice %677 {offsets = [0, 32], sizes = [8, 16], strides = [1, 1]} : vector<8x64xf32> to vector<8x16xf32>
    %687 = math.tanh %686 : vector<8x16xf32>
    %688 = arith.mulf %684, %640 : vector<8x16xf32>
    %689 = arith.mulf %683, %687 : vector<8x16xf32>
    %690 = arith.addf %688, %689 : vector<8x16xf32>
    %691 = math.tanh %690 : vector<8x16xf32>
    %692 = arith.mulf %685, %691 : vector<8x16xf32>
    %c0_i32_292 = arith.constant 0 : i32
    %693 = arith.cmpi sge, %673, %c0_i32_292 : i32
    %c8_i32_293 = arith.constant 8 : i32
    %694 = arith.cmpi slt, %673, %c8_i32_293 : i32
    %695 = arith.andi %693, %694 : i1
    %696 = arith.select %695, %692, %639 : vector<8x16xf32>
    %697 = arith.select %695, %690, %640 : vector<8x16xf32>
    %c1_i32_294 = arith.constant 1 : i32
    %698 = arith.subi %c2_i32_284, %c1_i32_294 : i32
    %c0_295 = arith.constant 0 : index
    %c0_296 = arith.constant 0 : index
    %699 = vector.load %arg15[%c0_295, %c0_296] : memref<16x64xf32, #tpu.memory_space<vmem>>, vector<16x64xf32>
    %cst_297 = arith.constant dense<0.000000e+00> : vector<8x64xf32>
    %700 = tpu.matmul %639, %699, %cst_297 {dimension_numbers = #tpu.dot_dimension_numbers<[1], [0], [0], [1], [0, 0, 1, 1], [], []>} : vector<8x16xf32>, vector<16x64xf32>, vector<8x64xf32> -> vector<8x64xf32>
    %c0_298 = arith.constant 0 : index
    %c0_299 = arith.constant 0 : index
    %701 = vector.load %arg17[%c0_298, %c0_299] : memref<1x64xf32, #tpu.memory_space<vmem>>, vector<1x64xf32>
    %702 = vector.broadcast %701 : vector<1x64xf32> to vector<8x64xf32>
    %703 = arith.addf %700, %702 : vector<8x64xf32>
    %c0_300 = arith.constant 0 : index
    %c0_301 = arith.constant 0 : index
    %704 = vector.load %arg16[%c0_300, %c0_301] : memref<16x64xf32, #tpu.memory_space<vmem>>, vector<16x64xf32>
    %cst_302 = arith.constant dense<0.000000e+00> : vector<8x64xf32>
    %705 = tpu.matmul %668, %704, %cst_302 {dimension_numbers = #tpu.dot_dimension_numbers<[1], [0], [0], [1], [0, 0, 1, 1], [], []>} : vector<8x16xf32>, vector<16x64xf32>, vector<8x64xf32> -> vector<8x64xf32>
    %706 = arith.addf %703, %705 : vector<8x64xf32>
    %707 = arith.negf %706 : vector<8x64xf32>
    %708 = math.exp %707 : vector<8x64xf32>
    %cst_303 = arith.constant 1.000000e+00 : f32
    %709 = vector.broadcast %cst_303 : f32 to vector<8x64xf32>
    %710 = arith.addf %709, %708 : vector<8x64xf32>
    %711 = arith.divf %709, %710 : vector<8x64xf32>
    %712 = vector.extract_strided_slice %711 {offsets = [0, 0], sizes = [8, 16], strides = [1, 1]} : vector<8x64xf32> to vector<8x16xf32>
    %713 = vector.extract_strided_slice %711 {offsets = [0, 16], sizes = [8, 16], strides = [1, 1]} : vector<8x64xf32> to vector<8x16xf32>
    %714 = vector.extract_strided_slice %711 {offsets = [0, 48], sizes = [8, 16], strides = [1, 1]} : vector<8x64xf32> to vector<8x16xf32>
    %715 = vector.extract_strided_slice %706 {offsets = [0, 32], sizes = [8, 16], strides = [1, 1]} : vector<8x64xf32> to vector<8x16xf32>
    %716 = math.tanh %715 : vector<8x16xf32>
    %717 = arith.mulf %713, %669 : vector<8x16xf32>
    %718 = arith.mulf %712, %716 : vector<8x16xf32>
    %719 = arith.addf %717, %718 : vector<8x16xf32>
    %720 = math.tanh %719 : vector<8x16xf32>
    %721 = arith.mulf %714, %720 : vector<8x16xf32>
    %c0_i32_304 = arith.constant 0 : i32
    %722 = arith.cmpi sge, %698, %c0_i32_304 : i32
    %c8_i32_305 = arith.constant 8 : i32
    %723 = arith.cmpi slt, %698, %c8_i32_305 : i32
    %724 = arith.andi %722, %723 : i1
    %725 = arith.select %724, %721, %668 : vector<8x16xf32>
    %726 = arith.select %724, %719, %669 : vector<8x16xf32>
    %c0_i32_306 = arith.constant 0 : i32
    %727 = arith.cmpi sge, %698, %c0_i32_306 : i32
    %728 = arith.extui %727 : i1 to i32
    %c0_i32_307 = arith.constant 0 : i32
    %729 = arith.cmpi ne, %728, %c0_i32_307 : i32
    scf.if %729 {
      %c0_i32_453 = arith.constant 0 : i32
      %1072 = arith.maxsi %698, %c0_i32_453 : i32
      %c8_i32_454 = arith.constant 8 : i32
      %1073 = arith.muli %1072, %c8_i32_454 : i32
      %1074 = tpu.assume_multiple %1073, 8 : i32
      %c0_455 = arith.constant 0 : index
      %1075 = arith.index_cast %1074 : i32 to index
      %c0_456 = arith.constant 0 : index
      %1076 = vector.load %arg18[%c0_455, %1075, %c0_456] : memref<1x64x16xf32, #tpu.memory_space<vmem>>, vector<1x8x16xf32>
      %1077 = vector.shape_cast %1076 : vector<1x8x16xf32> to vector<8x16xf32>
      %1078 = vector.shape_cast %725 : vector<8x16xf32> to vector<1x8x16xf32>
      tpu.vector_store %arg18[%c0_455, %1075, %c0_456], %1078 {strides = array<i32>} : memref<1x64x16xf32, #tpu.memory_space<vmem>>, vector<1x8x16xf32>,
    } else {
    }
    %c3_i32_308 = arith.constant 3 : i32
    %c0_i32_309 = arith.constant 0 : i32
    %730 = arith.subi %c3_i32_308, %c0_i32_309 : i32
    %c0_310 = arith.constant 0 : index
    %c0_311 = arith.constant 0 : index
    %731 = vector.load %arg20[%c0_310, %c0_311] : memref<8x64xf32, #tpu.memory_space<vmem>>, vector<8x64xf32>
    %c0_312 = arith.constant 0 : index
    %c0_313 = arith.constant 0 : index
    %732 = vector.load %arg13[%c0_312, %c0_313] : memref<16x64xf32, #tpu.memory_space<vmem>>, vector<16x64xf32>
    %cst_314 = arith.constant dense<0.000000e+00> : vector<8x64xf32>
    %733 = tpu.matmul %696, %732, %cst_314 {dimension_numbers = #tpu.dot_dimension_numbers<[1], [0], [0], [1], [0, 0, 1, 1], [], []>} : vector<8x16xf32>, vector<16x64xf32>, vector<8x64xf32> -> vector<8x64xf32>
    %734 = arith.addf %731, %733 : vector<8x64xf32>
    %735 = arith.negf %734 : vector<8x64xf32>
    %736 = math.exp %735 : vector<8x64xf32>
    %cst_315 = arith.constant 1.000000e+00 : f32
    %737 = vector.broadcast %cst_315 : f32 to vector<8x64xf32>
    %738 = arith.addf %737, %736 : vector<8x64xf32>
    %739 = arith.divf %737, %738 : vector<8x64xf32>
    %740 = vector.extract_strided_slice %739 {offsets = [0, 0], sizes = [8, 16], strides = [1, 1]} : vector<8x64xf32> to vector<8x16xf32>
    %741 = vector.extract_strided_slice %739 {offsets = [0, 16], sizes = [8, 16], strides = [1, 1]} : vector<8x64xf32> to vector<8x16xf32>
    %742 = vector.extract_strided_slice %739 {offsets = [0, 48], sizes = [8, 16], strides = [1, 1]} : vector<8x64xf32> to vector<8x16xf32>
    %743 = vector.extract_strided_slice %734 {offsets = [0, 32], sizes = [8, 16], strides = [1, 1]} : vector<8x64xf32> to vector<8x16xf32>
    %744 = math.tanh %743 : vector<8x16xf32>
    %745 = arith.mulf %741, %697 : vector<8x16xf32>
    %746 = arith.mulf %740, %744 : vector<8x16xf32>
    %747 = arith.addf %745, %746 : vector<8x16xf32>
    %748 = math.tanh %747 : vector<8x16xf32>
    %749 = arith.mulf %742, %748 : vector<8x16xf32>
    %c0_i32_316 = arith.constant 0 : i32
    %750 = arith.cmpi sge, %730, %c0_i32_316 : i32
    %c8_i32_317 = arith.constant 8 : i32
    %751 = arith.cmpi slt, %730, %c8_i32_317 : i32
    %752 = arith.andi %750, %751 : i1
    %753 = arith.select %752, %749, %696 : vector<8x16xf32>
    %754 = arith.select %752, %747, %697 : vector<8x16xf32>
    %c1_i32_318 = arith.constant 1 : i32
    %755 = arith.subi %c3_i32_308, %c1_i32_318 : i32
    %c0_319 = arith.constant 0 : index
    %c0_320 = arith.constant 0 : index
    %756 = vector.load %arg15[%c0_319, %c0_320] : memref<16x64xf32, #tpu.memory_space<vmem>>, vector<16x64xf32>
    %cst_321 = arith.constant dense<0.000000e+00> : vector<8x64xf32>
    %757 = tpu.matmul %696, %756, %cst_321 {dimension_numbers = #tpu.dot_dimension_numbers<[1], [0], [0], [1], [0, 0, 1, 1], [], []>} : vector<8x16xf32>, vector<16x64xf32>, vector<8x64xf32> -> vector<8x64xf32>
    %c0_322 = arith.constant 0 : index
    %c0_323 = arith.constant 0 : index
    %758 = vector.load %arg17[%c0_322, %c0_323] : memref<1x64xf32, #tpu.memory_space<vmem>>, vector<1x64xf32>
    %759 = vector.broadcast %758 : vector<1x64xf32> to vector<8x64xf32>
    %760 = arith.addf %757, %759 : vector<8x64xf32>
    %c0_324 = arith.constant 0 : index
    %c0_325 = arith.constant 0 : index
    %761 = vector.load %arg16[%c0_324, %c0_325] : memref<16x64xf32, #tpu.memory_space<vmem>>, vector<16x64xf32>
    %cst_326 = arith.constant dense<0.000000e+00> : vector<8x64xf32>
    %762 = tpu.matmul %725, %761, %cst_326 {dimension_numbers = #tpu.dot_dimension_numbers<[1], [0], [0], [1], [0, 0, 1, 1], [], []>} : vector<8x16xf32>, vector<16x64xf32>, vector<8x64xf32> -> vector<8x64xf32>
    %763 = arith.addf %760, %762 : vector<8x64xf32>
    %764 = arith.negf %763 : vector<8x64xf32>
    %765 = math.exp %764 : vector<8x64xf32>
    %cst_327 = arith.constant 1.000000e+00 : f32
    %766 = vector.broadcast %cst_327 : f32 to vector<8x64xf32>
    %767 = arith.addf %766, %765 : vector<8x64xf32>
    %768 = arith.divf %766, %767 : vector<8x64xf32>
    %769 = vector.extract_strided_slice %768 {offsets = [0, 0], sizes = [8, 16], strides = [1, 1]} : vector<8x64xf32> to vector<8x16xf32>
    %770 = vector.extract_strided_slice %768 {offsets = [0, 16], sizes = [8, 16], strides = [1, 1]} : vector<8x64xf32> to vector<8x16xf32>
    %771 = vector.extract_strided_slice %768 {offsets = [0, 48], sizes = [8, 16], strides = [1, 1]} : vector<8x64xf32> to vector<8x16xf32>
    %772 = vector.extract_strided_slice %763 {offsets = [0, 32], sizes = [8, 16], strides = [1, 1]} : vector<8x64xf32> to vector<8x16xf32>
    %773 = math.tanh %772 : vector<8x16xf32>
    %774 = arith.mulf %770, %726 : vector<8x16xf32>
    %775 = arith.mulf %769, %773 : vector<8x16xf32>
    %776 = arith.addf %774, %775 : vector<8x16xf32>
    %777 = math.tanh %776 : vector<8x16xf32>
    %778 = arith.mulf %771, %777 : vector<8x16xf32>
    %c0_i32_328 = arith.constant 0 : i32
    %779 = arith.cmpi sge, %755, %c0_i32_328 : i32
    %c8_i32_329 = arith.constant 8 : i32
    %780 = arith.cmpi slt, %755, %c8_i32_329 : i32
    %781 = arith.andi %779, %780 : i1
    %782 = arith.select %781, %778, %725 : vector<8x16xf32>
    %783 = arith.select %781, %776, %726 : vector<8x16xf32>
    %c0_i32_330 = arith.constant 0 : i32
    %784 = arith.cmpi sge, %755, %c0_i32_330 : i32
    %785 = arith.extui %784 : i1 to i32
    %c0_i32_331 = arith.constant 0 : i32
    %786 = arith.cmpi ne, %785, %c0_i32_331 : i32
    scf.if %786 {
      %c0_i32_453 = arith.constant 0 : i32
      %1072 = arith.maxsi %755, %c0_i32_453 : i32
      %c8_i32_454 = arith.constant 8 : i32
      %1073 = arith.muli %1072, %c8_i32_454 : i32
      %1074 = tpu.assume_multiple %1073, 8 : i32
      %c0_455 = arith.constant 0 : index
      %1075 = arith.index_cast %1074 : i32 to index
      %c0_456 = arith.constant 0 : index
      %1076 = vector.load %arg18[%c0_455, %1075, %c0_456] : memref<1x64x16xf32, #tpu.memory_space<vmem>>, vector<1x8x16xf32>
      %1077 = vector.shape_cast %1076 : vector<1x8x16xf32> to vector<8x16xf32>
      %1078 = vector.shape_cast %782 : vector<8x16xf32> to vector<1x8x16xf32>
      tpu.vector_store %arg18[%c0_455, %1075, %c0_456], %1078 {strides = array<i32>} : memref<1x64x16xf32, #tpu.memory_space<vmem>>, vector<1x8x16xf32>,
    } else {
    }
    %c4_i32_332 = arith.constant 4 : i32
    %c0_i32_333 = arith.constant 0 : i32
    %787 = arith.subi %c4_i32_332, %c0_i32_333 : i32
    %c0_334 = arith.constant 0 : index
    %c0_335 = arith.constant 0 : index
    %788 = vector.load %arg20[%c0_334, %c0_335] : memref<8x64xf32, #tpu.memory_space<vmem>>, vector<8x64xf32>
    %c0_336 = arith.constant 0 : index
    %c0_337 = arith.constant 0 : index
    %789 = vector.load %arg13[%c0_336, %c0_337] : memref<16x64xf32, #tpu.memory_space<vmem>>, vector<16x64xf32>
    %cst_338 = arith.constant dense<0.000000e+00> : vector<8x64xf32>
    %790 = tpu.matmul %753, %789, %cst_338 {dimension_numbers = #tpu.dot_dimension_numbers<[1], [0], [0], [1], [0, 0, 1, 1], [], []>} : vector<8x16xf32>, vector<16x64xf32>, vector<8x64xf32> -> vector<8x64xf32>
    %791 = arith.addf %788, %790 : vector<8x64xf32>
    %792 = arith.negf %791 : vector<8x64xf32>
    %793 = math.exp %792 : vector<8x64xf32>
    %cst_339 = arith.constant 1.000000e+00 : f32
    %794 = vector.broadcast %cst_339 : f32 to vector<8x64xf32>
    %795 = arith.addf %794, %793 : vector<8x64xf32>
    %796 = arith.divf %794, %795 : vector<8x64xf32>
    %797 = vector.extract_strided_slice %796 {offsets = [0, 0], sizes = [8, 16], strides = [1, 1]} : vector<8x64xf32> to vector<8x16xf32>
    %798 = vector.extract_strided_slice %796 {offsets = [0, 16], sizes = [8, 16], strides = [1, 1]} : vector<8x64xf32> to vector<8x16xf32>
    %799 = vector.extract_strided_slice %796 {offsets = [0, 48], sizes = [8, 16], strides = [1, 1]} : vector<8x64xf32> to vector<8x16xf32>
    %800 = vector.extract_strided_slice %791 {offsets = [0, 32], sizes = [8, 16], strides = [1, 1]} : vector<8x64xf32> to vector<8x16xf32>
    %801 = math.tanh %800 : vector<8x16xf32>
    %802 = arith.mulf %798, %754 : vector<8x16xf32>
    %803 = arith.mulf %797, %801 : vector<8x16xf32>
    %804 = arith.addf %802, %803 : vector<8x16xf32>
    %805 = math.tanh %804 : vector<8x16xf32>
    %806 = arith.mulf %799, %805 : vector<8x16xf32>
    %c0_i32_340 = arith.constant 0 : i32
    %807 = arith.cmpi sge, %787, %c0_i32_340 : i32
    %c8_i32_341 = arith.constant 8 : i32
    %808 = arith.cmpi slt, %787, %c8_i32_341 : i32
    %809 = arith.andi %807, %808 : i1
    %810 = arith.select %809, %806, %753 : vector<8x16xf32>
    %811 = arith.select %809, %804, %754 : vector<8x16xf32>
    %c1_i32_342 = arith.constant 1 : i32
    %812 = arith.subi %c4_i32_332, %c1_i32_342 : i32
    %c0_343 = arith.constant 0 : index
    %c0_344 = arith.constant 0 : index
    %813 = vector.load %arg15[%c0_343, %c0_344] : memref<16x64xf32, #tpu.memory_space<vmem>>, vector<16x64xf32>
    %cst_345 = arith.constant dense<0.000000e+00> : vector<8x64xf32>
    %814 = tpu.matmul %753, %813, %cst_345 {dimension_numbers = #tpu.dot_dimension_numbers<[1], [0], [0], [1], [0, 0, 1, 1], [], []>} : vector<8x16xf32>, vector<16x64xf32>, vector<8x64xf32> -> vector<8x64xf32>
    %c0_346 = arith.constant 0 : index
    %c0_347 = arith.constant 0 : index
    %815 = vector.load %arg17[%c0_346, %c0_347] : memref<1x64xf32, #tpu.memory_space<vmem>>, vector<1x64xf32>
    %816 = vector.broadcast %815 : vector<1x64xf32> to vector<8x64xf32>
    %817 = arith.addf %814, %816 : vector<8x64xf32>
    %c0_348 = arith.constant 0 : index
    %c0_349 = arith.constant 0 : index
    %818 = vector.load %arg16[%c0_348, %c0_349] : memref<16x64xf32, #tpu.memory_space<vmem>>, vector<16x64xf32>
    %cst_350 = arith.constant dense<0.000000e+00> : vector<8x64xf32>
    %819 = tpu.matmul %782, %818, %cst_350 {dimension_numbers = #tpu.dot_dimension_numbers<[1], [0], [0], [1], [0, 0, 1, 1], [], []>} : vector<8x16xf32>, vector<16x64xf32>, vector<8x64xf32> -> vector<8x64xf32>
    %820 = arith.addf %817, %819 : vector<8x64xf32>
    %821 = arith.negf %820 : vector<8x64xf32>
    %822 = math.exp %821 : vector<8x64xf32>
    %cst_351 = arith.constant 1.000000e+00 : f32
    %823 = vector.broadcast %cst_351 : f32 to vector<8x64xf32>
    %824 = arith.addf %823, %822 : vector<8x64xf32>
    %825 = arith.divf %823, %824 : vector<8x64xf32>
    %826 = vector.extract_strided_slice %825 {offsets = [0, 0], sizes = [8, 16], strides = [1, 1]} : vector<8x64xf32> to vector<8x16xf32>
    %827 = vector.extract_strided_slice %825 {offsets = [0, 16], sizes = [8, 16], strides = [1, 1]} : vector<8x64xf32> to vector<8x16xf32>
    %828 = vector.extract_strided_slice %825 {offsets = [0, 48], sizes = [8, 16], strides = [1, 1]} : vector<8x64xf32> to vector<8x16xf32>
    %829 = vector.extract_strided_slice %820 {offsets = [0, 32], sizes = [8, 16], strides = [1, 1]} : vector<8x64xf32> to vector<8x16xf32>
    %830 = math.tanh %829 : vector<8x16xf32>
    %831 = arith.mulf %827, %783 : vector<8x16xf32>
    %832 = arith.mulf %826, %830 : vector<8x16xf32>
    %833 = arith.addf %831, %832 : vector<8x16xf32>
    %834 = math.tanh %833 : vector<8x16xf32>
    %835 = arith.mulf %828, %834 : vector<8x16xf32>
    %c0_i32_352 = arith.constant 0 : i32
    %836 = arith.cmpi sge, %812, %c0_i32_352 : i32
    %c8_i32_353 = arith.constant 8 : i32
    %837 = arith.cmpi slt, %812, %c8_i32_353 : i32
    %838 = arith.andi %836, %837 : i1
    %839 = arith.select %838, %835, %782 : vector<8x16xf32>
    %840 = arith.select %838, %833, %783 : vector<8x16xf32>
    %c0_i32_354 = arith.constant 0 : i32
    %841 = arith.cmpi sge, %812, %c0_i32_354 : i32
    %842 = arith.extui %841 : i1 to i32
    %c0_i32_355 = arith.constant 0 : i32
    %843 = arith.cmpi ne, %842, %c0_i32_355 : i32
    scf.if %843 {
      %c0_i32_453 = arith.constant 0 : i32
      %1072 = arith.maxsi %812, %c0_i32_453 : i32
      %c8_i32_454 = arith.constant 8 : i32
      %1073 = arith.muli %1072, %c8_i32_454 : i32
      %1074 = tpu.assume_multiple %1073, 8 : i32
      %c0_455 = arith.constant 0 : index
      %1075 = arith.index_cast %1074 : i32 to index
      %c0_456 = arith.constant 0 : index
      %1076 = vector.load %arg18[%c0_455, %1075, %c0_456] : memref<1x64x16xf32, #tpu.memory_space<vmem>>, vector<1x8x16xf32>
      %1077 = vector.shape_cast %1076 : vector<1x8x16xf32> to vector<8x16xf32>
      %1078 = vector.shape_cast %839 : vector<8x16xf32> to vector<1x8x16xf32>
      tpu.vector_store %arg18[%c0_455, %1075, %c0_456], %1078 {strides = array<i32>} : memref<1x64x16xf32, #tpu.memory_space<vmem>>, vector<1x8x16xf32>,
    } else {
    }
    %c5_i32_356 = arith.constant 5 : i32
    %c0_i32_357 = arith.constant 0 : i32
    %844 = arith.subi %c5_i32_356, %c0_i32_357 : i32
    %c0_358 = arith.constant 0 : index
    %c0_359 = arith.constant 0 : index
    %845 = vector.load %arg20[%c0_358, %c0_359] : memref<8x64xf32, #tpu.memory_space<vmem>>, vector<8x64xf32>
    %c0_360 = arith.constant 0 : index
    %c0_361 = arith.constant 0 : index
    %846 = vector.load %arg13[%c0_360, %c0_361] : memref<16x64xf32, #tpu.memory_space<vmem>>, vector<16x64xf32>
    %cst_362 = arith.constant dense<0.000000e+00> : vector<8x64xf32>
    %847 = tpu.matmul %810, %846, %cst_362 {dimension_numbers = #tpu.dot_dimension_numbers<[1], [0], [0], [1], [0, 0, 1, 1], [], []>} : vector<8x16xf32>, vector<16x64xf32>, vector<8x64xf32> -> vector<8x64xf32>
    %848 = arith.addf %845, %847 : vector<8x64xf32>
    %849 = arith.negf %848 : vector<8x64xf32>
    %850 = math.exp %849 : vector<8x64xf32>
    %cst_363 = arith.constant 1.000000e+00 : f32
    %851 = vector.broadcast %cst_363 : f32 to vector<8x64xf32>
    %852 = arith.addf %851, %850 : vector<8x64xf32>
    %853 = arith.divf %851, %852 : vector<8x64xf32>
    %854 = vector.extract_strided_slice %853 {offsets = [0, 0], sizes = [8, 16], strides = [1, 1]} : vector<8x64xf32> to vector<8x16xf32>
    %855 = vector.extract_strided_slice %853 {offsets = [0, 16], sizes = [8, 16], strides = [1, 1]} : vector<8x64xf32> to vector<8x16xf32>
    %856 = vector.extract_strided_slice %853 {offsets = [0, 48], sizes = [8, 16], strides = [1, 1]} : vector<8x64xf32> to vector<8x16xf32>
    %857 = vector.extract_strided_slice %848 {offsets = [0, 32], sizes = [8, 16], strides = [1, 1]} : vector<8x64xf32> to vector<8x16xf32>
    %858 = math.tanh %857 : vector<8x16xf32>
    %859 = arith.mulf %855, %811 : vector<8x16xf32>
    %860 = arith.mulf %854, %858 : vector<8x16xf32>
    %861 = arith.addf %859, %860 : vector<8x16xf32>
    %862 = math.tanh %861 : vector<8x16xf32>
    %863 = arith.mulf %856, %862 : vector<8x16xf32>
    %c0_i32_364 = arith.constant 0 : i32
    %864 = arith.cmpi sge, %844, %c0_i32_364 : i32
    %c8_i32_365 = arith.constant 8 : i32
    %865 = arith.cmpi slt, %844, %c8_i32_365 : i32
    %866 = arith.andi %864, %865 : i1
    %867 = arith.select %866, %863, %810 : vector<8x16xf32>
    %868 = arith.select %866, %861, %811 : vector<8x16xf32>
    %c1_i32_366 = arith.constant 1 : i32
    %869 = arith.subi %c5_i32_356, %c1_i32_366 : i32
    %c0_367 = arith.constant 0 : index
    %c0_368 = arith.constant 0 : index
    %870 = vector.load %arg15[%c0_367, %c0_368] : memref<16x64xf32, #tpu.memory_space<vmem>>, vector<16x64xf32>
    %cst_369 = arith.constant dense<0.000000e+00> : vector<8x64xf32>
    %871 = tpu.matmul %810, %870, %cst_369 {dimension_numbers = #tpu.dot_dimension_numbers<[1], [0], [0], [1], [0, 0, 1, 1], [], []>} : vector<8x16xf32>, vector<16x64xf32>, vector<8x64xf32> -> vector<8x64xf32>
    %c0_370 = arith.constant 0 : index
    %c0_371 = arith.constant 0 : index
    %872 = vector.load %arg17[%c0_370, %c0_371] : memref<1x64xf32, #tpu.memory_space<vmem>>, vector<1x64xf32>
    %873 = vector.broadcast %872 : vector<1x64xf32> to vector<8x64xf32>
    %874 = arith.addf %871, %873 : vector<8x64xf32>
    %c0_372 = arith.constant 0 : index
    %c0_373 = arith.constant 0 : index
    %875 = vector.load %arg16[%c0_372, %c0_373] : memref<16x64xf32, #tpu.memory_space<vmem>>, vector<16x64xf32>
    %cst_374 = arith.constant dense<0.000000e+00> : vector<8x64xf32>
    %876 = tpu.matmul %839, %875, %cst_374 {dimension_numbers = #tpu.dot_dimension_numbers<[1], [0], [0], [1], [0, 0, 1, 1], [], []>} : vector<8x16xf32>, vector<16x64xf32>, vector<8x64xf32> -> vector<8x64xf32>
    %877 = arith.addf %874, %876 : vector<8x64xf32>
    %878 = arith.negf %877 : vector<8x64xf32>
    %879 = math.exp %878 : vector<8x64xf32>
    %cst_375 = arith.constant 1.000000e+00 : f32
    %880 = vector.broadcast %cst_375 : f32 to vector<8x64xf32>
    %881 = arith.addf %880, %879 : vector<8x64xf32>
    %882 = arith.divf %880, %881 : vector<8x64xf32>
    %883 = vector.extract_strided_slice %882 {offsets = [0, 0], sizes = [8, 16], strides = [1, 1]} : vector<8x64xf32> to vector<8x16xf32>
    %884 = vector.extract_strided_slice %882 {offsets = [0, 16], sizes = [8, 16], strides = [1, 1]} : vector<8x64xf32> to vector<8x16xf32>
    %885 = vector.extract_strided_slice %882 {offsets = [0, 48], sizes = [8, 16], strides = [1, 1]} : vector<8x64xf32> to vector<8x16xf32>
    %886 = vector.extract_strided_slice %877 {offsets = [0, 32], sizes = [8, 16], strides = [1, 1]} : vector<8x64xf32> to vector<8x16xf32>
    %887 = math.tanh %886 : vector<8x16xf32>
    %888 = arith.mulf %884, %840 : vector<8x16xf32>
    %889 = arith.mulf %883, %887 : vector<8x16xf32>
    %890 = arith.addf %888, %889 : vector<8x16xf32>
    %891 = math.tanh %890 : vector<8x16xf32>
    %892 = arith.mulf %885, %891 : vector<8x16xf32>
    %c0_i32_376 = arith.constant 0 : i32
    %893 = arith.cmpi sge, %869, %c0_i32_376 : i32
    %c8_i32_377 = arith.constant 8 : i32
    %894 = arith.cmpi slt, %869, %c8_i32_377 : i32
    %895 = arith.andi %893, %894 : i1
    %896 = arith.select %895, %892, %839 : vector<8x16xf32>
    %897 = arith.select %895, %890, %840 : vector<8x16xf32>
    %c0_i32_378 = arith.constant 0 : i32
    %898 = arith.cmpi sge, %869, %c0_i32_378 : i32
    %899 = arith.extui %898 : i1 to i32
    %c0_i32_379 = arith.constant 0 : i32
    %900 = arith.cmpi ne, %899, %c0_i32_379 : i32
    scf.if %900 {
      %c0_i32_453 = arith.constant 0 : i32
      %1072 = arith.maxsi %869, %c0_i32_453 : i32
      %c8_i32_454 = arith.constant 8 : i32
      %1073 = arith.muli %1072, %c8_i32_454 : i32
      %1074 = tpu.assume_multiple %1073, 8 : i32
      %c0_455 = arith.constant 0 : index
      %1075 = arith.index_cast %1074 : i32 to index
      %c0_456 = arith.constant 0 : index
      %1076 = vector.load %arg18[%c0_455, %1075, %c0_456] : memref<1x64x16xf32, #tpu.memory_space<vmem>>, vector<1x8x16xf32>
      %1077 = vector.shape_cast %1076 : vector<1x8x16xf32> to vector<8x16xf32>
      %1078 = vector.shape_cast %896 : vector<8x16xf32> to vector<1x8x16xf32>
      tpu.vector_store %arg18[%c0_455, %1075, %c0_456], %1078 {strides = array<i32>} : memref<1x64x16xf32, #tpu.memory_space<vmem>>, vector<1x8x16xf32>,
    } else {
    }
    %c6_i32_380 = arith.constant 6 : i32
    %c0_i32_381 = arith.constant 0 : i32
    %901 = arith.subi %c6_i32_380, %c0_i32_381 : i32
    %c0_382 = arith.constant 0 : index
    %c0_383 = arith.constant 0 : index
    %902 = vector.load %arg20[%c0_382, %c0_383] : memref<8x64xf32, #tpu.memory_space<vmem>>, vector<8x64xf32>
    %c0_384 = arith.constant 0 : index
    %c0_385 = arith.constant 0 : index
    %903 = vector.load %arg13[%c0_384, %c0_385] : memref<16x64xf32, #tpu.memory_space<vmem>>, vector<16x64xf32>
    %cst_386 = arith.constant dense<0.000000e+00> : vector<8x64xf32>
    %904 = tpu.matmul %867, %903, %cst_386 {dimension_numbers = #tpu.dot_dimension_numbers<[1], [0], [0], [1], [0, 0, 1, 1], [], []>} : vector<8x16xf32>, vector<16x64xf32>, vector<8x64xf32> -> vector<8x64xf32>
    %905 = arith.addf %902, %904 : vector<8x64xf32>
    %906 = arith.negf %905 : vector<8x64xf32>
    %907 = math.exp %906 : vector<8x64xf32>
    %cst_387 = arith.constant 1.000000e+00 : f32
    %908 = vector.broadcast %cst_387 : f32 to vector<8x64xf32>
    %909 = arith.addf %908, %907 : vector<8x64xf32>
    %910 = arith.divf %908, %909 : vector<8x64xf32>
    %911 = vector.extract_strided_slice %910 {offsets = [0, 0], sizes = [8, 16], strides = [1, 1]} : vector<8x64xf32> to vector<8x16xf32>
    %912 = vector.extract_strided_slice %910 {offsets = [0, 16], sizes = [8, 16], strides = [1, 1]} : vector<8x64xf32> to vector<8x16xf32>
    %913 = vector.extract_strided_slice %910 {offsets = [0, 48], sizes = [8, 16], strides = [1, 1]} : vector<8x64xf32> to vector<8x16xf32>
    %914 = vector.extract_strided_slice %905 {offsets = [0, 32], sizes = [8, 16], strides = [1, 1]} : vector<8x64xf32> to vector<8x16xf32>
    %915 = math.tanh %914 : vector<8x16xf32>
    %916 = arith.mulf %912, %868 : vector<8x16xf32>
    %917 = arith.mulf %911, %915 : vector<8x16xf32>
    %918 = arith.addf %916, %917 : vector<8x16xf32>
    %919 = math.tanh %918 : vector<8x16xf32>
    %920 = arith.mulf %913, %919 : vector<8x16xf32>
    %c0_i32_388 = arith.constant 0 : i32
    %921 = arith.cmpi sge, %901, %c0_i32_388 : i32
    %c8_i32_389 = arith.constant 8 : i32
    %922 = arith.cmpi slt, %901, %c8_i32_389 : i32
    %923 = arith.andi %921, %922 : i1
    %924 = arith.select %923, %920, %867 : vector<8x16xf32>
    %925 = arith.select %923, %918, %868 : vector<8x16xf32>
    %c1_i32_390 = arith.constant 1 : i32
    %926 = arith.subi %c6_i32_380, %c1_i32_390 : i32
    %c0_391 = arith.constant 0 : index
    %c0_392 = arith.constant 0 : index
    %927 = vector.load %arg15[%c0_391, %c0_392] : memref<16x64xf32, #tpu.memory_space<vmem>>, vector<16x64xf32>
    %cst_393 = arith.constant dense<0.000000e+00> : vector<8x64xf32>
    %928 = tpu.matmul %867, %927, %cst_393 {dimension_numbers = #tpu.dot_dimension_numbers<[1], [0], [0], [1], [0, 0, 1, 1], [], []>} : vector<8x16xf32>, vector<16x64xf32>, vector<8x64xf32> -> vector<8x64xf32>
    %c0_394 = arith.constant 0 : index
    %c0_395 = arith.constant 0 : index
    %929 = vector.load %arg17[%c0_394, %c0_395] : memref<1x64xf32, #tpu.memory_space<vmem>>, vector<1x64xf32>
    %930 = vector.broadcast %929 : vector<1x64xf32> to vector<8x64xf32>
    %931 = arith.addf %928, %930 : vector<8x64xf32>
    %c0_396 = arith.constant 0 : index
    %c0_397 = arith.constant 0 : index
    %932 = vector.load %arg16[%c0_396, %c0_397] : memref<16x64xf32, #tpu.memory_space<vmem>>, vector<16x64xf32>
    %cst_398 = arith.constant dense<0.000000e+00> : vector<8x64xf32>
    %933 = tpu.matmul %896, %932, %cst_398 {dimension_numbers = #tpu.dot_dimension_numbers<[1], [0], [0], [1], [0, 0, 1, 1], [], []>} : vector<8x16xf32>, vector<16x64xf32>, vector<8x64xf32> -> vector<8x64xf32>
    %934 = arith.addf %931, %933 : vector<8x64xf32>
    %935 = arith.negf %934 : vector<8x64xf32>
    %936 = math.exp %935 : vector<8x64xf32>
    %cst_399 = arith.constant 1.000000e+00 : f32
    %937 = vector.broadcast %cst_399 : f32 to vector<8x64xf32>
    %938 = arith.addf %937, %936 : vector<8x64xf32>
    %939 = arith.divf %937, %938 : vector<8x64xf32>
    %940 = vector.extract_strided_slice %939 {offsets = [0, 0], sizes = [8, 16], strides = [1, 1]} : vector<8x64xf32> to vector<8x16xf32>
    %941 = vector.extract_strided_slice %939 {offsets = [0, 16], sizes = [8, 16], strides = [1, 1]} : vector<8x64xf32> to vector<8x16xf32>
    %942 = vector.extract_strided_slice %939 {offsets = [0, 48], sizes = [8, 16], strides = [1, 1]} : vector<8x64xf32> to vector<8x16xf32>
    %943 = vector.extract_strided_slice %934 {offsets = [0, 32], sizes = [8, 16], strides = [1, 1]} : vector<8x64xf32> to vector<8x16xf32>
    %944 = math.tanh %943 : vector<8x16xf32>
    %945 = arith.mulf %941, %897 : vector<8x16xf32>
    %946 = arith.mulf %940, %944 : vector<8x16xf32>
    %947 = arith.addf %945, %946 : vector<8x16xf32>
    %948 = math.tanh %947 : vector<8x16xf32>
    %949 = arith.mulf %942, %948 : vector<8x16xf32>
    %c0_i32_400 = arith.constant 0 : i32
    %950 = arith.cmpi sge, %926, %c0_i32_400 : i32
    %c8_i32_401 = arith.constant 8 : i32
    %951 = arith.cmpi slt, %926, %c8_i32_401 : i32
    %952 = arith.andi %950, %951 : i1
    %953 = arith.select %952, %949, %896 : vector<8x16xf32>
    %954 = arith.select %952, %947, %897 : vector<8x16xf32>
    %c0_i32_402 = arith.constant 0 : i32
    %955 = arith.cmpi sge, %926, %c0_i32_402 : i32
    %956 = arith.extui %955 : i1 to i32
    %c0_i32_403 = arith.constant 0 : i32
    %957 = arith.cmpi ne, %956, %c0_i32_403 : i32
    scf.if %957 {
      %c0_i32_453 = arith.constant 0 : i32
      %1072 = arith.maxsi %926, %c0_i32_453 : i32
      %c8_i32_454 = arith.constant 8 : i32
      %1073 = arith.muli %1072, %c8_i32_454 : i32
      %1074 = tpu.assume_multiple %1073, 8 : i32
      %c0_455 = arith.constant 0 : index
      %1075 = arith.index_cast %1074 : i32 to index
      %c0_456 = arith.constant 0 : index
      %1076 = vector.load %arg18[%c0_455, %1075, %c0_456] : memref<1x64x16xf32, #tpu.memory_space<vmem>>, vector<1x8x16xf32>
      %1077 = vector.shape_cast %1076 : vector<1x8x16xf32> to vector<8x16xf32>
      %1078 = vector.shape_cast %953 : vector<8x16xf32> to vector<1x8x16xf32>
      tpu.vector_store %arg18[%c0_455, %1075, %c0_456], %1078 {strides = array<i32>} : memref<1x64x16xf32, #tpu.memory_space<vmem>>, vector<1x8x16xf32>,
    } else {
    }
    %c7_i32_404 = arith.constant 7 : i32
    %c0_i32_405 = arith.constant 0 : i32
    %958 = arith.subi %c7_i32_404, %c0_i32_405 : i32
    %c0_406 = arith.constant 0 : index
    %c0_407 = arith.constant 0 : index
    %959 = vector.load %arg20[%c0_406, %c0_407] : memref<8x64xf32, #tpu.memory_space<vmem>>, vector<8x64xf32>
    %c0_408 = arith.constant 0 : index
    %c0_409 = arith.constant 0 : index
    %960 = vector.load %arg13[%c0_408, %c0_409] : memref<16x64xf32, #tpu.memory_space<vmem>>, vector<16x64xf32>
    %cst_410 = arith.constant dense<0.000000e+00> : vector<8x64xf32>
    %961 = tpu.matmul %924, %960, %cst_410 {dimension_numbers = #tpu.dot_dimension_numbers<[1], [0], [0], [1], [0, 0, 1, 1], [], []>} : vector<8x16xf32>, vector<16x64xf32>, vector<8x64xf32> -> vector<8x64xf32>
    %962 = arith.addf %959, %961 : vector<8x64xf32>
    %963 = arith.negf %962 : vector<8x64xf32>
    %964 = math.exp %963 : vector<8x64xf32>
    %cst_411 = arith.constant 1.000000e+00 : f32
    %965 = vector.broadcast %cst_411 : f32 to vector<8x64xf32>
    %966 = arith.addf %965, %964 : vector<8x64xf32>
    %967 = arith.divf %965, %966 : vector<8x64xf32>
    %968 = vector.extract_strided_slice %967 {offsets = [0, 0], sizes = [8, 16], strides = [1, 1]} : vector<8x64xf32> to vector<8x16xf32>
    %969 = vector.extract_strided_slice %967 {offsets = [0, 16], sizes = [8, 16], strides = [1, 1]} : vector<8x64xf32> to vector<8x16xf32>
    %970 = vector.extract_strided_slice %967 {offsets = [0, 48], sizes = [8, 16], strides = [1, 1]} : vector<8x64xf32> to vector<8x16xf32>
    %971 = vector.extract_strided_slice %962 {offsets = [0, 32], sizes = [8, 16], strides = [1, 1]} : vector<8x64xf32> to vector<8x16xf32>
    %972 = math.tanh %971 : vector<8x16xf32>
    %973 = arith.mulf %969, %925 : vector<8x16xf32>
    %974 = arith.mulf %968, %972 : vector<8x16xf32>
    %975 = arith.addf %973, %974 : vector<8x16xf32>
    %976 = math.tanh %975 : vector<8x16xf32>
    %977 = arith.mulf %970, %976 : vector<8x16xf32>
    %c0_i32_412 = arith.constant 0 : i32
    %978 = arith.cmpi sge, %958, %c0_i32_412 : i32
    %c8_i32_413 = arith.constant 8 : i32
    %979 = arith.cmpi slt, %958, %c8_i32_413 : i32
    %980 = arith.andi %978, %979 : i1
    %981 = arith.select %980, %977, %924 : vector<8x16xf32>
    %982 = arith.select %980, %975, %925 : vector<8x16xf32>
    %c1_i32_414 = arith.constant 1 : i32
    %983 = arith.subi %c7_i32_404, %c1_i32_414 : i32
    %c0_415 = arith.constant 0 : index
    %c0_416 = arith.constant 0 : index
    %984 = vector.load %arg15[%c0_415, %c0_416] : memref<16x64xf32, #tpu.memory_space<vmem>>, vector<16x64xf32>
    %cst_417 = arith.constant dense<0.000000e+00> : vector<8x64xf32>
    %985 = tpu.matmul %924, %984, %cst_417 {dimension_numbers = #tpu.dot_dimension_numbers<[1], [0], [0], [1], [0, 0, 1, 1], [], []>} : vector<8x16xf32>, vector<16x64xf32>, vector<8x64xf32> -> vector<8x64xf32>
    %c0_418 = arith.constant 0 : index
    %c0_419 = arith.constant 0 : index
    %986 = vector.load %arg17[%c0_418, %c0_419] : memref<1x64xf32, #tpu.memory_space<vmem>>, vector<1x64xf32>
    %987 = vector.broadcast %986 : vector<1x64xf32> to vector<8x64xf32>
    %988 = arith.addf %985, %987 : vector<8x64xf32>
    %c0_420 = arith.constant 0 : index
    %c0_421 = arith.constant 0 : index
    %989 = vector.load %arg16[%c0_420, %c0_421] : memref<16x64xf32, #tpu.memory_space<vmem>>, vector<16x64xf32>
    %cst_422 = arith.constant dense<0.000000e+00> : vector<8x64xf32>
    %990 = tpu.matmul %953, %989, %cst_422 {dimension_numbers = #tpu.dot_dimension_numbers<[1], [0], [0], [1], [0, 0, 1, 1], [], []>} : vector<8x16xf32>, vector<16x64xf32>, vector<8x64xf32> -> vector<8x64xf32>
    %991 = arith.addf %988, %990 : vector<8x64xf32>
    %992 = arith.negf %991 : vector<8x64xf32>
    %993 = math.exp %992 : vector<8x64xf32>
    %cst_423 = arith.constant 1.000000e+00 : f32
    %994 = vector.broadcast %cst_423 : f32 to vector<8x64xf32>
    %995 = arith.addf %994, %993 : vector<8x64xf32>
    %996 = arith.divf %994, %995 : vector<8x64xf32>
    %997 = vector.extract_strided_slice %996 {offsets = [0, 0], sizes = [8, 16], strides = [1, 1]} : vector<8x64xf32> to vector<8x16xf32>
    %998 = vector.extract_strided_slice %996 {offsets = [0, 16], sizes = [8, 16], strides = [1, 1]} : vector<8x64xf32> to vector<8x16xf32>
    %999 = vector.extract_strided_slice %996 {offsets = [0, 48], sizes = [8, 16], strides = [1, 1]} : vector<8x64xf32> to vector<8x16xf32>
    %1000 = vector.extract_strided_slice %991 {offsets = [0, 32], sizes = [8, 16], strides = [1, 1]} : vector<8x64xf32> to vector<8x16xf32>
    %1001 = math.tanh %1000 : vector<8x16xf32>
    %1002 = arith.mulf %998, %954 : vector<8x16xf32>
    %1003 = arith.mulf %997, %1001 : vector<8x16xf32>
    %1004 = arith.addf %1002, %1003 : vector<8x16xf32>
    %1005 = math.tanh %1004 : vector<8x16xf32>
    %1006 = arith.mulf %999, %1005 : vector<8x16xf32>
    %c0_i32_424 = arith.constant 0 : i32
    %1007 = arith.cmpi sge, %983, %c0_i32_424 : i32
    %c8_i32_425 = arith.constant 8 : i32
    %1008 = arith.cmpi slt, %983, %c8_i32_425 : i32
    %1009 = arith.andi %1007, %1008 : i1
    %1010 = arith.select %1009, %1006, %953 : vector<8x16xf32>
    %1011 = arith.select %1009, %1004, %954 : vector<8x16xf32>
    %c0_i32_426 = arith.constant 0 : i32
    %1012 = arith.cmpi sge, %983, %c0_i32_426 : i32
    %1013 = arith.extui %1012 : i1 to i32
    %c0_i32_427 = arith.constant 0 : i32
    %1014 = arith.cmpi ne, %1013, %c0_i32_427 : i32
    scf.if %1014 {
      %c0_i32_453 = arith.constant 0 : i32
      %1072 = arith.maxsi %983, %c0_i32_453 : i32
      %c8_i32_454 = arith.constant 8 : i32
      %1073 = arith.muli %1072, %c8_i32_454 : i32
      %1074 = tpu.assume_multiple %1073, 8 : i32
      %c0_455 = arith.constant 0 : index
      %1075 = arith.index_cast %1074 : i32 to index
      %c0_456 = arith.constant 0 : index
      %1076 = vector.load %arg18[%c0_455, %1075, %c0_456] : memref<1x64x16xf32, #tpu.memory_space<vmem>>, vector<1x8x16xf32>
      %1077 = vector.shape_cast %1076 : vector<1x8x16xf32> to vector<8x16xf32>
      %1078 = vector.shape_cast %1010 : vector<8x16xf32> to vector<1x8x16xf32>
      tpu.vector_store %arg18[%c0_455, %1075, %c0_456], %1078 {strides = array<i32>} : memref<1x64x16xf32, #tpu.memory_space<vmem>>, vector<1x8x16xf32>,
    } else {
    }
    %c8_i32_428 = arith.constant 8 : i32
    %c0_i32_429 = arith.constant 0 : i32
    %1015 = arith.subi %c8_i32_428, %c0_i32_429 : i32
    %c0_430 = arith.constant 0 : index
    %c0_431 = arith.constant 0 : index
    %1016 = vector.load %arg20[%c0_430, %c0_431] : memref<8x64xf32, #tpu.memory_space<vmem>>, vector<8x64xf32>
    %c0_432 = arith.constant 0 : index
    %c0_433 = arith.constant 0 : index
    %1017 = vector.load %arg13[%c0_432, %c0_433] : memref<16x64xf32, #tpu.memory_space<vmem>>, vector<16x64xf32>
    %cst_434 = arith.constant dense<0.000000e+00> : vector<8x64xf32>
    %1018 = tpu.matmul %981, %1017, %cst_434 {dimension_numbers = #tpu.dot_dimension_numbers<[1], [0], [0], [1], [0, 0, 1, 1], [], []>} : vector<8x16xf32>, vector<16x64xf32>, vector<8x64xf32> -> vector<8x64xf32>
    %1019 = arith.addf %1016, %1018 : vector<8x64xf32>
    %1020 = arith.negf %1019 : vector<8x64xf32>
    %1021 = math.exp %1020 : vector<8x64xf32>
    %cst_435 = arith.constant 1.000000e+00 : f32
    %1022 = vector.broadcast %cst_435 : f32 to vector<8x64xf32>
    %1023 = arith.addf %1022, %1021 : vector<8x64xf32>
    %1024 = arith.divf %1022, %1023 : vector<8x64xf32>
    %1025 = vector.extract_strided_slice %1024 {offsets = [0, 0], sizes = [8, 16], strides = [1, 1]} : vector<8x64xf32> to vector<8x16xf32>
    %1026 = vector.extract_strided_slice %1024 {offsets = [0, 16], sizes = [8, 16], strides = [1, 1]} : vector<8x64xf32> to vector<8x16xf32>
    %1027 = vector.extract_strided_slice %1024 {offsets = [0, 48], sizes = [8, 16], strides = [1, 1]} : vector<8x64xf32> to vector<8x16xf32>
    %1028 = vector.extract_strided_slice %1019 {offsets = [0, 32], sizes = [8, 16], strides = [1, 1]} : vector<8x64xf32> to vector<8x16xf32>
    %1029 = math.tanh %1028 : vector<8x16xf32>
    %1030 = arith.mulf %1026, %982 : vector<8x16xf32>
    %1031 = arith.mulf %1025, %1029 : vector<8x16xf32>
    %1032 = arith.addf %1030, %1031 : vector<8x16xf32>
    %1033 = math.tanh %1032 : vector<8x16xf32>
    %1034 = arith.mulf %1027, %1033 : vector<8x16xf32>
    %c0_i32_436 = arith.constant 0 : i32
    %1035 = arith.cmpi sge, %1015, %c0_i32_436 : i32
    %c8_i32_437 = arith.constant 8 : i32
    %1036 = arith.cmpi slt, %1015, %c8_i32_437 : i32
    %1037 = arith.andi %1035, %1036 : i1
    %1038 = arith.select %1037, %1034, %981 : vector<8x16xf32>
    %1039 = arith.select %1037, %1032, %982 : vector<8x16xf32>
    %c1_i32_438 = arith.constant 1 : i32
    %1040 = arith.subi %c8_i32_428, %c1_i32_438 : i32
    %c0_439 = arith.constant 0 : index
    %c0_440 = arith.constant 0 : index
    %1041 = vector.load %arg15[%c0_439, %c0_440] : memref<16x64xf32, #tpu.memory_space<vmem>>, vector<16x64xf32>
    %cst_441 = arith.constant dense<0.000000e+00> : vector<8x64xf32>
    %1042 = tpu.matmul %981, %1041, %cst_441 {dimension_numbers = #tpu.dot_dimension_numbers<[1], [0], [0], [1], [0, 0, 1, 1], [], []>} : vector<8x16xf32>, vector<16x64xf32>, vector<8x64xf32> -> vector<8x64xf32>
    %c0_442 = arith.constant 0 : index
    %c0_443 = arith.constant 0 : index
    %1043 = vector.load %arg17[%c0_442, %c0_443] : memref<1x64xf32, #tpu.memory_space<vmem>>, vector<1x64xf32>
    %1044 = vector.broadcast %1043 : vector<1x64xf32> to vector<8x64xf32>
    %1045 = arith.addf %1042, %1044 : vector<8x64xf32>
    %c0_444 = arith.constant 0 : index
    %c0_445 = arith.constant 0 : index
    %1046 = vector.load %arg16[%c0_444, %c0_445] : memref<16x64xf32, #tpu.memory_space<vmem>>, vector<16x64xf32>
    %cst_446 = arith.constant dense<0.000000e+00> : vector<8x64xf32>
    %1047 = tpu.matmul %1010, %1046, %cst_446 {dimension_numbers = #tpu.dot_dimension_numbers<[1], [0], [0], [1], [0, 0, 1, 1], [], []>} : vector<8x16xf32>, vector<16x64xf32>, vector<8x64xf32> -> vector<8x64xf32>
    %1048 = arith.addf %1045, %1047 : vector<8x64xf32>
    %1049 = arith.negf %1048 : vector<8x64xf32>
    %1050 = math.exp %1049 : vector<8x64xf32>
    %cst_447 = arith.constant 1.000000e+00 : f32
    %1051 = vector.broadcast %cst_447 : f32 to vector<8x64xf32>
    %1052 = arith.addf %1051, %1050 : vector<8x64xf32>
    %1053 = arith.divf %1051, %1052 : vector<8x64xf32>
    %1054 = vector.extract_strided_slice %1053 {offsets = [0, 0], sizes = [8, 16], strides = [1, 1]} : vector<8x64xf32> to vector<8x16xf32>
    %1055 = vector.extract_strided_slice %1053 {offsets = [0, 16], sizes = [8, 16], strides = [1, 1]} : vector<8x64xf32> to vector<8x16xf32>
    %1056 = vector.extract_strided_slice %1053 {offsets = [0, 48], sizes = [8, 16], strides = [1, 1]} : vector<8x64xf32> to vector<8x16xf32>
    %1057 = vector.extract_strided_slice %1048 {offsets = [0, 32], sizes = [8, 16], strides = [1, 1]} : vector<8x64xf32> to vector<8x16xf32>
    %1058 = math.tanh %1057 : vector<8x16xf32>
    %1059 = arith.mulf %1055, %1011 : vector<8x16xf32>
    %1060 = arith.mulf %1054, %1058 : vector<8x16xf32>
    %1061 = arith.addf %1059, %1060 : vector<8x16xf32>
    %1062 = math.tanh %1061 : vector<8x16xf32>
    %1063 = arith.mulf %1056, %1062 : vector<8x16xf32>
    %c0_i32_448 = arith.constant 0 : i32
    %1064 = arith.cmpi sge, %1040, %c0_i32_448 : i32
    %c8_i32_449 = arith.constant 8 : i32
    %1065 = arith.cmpi slt, %1040, %c8_i32_449 : i32
    %1066 = arith.andi %1064, %1065 : i1
    %1067 = arith.select %1066, %1063, %1010 : vector<8x16xf32>
    %1068 = arith.select %1066, %1061, %1011 : vector<8x16xf32>
    %c0_i32_450 = arith.constant 0 : i32
    %1069 = arith.cmpi sge, %1040, %c0_i32_450 : i32
    %1070 = arith.extui %1069 : i1 to i32
    %c0_i32_451 = arith.constant 0 : i32
    %1071 = arith.cmpi ne, %1070, %c0_i32_451 : i32
    scf.if %1071 {
      %c0_i32_453 = arith.constant 0 : i32
      %1072 = arith.maxsi %1040, %c0_i32_453 : i32
      %c8_i32_454 = arith.constant 8 : i32
      %1073 = arith.muli %1072, %c8_i32_454 : i32
      %1074 = tpu.assume_multiple %1073, 8 : i32
      %c0_455 = arith.constant 0 : index
      %1075 = arith.index_cast %1074 : i32 to index
      %c0_456 = arith.constant 0 : index
      %1076 = vector.load %arg18[%c0_455, %1075, %c0_456] : memref<1x64x16xf32, #tpu.memory_space<vmem>>, vector<1x8x16xf32>
      %1077 = vector.shape_cast %1076 : vector<1x8x16xf32> to vector<8x16xf32>
      %1078 = vector.shape_cast %1067 : vector<8x16xf32> to vector<1x8x16xf32>
      tpu.vector_store %arg18[%c0_455, %1075, %c0_456], %1078 {strides = array<i32>} : memref<1x64x16xf32, #tpu.memory_space<vmem>>, vector<1x8x16xf32>,
    } else {
    }
    %c9_i32_452 = arith.constant 9 : i32
    return
  }
  func.func @transform_0(%arg0: i32) -> (i32, i32, i32) {
    %c0_i32 = arith.constant 0 : i32
    %c0_i32_0 = arith.constant 0 : i32
    %c0_i32_1 = arith.constant 0 : i32
    return %arg0, %c0_i32, %c0_i32_0 : i32, i32, i32
  }
  func.func @transform_1(%arg0: i32) -> (i32, i32) {
    %c0_i32 = arith.constant 0 : i32
    %c0_i32_0 = arith.constant 0 : i32
    %c0_i32_1 = arith.constant 0 : i32
    return %c0_i32, %c0_i32_0 : i32, i32
  }
  func.func @transform_2(%arg0: i32) -> (i32, i32) {
    %c0_i32 = arith.constant 0 : i32
    %c0_i32_0 = arith.constant 0 : i32
    %c0_i32_1 = arith.constant 0 : i32
    return %c0_i32, %c0_i32_0 : i32, i32
  }
  func.func @transform_3(%arg0: i32) -> (i32, i32) {
    %c0_i32 = arith.constant 0 : i32
    %c0_i32_0 = arith.constant 0 : i32
    %c0_i32_1 = arith.constant 0 : i32
    return %c0_i32, %c0_i32_0 : i32, i32
  }
  func.func @transform_4(%arg0: i32) -> (i32, i32) {
    %c0_i32 = arith.constant 0 : i32
    %c0_i32_0 = arith.constant 0 : i32
    %c0_i32_1 = arith.constant 0 : i32
    return %c0_i32, %c0_i32_0 : i32, i32
  }
  func.func @transform_5(%arg0: i32) -> (i32, i32) {
    %c0_i32 = arith.constant 0 : i32
    %c0_i32_0 = arith.constant 0 : i32
    %c0_i32_1 = arith.constant 0 : i32
    return %c0_i32, %c0_i32_0 : i32, i32
  }
  func.func @transform_6(%arg0: i32) -> (i32, i32) {
    %c0_i32 = arith.constant 0 : i32
    %c0_i32_0 = arith.constant 0 : i32
    %c0_i32_1 = arith.constant 0 : i32
    return %c0_i32, %c0_i32_0 : i32, i32
  }
  func.func @transform_7(%arg0: i32) -> (i32, i32) {
    %c0_i32 = arith.constant 0 : i32
    %c0_i32_0 = arith.constant 0 : i32
    %c0_i32_1 = arith.constant 0 : i32
    return %c0_i32, %c0_i32_0 : i32, i32
  }
  func.func @transform_8(%arg0: i32) -> (i32, i32) {
    %c0_i32 = arith.constant 0 : i32
    %c0_i32_0 = arith.constant 0 : i32
    %c0_i32_1 = arith.constant 0 : i32
    return %c0_i32, %c0_i32_0 : i32, i32
  }
  func.func @transform_9(%arg0: i32) -> (i32, i32) {
    %c0_i32 = arith.constant 0 : i32
    %c0_i32_0 = arith.constant 0 : i32
    %c0_i32_1 = arith.constant 0 : i32
    return %c0_i32, %c0_i32_0 : i32, i32
  }
  func.func @transform_10(%arg0: i32) -> (i32, i32) {
    %c0_i32 = arith.constant 0 : i32
    %c0_i32_0 = arith.constant 0 : i32
    %c0_i32_1 = arith.constant 0 : i32
    return %c0_i32, %c0_i32_0 : i32, i32
  }
  func.func @transform_11(%arg0: i32) -> (i32, i32) {
    %c0_i32 = arith.constant 0 : i32
    %c0_i32_0 = arith.constant 0 : i32
    %c0_i32_1 = arith.constant 0 : i32
    return %c0_i32, %c0_i32_0 : i32, i32
  }
  func.func @transform_12(%arg0: i32) -> (i32, i32) {
    %c0_i32 = arith.constant 0 : i32
    %c0_i32_0 = arith.constant 0 : i32
    %c0_i32_1 = arith.constant 0 : i32
    return %c0_i32, %c0_i32_0 : i32, i32
  }
  func.func @transform_13(%arg0: i32) -> (i32, i32) {
    %c0_i32 = arith.constant 0 : i32
    %c0_i32_0 = arith.constant 0 : i32
    %c0_i32_1 = arith.constant 0 : i32
    return %c0_i32, %c0_i32_0 : i32, i32
  }
  func.func @transform_14(%arg0: i32) -> (i32, i32) {
    %c0_i32 = arith.constant 0 : i32
    %c0_i32_0 = arith.constant 0 : i32
    %c0_i32_1 = arith.constant 0 : i32
    return %c0_i32, %c0_i32_0 : i32, i32
  }
  func.func @transform_15(%arg0: i32) -> (i32, i32) {
    %c0_i32 = arith.constant 0 : i32
    %c0_i32_0 = arith.constant 0 : i32
    %c0_i32_1 = arith.constant 0 : i32
    return %c0_i32, %c0_i32_0 : i32, i32
  }
  func.func @transform_16(%arg0: i32) -> (i32, i32) {
    %c0_i32 = arith.constant 0 : i32
    %c0_i32_0 = arith.constant 0 : i32
    %c0_i32_1 = arith.constant 0 : i32
    return %c0_i32, %c0_i32_0 : i32, i32
  }
  func.func @transform_17(%arg0: i32) -> (i32, i32, i32) {
    %c0_i32 = arith.constant 0 : i32
    %c0_i32_0 = arith.constant 0 : i32
    %c0_i32_1 = arith.constant 0 : i32
    return %arg0, %c0_i32, %c0_i32_0 : i32, i32, i32
  }
}

</mosaic_0001>

<bundles_post_ra>
// kernel: lstm_autoencoder_forward.1
= control target key start
LH: loop header
LB: loop body
LE: loop exit
PB: predicated region body
PF: predicated region fallthrough
CT: control target
= control target key end

     0   :  { %s7164_s0 = inlined_call_operand.vmem [shape: bf16[1,64,16], index: 0, kind: input, shape index: {}]   ;;  %s7165_s1 = inlined_call_operand.vmem [shape: bf16[16,128], index: 1, kind: input, shape index: {}]   ;;  %s7166_s2 = inlined_call_operand.vmem [shape: f32[32,128], index: 2, kind: input, shape index: {}]   ;;  %s7167_s3 = inlined_call_operand.vmem [shape: f32[1,128], index: 3, kind: input, shape index: {}]   ;;  %s7168_s4 = inlined_call_operand.vmem [shape: f32[32,128], index: 4, kind: input, shape index: {}]   ;;  %s7169_s5 = inlined_call_operand.vmem [shape: f32[32,128], index: 5, kind: input, shape index: {}]   ;;  %s7170_s6 = inlined_call_operand.vmem [shape: f32[1,128], index: 6, kind: input, shape index: {}]   ;;  %s7171_s7 = inlined_call_operand.vmem [shape: f32[32,8], index: 7, kind: input, shape index: {}]   ;;  %s7172_s8 = inlined_call_operand.vmem [shape: f32[1,8], index: 8, kind: input, shape index: {}]   ;;  %s7173_s9 = inlined_call_operand.vmem [shape: f32[8,32], index: 9, kind: input, shape index: {}]   ;;  %s7174_s10 = inlined_call_operand.vmem [shape: f32[1,32], index: 10, kind: input, shape index: {}]   ;;  %s7175_s11 = inlined_call_operand.vmem [shape: f32[32,64], index: 11, kind: input, shape index: {}]   ;;  %s7176_s12 = inlined_call_operand.vmem [shape: f32[16,64], index: 12, kind: input, shape index: {}]   ;;  %s7177_s13 = inlined_call_operand.hbm [shape: f32[1,64], index: 13, kind: input, shape index: {}]   ;;  %s7178_s14 = inlined_call_operand.vmem [shape: f32[16,64], index: 14, kind: input, shape index: {}]   ;;  %s7179_s15 = inlined_call_operand.vmem [shape: f32[16,64], index: 15, kind: input, shape index: {}]   ;;  %s7180_s16 = inlined_call_operand.hbm [shape: f32[1,64], index: 16, kind: input, shape index: {}]   ;;  %s7181_s17 = inlined_call_operand.vmem [shape: f32[1,64,16], index: 17, kind: output, shape index: {}]  }
   0x1   :  { %7183 = sst [smem:[#allocation10_spill]] %s7164_s0 }
   0x2   :  { %7184 = sst [smem:[#allocation11_spill]] %s7165_s1 }
   0x3   :  { %22 = vsyncpa [#allocation5], 0 }
   0x4   :  { %23 = vsyncpa [#allocation7], 0  ;;  %s6336_s24 = smov [#allocation4]   ;;  %s6337_s26 = smov [#allocation6]  }
   0x5   :  { %s56_s25 = sshll.u32 %s6336_s24, 4  ;;  %s70_s27 = sshll.u32 %s6337_s26, 4  ;;  %s57_s25 = int_to_ptr.vmem [resolvable:$true] %s56_s25  ;;  %s71_s27 = int_to_ptr.vmem [resolvable:$true] %s70_s27 }
   0x6   :  { %s6288_s0 = scalar_lea.hbm %s7177_s13, 16 }
   0x7   :  { %p6289_p0 = scmp.ne.s32.totalorder %s7177_s13, %s6288_s0  ;;  %p6292_p1 = scmp.lt.u32.totalorder %s6288_s0, %s7177_s13 }
   0x9   :  { %p6294_p2 = pnand %p6292_p1, %p6289_p0 }
   0xb   :  { %6297 = shalt.err (!%p6294_p2)
}
   0xc   :  { %s6298_s20 = scalar_lea.vmem %s57_s25, 16  ;;  %s6302_s21 = scalar_lea.vmem %s57_s25, 32 }
   0xd   :  { %p6299_p3 = scmp.ne.s32.totalorder %s57_s25, %s6298_s20  ;;  %p6303_p4 = scmp.lt.s32.totalorder %s57_s25, %s57_s25 }
   0xe   :  { %p6304_p5 = scmp.lt.s32.totalorder %s6302_s21, %s6298_s20 }
  0x10   :  { %p6305_p6 = por %p6304_p5, %p6303_p4 }
  0x12   :  { %p6306_p7 = pnand %p6305_p6, %p6299_p3 }
  0x14   :  { %6309 = shalt.err (!%p6306_p7)
}
  0x15   :  { %59 = dma.hbm_to_vmem [thread:$0]  %s7177_s13, 16, %s57_s25, [#allocation5]  }
  0x16   :  { %s6310_s28 = scalar_lea.hbm %s7180_s16, 16 }
  0x17   :  { %p6311_p8 = scmp.ne.s32.totalorder %s7180_s16, %s6310_s28  ;;  %p6314_p9 = scmp.lt.u32.totalorder %s6310_s28, %s7180_s16 }
  0x19   :  { %p6316_p10 = pnand %p6314_p9, %p6311_p8 }
  0x1b   :  { %6319 = shalt.err (!%p6316_p10)
}
  0x1c   :  { %s6320_s19 = scalar_lea.vmem %s71_s27, 16  ;;  %s6324_s1 = scalar_lea.vmem %s71_s27, 32 }
  0x1d   :  { %p6321_p11 = scmp.ne.s32.totalorder %s71_s27, %s6320_s19  ;;  %p6325_p12 = scmp.lt.s32.totalorder %s71_s27, %s71_s27 }
  0x1e   :  { %p6326_p13 = scmp.lt.s32.totalorder %s6324_s1, %s6320_s19 }
  0x20   :  { %p6327_p0 = por %p6326_p13, %p6325_p12 }
  0x22   :  { %p6328_p1 = pnand %p6327_p0, %p6321_p11 }
  0x24   :  { %6331 = shalt.err (!%p6328_p1)
}
  0x25   :  { %73 = dma.hbm_to_vmem [thread:$0]  %s7180_s16, 16, %s71_s27, [#allocation7]  }
  0x26   :  { %6332 = dma.done.wait [#allocation5], 16  }
  0x27   :  { %6333 = vsyncadd [#allocation5], 4294967280 }
  0x28   :  { %6334 = dma.done.wait [#allocation7], 16  }
  0x29   :  { %6335 = vsyncadd [#allocation7], 4294967280  ;;  %v6338_v0 = vmov 0.0|0.0   ;;  %vm6339_vm0 = vmmov 0   ;;  %v6340_v1 = vmov 0.0   ;;  %s7185_s22 = sld [smem:[#allocation11_spill]] }
  0x2a   :  { %5741 = vmatprep.subr.bf16.mxu1 %v6338_v0  ;;  %5290 = vmatprep.mubr.msk.f32.mxu1 %vm6339_vm0, %v6340_v1  ;;  %v211_v3 = vld [vmem:[%s7166_s2] sm:$0xff]  ;;  %v212_v4 = vld [vmem:[%s7166_s2 + $0x8] sm:$0xff]  ;;  %vm124_vm1 = vcmask 130048   ;;  %s7186_s29 = sld [smem:[#allocation10_spill]]  ;;  %v213_v8 = vld [vmem:[%s7166_s2 + $0x10] sm:$0xff]  ;;  %s6341_s20 = smov 64  }
  0x2b   :  { %v6472_v5 = vpack.c.bf16 %v212_v4, %v211_v3  ;;  %v214_v9 = vld [vmem:[%s7166_s2 + $0x18] sm:$0xff]  ;;  %v6505_v11 = vld [vmem:[%s7167_s3] ss:$0 sm:$0xff]  ;;  %s6342_s3 = smov 32   ;;  %v417_v33 = vld [vmem:[%s7168_s4 + $0x8] sm:$0xff]  ;;  %vm215_vm2 = vcmask 261120  }
  0x2c   :  { %v6489_v10 = vpack.c.bf16 %v214_v9, %v213_v8  ;;  %v416_v32 = vld [vmem:[%s7168_s4] sm:$0xff]  ;;  %v418_v34 = vld [vmem:[%s7168_s4 + $0x10] sm:$0xff]  ;;  %v419_v35 = vld [vmem:[%s7168_s4 + $0x18] sm:$0xff]  ;;  %vm2497_vm3 = vcmask 64512   ;;  %vm2655_vm4 = vcmask 523264   ;;  %s6345_s28 = smov 80  }
  0x2d   :  { %5743 = vmatpush3.bf16.msra.mxu1 %v6472_v5  ;;  %v6538_v36 = vpack.c.bf16 %v417_v33, %v416_v32  ;;  %v6542_v37 = vpack.c.bf16 %v419_v35, %v418_v34  ;;  %v497_v45 = vld [vmem:[%s7169_s5] sm:$0xff]  ;;  %v498_v46 = vld [vmem:[%s7169_s5 + $0x8] sm:$0xff]  ;;  %v499_v48 = vld [vmem:[%s7169_s5 + $0x10] sm:$0xff] }
  0x2e   :  { %5744 = vmatprep.subr.bf16.mxu1 %v6338_v0  ;;  %v6565_v47 = vpack.c.bf16 %v498_v46, %v497_v45  ;;  %v500_v49 = vld [vmem:[%s7169_s5 + $0x18] sm:$0xff]  ;;  %v6601_v56 = vld [vmem:[%s7170_s6] ss:$0 sm:$0xff] }
  0x2f   :  { %v6027_v2 = vld [vmem:[%s7185_s22] sm:$0xff]   ;;  %v6576_v51 = vpack.c.bf16 %v500_v49, %v499_v48 }
  0x30   :  { %5272 = vmatprep.subr.bf16.mxu0 %v6027_v2  ;;  %v6028_v6 = vld [vmem:[%s7186_s29] sm:$0xff]   ;;  %v6029_v7 = vld [vmem:[%s7186_s29 + $0x8] sm:$0xff]   ;;  %v6030_v30 = vld [vmem:[%s7186_s29 + $0x10] sm:$0xff]  }
  0x31   :  { %5273 = vmatpush3.bf16.msra.mxu0 %v6027_v2  ;;  %5274 = vmatprep.mubr.msk.bf16.mxu0 %vm124_vm1, %v6028_v6  ;;  %v6031_v31 = vld [vmem:[%s7186_s29 + $0x18] sm:$0xff]  }
  0x32   :  { %5753 = vmatprep.subr.bf16.mxu0 %v6338_v0  ;;  %5746 = vmatpush3.bf16.msra.mxu1 %v6489_v10 }
  0x33   :  { %5747 = vmatprep.subr.bf16.mxu1 %v6338_v0 }
  0x34   :  { %5275 = vmatmul.mubr.msk.bf16.vlgmr.msra.gmra.mrb[0].mxu0 %vm124_vm1, %v6029_v7 }
  0x35   :  { %5291 = vmatmul.mubr.f32.vlgmr.msra.gmra.mrb[0].mxu1 %v6340_v1  ;;  %5278 = vmatprep.mubr.msk.bf16.mxu0 %vm124_vm1, %v6030_v30 }
  0x36   :  { %5749 = vmatpush3.bf16.msra.mxu1 %v6472_v5  ;;  %5301 = vmatprep.mubr.msk.f32.mxu1 %vm6339_vm0, %v6340_v1 }
  0x37   :  { %5750 = vmatprep.subr.bf16.mxu1 %v6338_v0  ;;  %5755 = vmatpush3.bf16.msra.mxu0 %v6538_v36 }
  0x38   :  { %5756 = vmatprep.subr.bf16.mxu0 %v6338_v0 }
  0x3a   :  { %5752 = vmatpush3.bf16.msra.mxu1 %v6489_v10 }
  0x3b   :  { %5765 = vmatprep.subr.bf16.mxu1 %v6338_v0  ;;  %5758 = vmatpush3.bf16.msra.mxu0 %v6542_v37 }
  0x3c   :  { %5279 = vmatmul.mubr.msk.bf16.gmra.mrb[4].mxu0 %vm124_vm1, %v6031_v31  ;;  %5759 = vmatprep.subr.bf16.mxu0 %v6338_v0 }
  0x3d   :  { %5312 = vmatprep.mubr.msk.f32.mxu0 %vm6339_vm0, %v6340_v1 }
 0x107   :  { %v6507_v12 = vpop.f32.mrb[0].mxu0 }
 0x108   :  { %v171_v13 = vpop.f32.mrb[1].mxu0  ;;  %v285_v17 = vpop.f32.mrb[0].mxu1  ;;  %v180_v31 = vadd.f32 %v6507_v12, %v6505_v11 }
 0x109   :  { %v172_v14 = vadd.f32 %v6505_v11, %v171_v13  ;;  %v6510_v15 = vpop.f32.mrb[2].mxu0  ;;  %v5292_v19 = vpop.f32.mrb[1].mxu1 }
 0x10a   :  { %v6512_v16 = vpop.f32.mrb[3].mxu0 }
 0x10b   :  { %v289_v18 = vadd.f32 %v285_v17, %v172_v14  ;;  %v175_v52 = vadd.f32 %v6505_v11, %v6512_v16 }
 0x10d   :  { %6032 = vtanh.f32 %v289_v18  ;;  %v4965_v21 = vmul.f32 -1.442695, %v289_v18 }
 0x10f   :  { %6034 = vpow2.f32 %v4965_v21  ;;  %v6551_v41 = vpop.f32.mrb[4].mxu0 }
 0x110   :  { %v6553_v42 = vpop.f32.mrb[5].mxu0 }
 0x111   :  { %v6555_v43 = vpop.f32.mrb[6].mxu0 }
 0x112   :  { %v6557_v44 = vpop.f32.mrb[7].mxu0 }
 0x117   :  { %v6033_v20 = vpop.eup %6032 }
 0x118   :  { %299 = vrot.lane.b32.xlu0 %v6033_v20, %s6341_s20 }
 0x119   :  { %v6035_v22 = vpop.eup %6034 }
 0x11a   :  { %v293_v23 = vadd.f32 1.0, %v6035_v22 }
 0x11c   :  { %6036 = vrcp.f32 %v293_v23 }
 0x126   :  { %v6037_v24 = vpop.eup %6036 }
 0x127   :  { %v297_v27 = vmul.f32 0.0, %v6037_v24 }
 0x18a   :  { %v300_v25 = vpop.permute.xlu0 %299 }
 0x18b   :  { %v302_v26 = vmul.f32 %v6037_v24, %v300_v25 }
 0x18d   :  { %304 = vrot.lane.b32.xlu0 %v302_v26, %s6342_s3 }
 0x1ff   :  { %v305_v28 = vpop.permute.xlu0 %304 }
 0x200   :  { %v6516_v29 = vadd.f32 %v305_v28, %v297_v27 }
 0x202   :  { %6038 = vtanh.f32 %v6516_v29 }
 0x20c   :  { %v6039_v38 = vpop.eup %6038 }
 0x20d   :  { %310 = vrot.lane.b32.xlu1 %v6039_v38, %s6341_s20 }
 0x27f   :  { %v311_v39 = vpop.permute.xlu1 %310 }
 0x280   :  { %v313_v40 = vmul.f32 %v6037_v24, %v311_v39 }
 0x282   :  { %317 = vrot.lane.b32.xlu1 %v313_v40, %s6342_s3 }
 0x2f4   :  { %v318_v50 = vpop.permute.xlu1 %317 }
 0x2f5   :  { %5302 = vmatmul.mubr.msk.f32.vlgmr.msra.gmra.mrb[2].mxu1 %vm215_vm2, %v318_v50  ;;  %5313 = vmatmul.mubr.msk.f32.vlgmr.msra.gmra.mrb[8].mxu0 %vm215_vm2, %v318_v50 }
 0x2f6   :  { %5761 = vmatpush3.bf16.msra.mxu0 %v6565_v47  ;;  %5323 = vmatprep.mubr.msk.f32.mxu0 %vm6339_vm0, %v6340_v1 }
 0x2f7   :  { %5762 = vmatprep.subr.bf16.mxu0 %v6338_v0  ;;  %5767 = vmatpush3.bf16.msra.mxu1 %v6472_v5 }
 0x2f8   :  { %5768 = vmatprep.subr.bf16.mxu1 %v6338_v0  ;;  %5334 = vmatprep.mubr.msk.f32.mxu1 %vm6339_vm0, %v6340_v1 }
 0x2fa   :  { %5764 = vmatpush3.bf16.msra.mxu0 %v6576_v51 }
 0x2fb   :  { %5770 = vmatpush3.bf16.msra.mxu1 %v6489_v10  ;;  %5783 = vmatprep.subr.bf16.mxu0 %v6338_v0 }
 0x2fc   :  { %5771 = vmatprep.subr.bf16.mxu1 %v6338_v0 }
 0x2fd   :  { %5324 = vmatmul.mubr.f32.vlgmr.msra.gmra.mrb[8].mxu0 %v6340_v1 }
 0x2fe   :  { %5785 = vmatpush3.bf16.msra.mxu0 %v6472_v5  ;;  %5367 = vmatprep.mubr.msk.f32.mxu0 %vm6339_vm0, %v6340_v1 }
 0x2ff   :  { %5786 = vmatprep.subr.bf16.mxu0 %v6338_v0 }
 0x302   :  { %5788 = vmatpush3.bf16.msra.mxu0 %v6489_v10 }
 0x303   :  { %5789 = vmatprep.subr.bf16.mxu0 %v6338_v0 }
 0x3c8   :  { %v387_v53 = vpop.f32.mrb[2].mxu1 }
 0x3c9   :  { %v391_v54 = vadd.f32 %v387_v53, %v175_v52  ;;  %v5303_v55 = vpop.f32.mrb[3].mxu1 }
 0x3cb   :  { %6040 = vtanh.f32 %v391_v54  ;;  %v4967_v62 = vmul.f32 -1.442695, %v391_v54 }
 0x3d0   :  { %v567_v57 = vpop.f32.mrb[8].mxu0 }
 0x3d1   :  { %v5969_v58 = vadd.f32 %v6601_v56, %v567_v57  ;;  %v5325_v59 = vpop.f32.mrb[9].mxu0 }
 0x3d3   :  { %6042 = vtanh.f32 %v5969_v58  ;;  %v4970_v63 = vmul.f32 -1.442695, %v5969_v58 }
 0x3d4   :  { %6044 = vpow2.f32 %v4967_v62 }
 0x3d5   :  { %v6041_v60 = vpop.eup %6040  ;;  %6046 = vpow2.f32 %v4970_v63 }
 0x3d6   :  { %401 = vrot.lane.b32.xlu0 %v6041_v60, %s6341_s20 }
 0x3dd   :  { %v6043_v61 = vpop.eup %6042 }
 0x3de   :  { %581 = vrot.lane.b32.xlu1 %v6043_v61, %s6341_s20  ;;  %v6045_v2 = vpop.eup %6044 }
 0x3df   :  { %v395_v3 = vadd.f32 1.0, %v6045_v2  ;;  %v6047_v4 = vpop.eup %6046 }
 0x3e0   :  { %v575_v6 = vadd.f32 1.0, %v6047_v4 }
 0x3e1   :  { %6048 = vrcp.f32 %v395_v3 }
 0x3e2   :  { %6050 = vrcp.f32 %v575_v6 }
 0x3eb   :  { %v6049_v7 = vpop.eup %6048 }
 0x3ec   :  { %v6051_v13 = vpop.eup %6050  ;;  %v399_v17 = vmul.f32 %v6049_v7, %v6516_v29 }
 0x3ed   :  { %v579_v20 = vmul.f32 0.0, %v6051_v13 }
 0x448   :  { %v402_v8 = vpop.permute.xlu0 %401 }
 0x449   :  { %v404_v9 = vmul.f32 %v6049_v7, %v402_v8 }
 0x44b   :  { %406 = vrot.lane.b32.xlu0 %v404_v9, %s6342_s3 }
 0x450   :  { %v582_v14 = vpop.permute.xlu1 %581 }
 0x451   :  { %v584_v16 = vmul.f32 %v6051_v13, %v582_v14 }
 0x453   :  { %586 = vrot.lane.b32.xlu1 %v584_v16, %s6342_s3 }
 0x4bd   :  { %v407_v18 = vpop.permute.xlu0 %406 }
 0x4be   :  { %v6609_v19 = vadd.f32 %v407_v18, %v399_v17  ;;  %v183_v17 = vadd.f32 %v6510_v15, %v6505_v11 }
 0x4c0   :  { %6052 = vtanh.f32 %v6609_v19 }
 0x4c5   :  { %v587_v21 = vpop.permute.xlu1 %586 }
 0x4c6   :  { %v6612_v22 = vadd.f32 %v587_v21, %v579_v20 }
 0x4c8   :  { %6054 = vtanh.f32 %v6612_v22 }
 0x4ca   :  { %v6053_v23 = vpop.eup %6052 }
 0x4cb   :  { %412 = vrot.lane.b32.xlu0 %v6053_v23, %s6341_s20 }
 0x4d2   :  { %v6055_v24 = vpop.eup %6054 }
 0x4d3   :  { %592 = vrot.lane.b32.xlu1 %v6055_v24, %s6341_s20 }
 0x53d   :  { %v413_v25 = vpop.permute.xlu0 %412 }
 0x53e   :  { %v415_v26 = vmul.f32 %v6049_v7, %v413_v25 }
 0x540   :  { %599 = vrot.lane.b32.xlu0 %v415_v26, %s6342_s3 }
 0x545   :  { %v593_v27 = vpop.permute.xlu1 %592 }
 0x546   :  { %v595_v28 = vmul.f32 %v6051_v13, %v593_v27 }
 0x548   :  { %769 = vrot.lane.b32.xlu1 %v595_v28, %s6342_s3 }
 0x5b2   :  { %v600_v29 = vpop.permute.xlu0 %599 }
 0x5b3   :  { %5335 = vmatmul.mubr.msk.f32.vlgmr.msra.gmra.mrb[4].mxu1 %vm215_vm2, %v600_v29 }
 0x5b4   :  { %5773 = vmatpush3.bf16.msra.mxu1 %v6538_v36  ;;  %5345 = vmatprep.mubr.msk.f32.mxu1 %vm6339_vm0, %v6340_v1 }
 0x5b5   :  { %5774 = vmatprep.subr.bf16.mxu1 %v6338_v0 }
 0x5b8   :  { %5776 = vmatpush3.bf16.msra.mxu1 %v6542_v37 }
 0x5b9   :  { %5777 = vmatprep.subr.bf16.mxu1 %v6338_v0 }
 0x5ba   :  { %v770_v30 = vpop.permute.xlu1 %769 }
 0x5bb   :  { %5346 = vmatmul.mubr.msk.f32.vlgmr.msra.gmra.mrb[6].mxu1 %vm215_vm2, %v600_v29 }
 0x5bc   :  { %5779 = vmatpush3.bf16.msra.mxu1 %v6565_v47  ;;  %5356 = vmatprep.mubr.msk.f32.mxu1 %vm6339_vm0, %v6340_v1 }
 0x5bd   :  { %5780 = vmatprep.subr.bf16.mxu1 %v6338_v0 }
 0x5c0   :  { %5782 = vmatpush3.bf16.msra.mxu1 %v6576_v51 }
 0x5c1   :  { %5801 = vmatprep.subr.bf16.mxu1 %v6338_v0 }
 0x5c3   :  { %5357 = vmatmul.mubr.msk.f32.vlgmr.msra.gmra.mrb[6].mxu1 %vm215_vm2, %v770_v30 }
 0x5c4   :  { %5803 = vmatpush3.bf16.msra.mxu1 %v6472_v5  ;;  %5400 = vmatprep.mubr.msk.f32.mxu1 %vm6339_vm0, %v6340_v1 }
 0x5c5   :  { %5804 = vmatprep.subr.bf16.mxu1 %v6338_v0 }
 0x5c8   :  { %5806 = vmatpush3.bf16.msra.mxu1 %v6489_v10 }
 0x5c9   :  { %5807 = vmatprep.subr.bf16.mxu1 %v6338_v0 }
 0x686   :  { %v669_v32 = vpop.f32.mrb[4].mxu1 }
 0x687   :  { %v673_v33 = vadd.f32 %v669_v32, %v180_v31  ;;  %v5336_v34 = vpop.f32.mrb[5].mxu1 }
 0x689   :  { %6056 = vtanh.f32 %v673_v33  ;;  %v4972_v46 = vmul.f32 -1.442695, %v673_v33 }
 0x693   :  { %v6057_v35 = vpop.eup %6056 }
 0x694   :  { %683 = vrot.lane.b32.xlu0 %v6057_v35, %s6341_s20 }
 0x696   :  { %v839_v38 = vpop.f32.mrb[6].mxu1 }
 0x697   :  { %v5970_v39 = vadd.f32 %v6601_v56, %v839_v38  ;;  %v5358_v40 = vpop.f32.mrb[7].mxu1 }
 0x699   :  { %6058 = vtanh.f32 %v5970_v39  ;;  %v4975_v49 = vmul.f32 -1.442695, %v5970_v39 }
 0x69a   :  { %6060 = vpow2.f32 %v4972_v46 }
 0x69b   :  { %6062 = vpow2.f32 %v4975_v49 }
 0x6a3   :  { %v6059_v45 = vpop.eup %6058 }
 0x6a4   :  { %853 = vrot.lane.b32.xlu1 %v6059_v45, %s6341_s20  ;;  %v6061_v48 = vpop.eup %6060 }
 0x6a5   :  { %v677_v12 = vadd.f32 1.0, %v6061_v48  ;;  %v6063_v50 = vpop.eup %6062 }
 0x6a6   :  { %v847_v55 = vadd.f32 1.0, %v6063_v50 }
 0x6a7   :  { %6064 = vrcp.f32 %v677_v12 }
 0x6a8   :  { %6066 = vrcp.f32 %v847_v55 }
 0x6b1   :  { %v6065_v52 = vpop.eup %6064 }
 0x6b2   :  { %v6067_v57 = vpop.eup %6066  ;;  %v681_v60 = vmul.f32 %v6065_v52, %v6609_v19 }
 0x6b3   :  { %v851_v2 = vmul.f32 %v6067_v57, %v6612_v22 }
 0x706   :  { %v684_v53 = vpop.permute.xlu0 %683 }
 0x707   :  { %v686_v54 = vmul.f32 %v6065_v52, %v684_v53 }
 0x709   :  { %688 = vrot.lane.b32.xlu0 %v686_v54, %s6342_s3 }
 0x716   :  { %v854_v58 = vpop.permute.xlu1 %853 }
 0x717   :  { %v856_v59 = vmul.f32 %v6067_v57, %v854_v58 }
 0x719   :  { %858 = vrot.lane.b32.xlu1 %v856_v59, %s6342_s3  ;;  %v188_v59 = vadd.f32 %v6505_v11, %v6553_v42 }
 0x77b   :  { %v689_v61 = vpop.permute.xlu0 %688 }
 0x77c   :  { %v6648_v62 = vadd.f32 %v689_v61, %v681_v60 }
 0x77e   :  { %6068 = vtanh.f32 %v6648_v62 }
 0x788   :  { %v6069_v63 = vpop.eup %6068 }
 0x789   :  { %694 = vrot.lane.b32.xlu0 %v6069_v63, %s6341_s20 }
 0x78b   :  { %v859_v3 = vpop.permute.xlu1 %858 }
 0x78c   :  { %v6653_v4 = vadd.f32 %v859_v3, %v851_v2 }
 0x78e   :  { %6070 = vtanh.f32 %v6653_v4 }
 0x798   :  { %v6071_v6 = vpop.eup %6070 }
 0x799   :  { %864 = vrot.lane.b32.xlu1 %v6071_v6, %s6341_s20 }
 0x7fb   :  { %v695_v7 = vpop.permute.xlu0 %694 }
 0x7fc   :  { %v697_v8 = vmul.f32 %v6065_v52, %v695_v7 }
 0x7fe   :  { %871 = vrot.lane.b32.xlu0 %v697_v8, %s6342_s3 }
 0x80b   :  { %v865_v9 = vpop.permute.xlu1 %864 }
 0x80c   :  { %v867_v13 = vmul.f32 %v6067_v57, %v865_v9 }
 0x80e   :  { %1041 = vrot.lane.b32.xlu1 %v867_v13, %s6342_s3 }
 0x870   :  { %v872_v14 = vpop.permute.xlu0 %871 }
 0x871   :  { %5368 = vmatmul.mubr.msk.f32.vlgmr.msra.gmra.mrb[10].mxu0 %vm215_vm2, %v872_v14 }
 0x872   :  { %5791 = vmatpush3.bf16.msra.mxu0 %v6538_v36  ;;  %5378 = vmatprep.mubr.msk.f32.mxu0 %vm6339_vm0, %v6340_v1 }
 0x873   :  { %5792 = vmatprep.subr.bf16.mxu0 %v6338_v0 }
 0x876   :  { %5794 = vmatpush3.bf16.msra.mxu0 %v6542_v37 }
 0x877   :  { %5795 = vmatprep.subr.bf16.mxu0 %v6338_v0 }
 0x879   :  { %5379 = vmatmul.mubr.msk.f32.vlgmr.msra.gmra.mrb[12].mxu0 %vm215_vm2, %v872_v14 }
 0x87a   :  { %5797 = vmatpush3.bf16.msra.mxu0 %v6565_v47  ;;  %5389 = vmatprep.mubr.msk.f32.mxu0 %vm6339_vm0, %v6340_v1 }
 0x87b   :  { %5798 = vmatprep.subr.bf16.mxu0 %v6338_v0 }
 0x87e   :  { %5800 = vmatpush3.bf16.msra.mxu0 %v6576_v51 }
 0x87f   :  { %5819 = vmatprep.subr.bf16.mxu0 %v6338_v0 }
 0x880   :  { %v1042_v16 = vpop.permute.xlu1 %1041 }
 0x881   :  { %5390 = vmatmul.mubr.msk.f32.vlgmr.msra.gmra.mrb[12].mxu0 %vm215_vm2, %v1042_v16 }
 0x882   :  { %5821 = vmatpush3.bf16.msra.mxu0 %v6472_v5  ;;  %5433 = vmatprep.mubr.msk.f32.mxu0 %vm6339_vm0, %v6340_v1 }
 0x883   :  { %5822 = vmatprep.subr.bf16.mxu0 %v6338_v0 }
 0x886   :  { %5824 = vmatpush3.bf16.msra.mxu0 %v6489_v10 }
 0x887   :  { %5825 = vmatprep.subr.bf16.mxu0 %v6338_v0 }
 0x944   :  { %v941_v18 = vpop.f32.mrb[10].mxu0 }
 0x945   :  { %v945_v19 = vadd.f32 %v941_v18, %v183_v17  ;;  %v5369_v20 = vpop.f32.mrb[11].mxu0 }
 0x947   :  { %6072 = vtanh.f32 %v945_v19  ;;  %v4977_v26 = vmul.f32 -1.442695, %v945_v19 }
 0x951   :  { %v6073_v21 = vpop.eup %6072 }
 0x952   :  { %955 = vrot.lane.b32.xlu0 %v6073_v21, %s6341_s20 }
 0x954   :  { %v1111_v22 = vpop.f32.mrb[12].mxu0 }
 0x955   :  { %v5971_v23 = vadd.f32 %v6601_v56, %v1111_v22  ;;  %v5391_v24 = vpop.f32.mrb[13].mxu0 }
 0x957   :  { %6074 = vtanh.f32 %v5971_v23  ;;  %v4980_v28 = vmul.f32 -1.442695, %v5971_v23 }
 0x958   :  { %6076 = vpow2.f32 %v4977_v26 }
 0x959   :  { %6078 = vpow2.f32 %v4980_v28 }
 0x961   :  { %v6075_v25 = vpop.eup %6074 }
 0x962   :  { %1125 = vrot.lane.b32.xlu1 %v6075_v25, %s6341_s20  ;;  %v6077_v27 = vpop.eup %6076 }
 0x963   :  { %v949_v15 = vadd.f32 1.0, %v6077_v27  ;;  %v6079_v29 = vpop.eup %6078 }
 0x964   :  { %v1119_v33 = vadd.f32 1.0, %v6079_v29 }
 0x965   :  { %6080 = vrcp.f32 %v949_v15 }
 0x966   :  { %6082 = vrcp.f32 %v1119_v33 }
 0x96f   :  { %v6081_v30 = vpop.eup %6080 }
 0x970   :  { %v6083_v34 = vpop.eup %6082  ;;  %v953_v39 = vmul.f32 %v6081_v30, %v6648_v62 }
 0x971   :  { %v1123_v48 = vmul.f32 %v6083_v34, %v6653_v4 }
 0x9c4   :  { %v956_v31 = vpop.permute.xlu0 %955 }
 0x9c5   :  { %v958_v32 = vmul.f32 %v6081_v30, %v956_v31 }
 0x9c7   :  { %960 = vrot.lane.b32.xlu0 %v958_v32, %s6342_s3 }
 0x9d4   :  { %v1126_v35 = vpop.permute.xlu1 %1125 }
 0x9d5   :  { %v1128_v38 = vmul.f32 %v6083_v34, %v1126_v35  ;;  %v191_v35 = vadd.f32 %v6505_v11, %v6557_v44 }
 0x9d7   :  { %1130 = vrot.lane.b32.xlu1 %v1128_v38, %s6342_s3 }
 0xa39   :  { %v961_v40 = vpop.permute.xlu0 %960 }
 0xa3a   :  { %v6688_v45 = vadd.f32 %v961_v40, %v953_v39 }
 0xa3c   :  { %6084 = vtanh.f32 %v6688_v45 }
 0xa46   :  { %v6085_v46 = vpop.eup %6084 }
 0xa47   :  { %966 = vrot.lane.b32.xlu0 %v6085_v46, %s6341_s20 }
 0xa49   :  { %v1131_v49 = vpop.permute.xlu1 %1130 }
 0xa4a   :  { %v6693_v12 = vadd.f32 %v1131_v49, %v1123_v48 }
 0xa4c   :  { %6086 = vtanh.f32 %v6693_v12 }
 0xa56   :  { %v6087_v50 = vpop.eup %6086 }
 0xa57   :  { %1136 = vrot.lane.b32.xlu1 %v6087_v50, %s6341_s20 }
 0xab9   :  { %v967_v52 = vpop.permute.xlu0 %966 }
 0xaba   :  { %v969_v53 = vmul.f32 %v6081_v30, %v967_v52 }
 0xabc   :  { %1143 = vrot.lane.b32.xlu0 %v969_v53, %s6342_s3 }
 0xac9   :  { %v1137_v54 = vpop.permute.xlu1 %1136 }
 0xaca   :  { %v1139_v55 = vmul.f32 %v6083_v34, %v1137_v54 }
 0xacc   :  { %1313 = vrot.lane.b32.xlu1 %v1139_v55, %s6342_s3 }
 0xb2e   :  { %v1144_v57 = vpop.permute.xlu0 %1143 }
 0xb2f   :  { %5401 = vmatmul.mubr.msk.f32.vlgmr.msra.gmra.mrb[8].mxu1 %vm215_vm2, %v1144_v57 }
 0xb30   :  { %5809 = vmatpush3.bf16.msra.mxu1 %v6538_v36  ;;  %5411 = vmatprep.mubr.msk.f32.mxu1 %vm6339_vm0, %v6340_v1 }
 0xb31   :  { %5810 = vmatprep.subr.bf16.mxu1 %v6338_v0 }
 0xb34   :  { %5812 = vmatpush3.bf16.msra.mxu1 %v6542_v37 }
 0xb35   :  { %5813 = vmatprep.subr.bf16.mxu1 %v6338_v0 }
 0xb37   :  { %5412 = vmatmul.mubr.msk.f32.vlgmr.msra.gmra.mrb[10].mxu1 %vm215_vm2, %v1144_v57 }
 0xb38   :  { %5815 = vmatpush3.bf16.msra.mxu1 %v6565_v47  ;;  %5422 = vmatprep.mubr.msk.f32.mxu1 %vm6339_vm0, %v6340_v1 }
 0xb39   :  { %5816 = vmatprep.subr.bf16.mxu1 %v6338_v0 }
 0xb3c   :  { %5818 = vmatpush3.bf16.msra.mxu1 %v6576_v51 }
 0xb3d   :  { %5837 = vmatprep.subr.bf16.mxu1 %v6338_v0 }
 0xb3e   :  { %v1314_v58 = vpop.permute.xlu1 %1313 }
 0xb3f   :  { %5423 = vmatmul.mubr.msk.f32.vlgmr.msra.gmra.mrb[10].mxu1 %vm215_vm2, %v1314_v58 }
 0xb40   :  { %5839 = vmatpush3.bf16.msra.mxu1 %v6472_v5  ;;  %5466 = vmatprep.mubr.msk.f32.mxu1 %vm6339_vm0, %v6340_v1 }
 0xb41   :  { %5840 = vmatprep.subr.bf16.mxu1 %v6338_v0 }
 0xb44   :  { %5842 = vmatpush3.bf16.msra.mxu1 %v6489_v10 }
 0xb45   :  { %5843 = vmatprep.subr.bf16.mxu1 %v6338_v0 }
 0xc02   :  { %v1213_v60 = vpop.f32.mrb[8].mxu1 }
 0xc03   :  { %v1217_v61 = vadd.f32 %v1213_v60, %v188_v59  ;;  %v5402_v62 = vpop.f32.mrb[9].mxu1 }
 0xc05   :  { %6088 = vtanh.f32 %v1217_v61  ;;  %v4982_v7 = vmul.f32 -1.442695, %v1217_v61 }
 0xc0f   :  { %v6089_v63 = vpop.eup %6088 }
 0xc10   :  { %1227 = vrot.lane.b32.xlu0 %v6089_v63, %s6341_s20 }
 0xc12   :  { %v1383_v2 = vpop.f32.mrb[10].mxu1 }
 0xc13   :  { %v5972_v3 = vadd.f32 %v6601_v56, %v1383_v2  ;;  %v5424_v4 = vpop.f32.mrb[11].mxu1 }
 0xc15   :  { %6090 = vtanh.f32 %v5972_v3  ;;  %v4985_v9 = vmul.f32 -1.442695, %v5972_v3 }
 0xc16   :  { %6092 = vpow2.f32 %v4982_v7 }
 0xc17   :  { %6094 = vpow2.f32 %v4985_v9 }
 0xc1f   :  { %v6091_v6 = vpop.eup %6090 }
 0xc20   :  { %1397 = vrot.lane.b32.xlu1 %v6091_v6, %s6341_s20  ;;  %v6093_v8 = vpop.eup %6092 }
 0xc21   :  { %v1221_v42 = vadd.f32 1.0, %v6093_v8  ;;  %v6095_v13 = vpop.eup %6094 }
 0xc22   :  { %v1391_v18 = vadd.f32 1.0, %v6095_v13 }
 0xc23   :  { %6096 = vrcp.f32 %v1221_v42 }
 0xc24   :  { %6098 = vrcp.f32 %v1391_v18 }
 0xc2d   :  { %v6097_v14 = vpop.eup %6096 }
 0xc2e   :  { %v6099_v19 = vpop.eup %6098  ;;  %v1225_v22 = vmul.f32 %v6097_v14, %v6688_v45 }
 0xc2f   :  { %v1395_v26 = vmul.f32 %v6099_v19, %v6693_v12 }
 0xc82   :  { %v1228_v16 = vpop.permute.xlu0 %1227 }
 0xc83   :  { %v1230_v17 = vmul.f32 %v6097_v14, %v1228_v16 }
 0xc85   :  { %1232 = vrot.lane.b32.xlu0 %v1230_v17, %s6342_s3  ;;  %v196_v17 = vadd.f32 %v6551_v41, %v6505_v11 }
 0xc92   :  { %v1398_v20 = vpop.permute.xlu1 %1397 }
 0xc93   :  { %v1400_v21 = vmul.f32 %v6099_v19, %v1398_v20 }
 0xc95   :  { %1402 = vrot.lane.b32.xlu1 %v1400_v21, %s6342_s3 }
 0xcf7   :  { %v1233_v23 = vpop.permute.xlu0 %1232 }
 0xcf8   :  { %v6728_v24 = vadd.f32 %v1233_v23, %v1225_v22 }
 0xcfa   :  { %6100 = vtanh.f32 %v6728_v24 }
 0xd04   :  { %v6101_v25 = vpop.eup %6100 }
 0xd05   :  { %1238 = vrot.lane.b32.xlu0 %v6101_v25, %s6341_s20 }
 0xd07   :  { %v1403_v27 = vpop.permute.xlu1 %1402 }
 0xd08   :  { %v6733_v28 = vadd.f32 %v1403_v27, %v1395_v26 }
 0xd0a   :  { %6102 = vtanh.f32 %v6733_v28 }
 0xd14   :  { %v6103_v15 = vpop.eup %6102 }
 0xd15   :  { %1408 = vrot.lane.b32.xlu1 %v6103_v15, %s6341_s20 }
 0xd77   :  { %v1239_v29 = vpop.permute.xlu0 %1238 }
 0xd78   :  { %v1241_v30 = vmul.f32 %v6097_v14, %v1239_v29 }
 0xd7a   :  { %1415 = vrot.lane.b32.xlu0 %v1241_v30, %s6342_s3 }
 0xd87   :  { %v1409_v31 = vpop.permute.xlu1 %1408 }
 0xd88   :  { %v1411_v32 = vmul.f32 %v6099_v19, %v1409_v31 }
 0xd8a   :  { %1585 = vrot.lane.b32.xlu1 %v1411_v32, %s6342_s3 }
 0xdec   :  { %v1416_v33 = vpop.permute.xlu0 %1415 }
 0xded   :  { %5434 = vmatmul.mubr.msk.f32.vlgmr.msra.gmra.mrb[14].mxu0 %vm215_vm2, %v1416_v33 }
 0xdee   :  { %5827 = vmatpush3.bf16.msra.mxu0 %v6538_v36  ;;  %5444 = vmatprep.mubr.msk.f32.mxu0 %vm6339_vm0, %v6340_v1 }
 0xdef   :  { %5828 = vmatprep.subr.bf16.mxu0 %v6338_v0 }
 0xdf2   :  { %5830 = vmatpush3.bf16.msra.mxu0 %v6542_v37 }
 0xdf3   :  { %5831 = vmatprep.subr.bf16.mxu0 %v6338_v0 }
 0xdf5   :  { %5445 = vmatmul.mubr.msk.f32.vlgmr.msra.gmra.mrb[16].mxu0 %vm215_vm2, %v1416_v33 }
 0xdf6   :  { %5833 = vmatpush3.bf16.msra.mxu0 %v6565_v47  ;;  %5455 = vmatprep.mubr.msk.f32.mxu0 %vm6339_vm0, %v6340_v1 }
 0xdf7   :  { %5834 = vmatprep.subr.bf16.mxu0 %v6338_v0 }
 0xdfa   :  { %5836 = vmatpush3.bf16.msra.mxu0 %v6576_v51 }
 0xdfb   :  { %5855 = vmatprep.subr.bf16.mxu0 %v6338_v0 }
 0xdfc   :  { %v1586_v34 = vpop.permute.xlu1 %1585 }
 0xdfd   :  { %5456 = vmatmul.mubr.msk.f32.vlgmr.msra.gmra.mrb[16].mxu0 %vm215_vm2, %v1586_v34 }
 0xdfe   :  { %5857 = vmatpush3.bf16.msra.mxu0 %v6472_v5  ;;  %5499 = vmatprep.mubr.msk.f32.mxu0 %vm6339_vm0, %v6340_v1 }
 0xdff   :  { %5858 = vmatprep.subr.bf16.mxu0 %v6338_v0 }
 0xe02   :  { %5860 = vmatpush3.bf16.msra.mxu0 %v6489_v10 }
 0xe03   :  { %5861 = vmatprep.subr.bf16.mxu0 %v6338_v0 }
 0xec0   :  { %v1485_v38 = vpop.f32.mrb[14].mxu0 }
 0xec1   :  { %v1489_v39 = vadd.f32 %v1485_v38, %v191_v35  ;;  %v5435_v40 = vpop.f32.mrb[15].mxu0 }
 0xec3   :  { %6104 = vtanh.f32 %v1489_v39  ;;  %v4987_v10 = vmul.f32 -1.442695, %v1489_v39 }
 0xecd   :  { %v6105_v45 = vpop.eup %6104 }
 0xece   :  { %1499 = vrot.lane.b32.xlu0 %v6105_v45, %s6341_s20 }
 0xed0   :  { %v1655_v5 = vpop.f32.mrb[16].mxu0 }
 0xed1   :  { %v5973_v46 = vadd.f32 %v6601_v56, %v1655_v5  ;;  %v5457_v48 = vpop.f32.mrb[17].mxu0 }
 0xed3   :  { %6106 = vtanh.f32 %v5973_v46  ;;  %v4990_v50 = vmul.f32 -1.442695, %v5973_v46 }
 0xed4   :  { %6108 = vpow2.f32 %v4987_v10 }
 0xed5   :  { %6110 = vpow2.f32 %v4990_v50 }
 0xedd   :  { %v6107_v49 = vpop.eup %6106 }
 0xede   :  { %1669 = vrot.lane.b32.xlu1 %v6107_v49, %s6341_s20  ;;  %v6109_v12 = vpop.eup %6108 }
 0xedf   :  { %v1493_v44 = vadd.f32 1.0, %v6109_v12  ;;  %v6111_v52 = vpop.eup %6110 }
 0xee0   :  { %v1663_v57 = vadd.f32 1.0, %v6111_v52 }
 0xee1   :  { %6112 = vrcp.f32 %v1493_v44 }
 0xee2   :  { %6114 = vrcp.f32 %v1663_v57 }
 0xeeb   :  { %v6113_v53 = vpop.eup %6112 }
 0xeec   :  { %v6115_v58 = vpop.eup %6114  ;;  %v1497_v61 = vmul.f32 %v6113_v53, %v6728_v24 }
 0xeed   :  { %v1667_v3 = vmul.f32 %v6115_v58, %v6733_v28 }
 0xf40   :  { %v1500_v54 = vpop.permute.xlu0 %1499 }
 0xf41   :  { %v1502_v55 = vmul.f32 %v6113_v53, %v1500_v54 }
 0xf43   :  { %1504 = vrot.lane.b32.xlu0 %v1502_v55, %s6342_s3 }
 0xf50   :  { %v1670_v59 = vpop.permute.xlu1 %1669 }
 0xf51   :  { %v1672_v60 = vmul.f32 %v6115_v58, %v1670_v59 }
 0xf53   :  { %1674 = vrot.lane.b32.xlu1 %v1672_v60, %s6342_s3 }
 0xfb5   :  { %v1505_v62 = vpop.permute.xlu0 %1504 }
 0xfb6   :  { %v6768_v63 = vadd.f32 %v1505_v62, %v1497_v61 }
 0xfb8   :  { %6116 = vtanh.f32 %v6768_v63 }
 0xfc2   :  { %v6117_v2 = vpop.eup %6116 }
 0xfc3   :  { %1510 = vrot.lane.b32.xlu0 %v6117_v2, %s6341_s20 }
 0xfc5   :  { %v1675_v4 = vpop.permute.xlu1 %1674 }
 0xfc6   :  { %v6773_v6 = vadd.f32 %v1675_v4, %v1667_v3 }
 0xfc8   :  { %6118 = vtanh.f32 %v6773_v6 }
 0xfd2   :  { %v6119_v7 = vpop.eup %6118 }
 0xfd3   :  { %1680 = vrot.lane.b32.xlu1 %v6119_v7, %s6341_s20 }
0x1035   :  { %v1511_v8 = vpop.permute.xlu0 %1510 }
0x1036   :  { %v1513_v9 = vmul.f32 %v6113_v53, %v1511_v8 }
0x1038   :  { %1687 = vrot.lane.b32.xlu0 %v1513_v9, %s6342_s3 }
0x1045   :  { %v1681_v42 = vpop.permute.xlu1 %1680 }
0x1046   :  { %v1683_v13 = vmul.f32 %v6115_v58, %v1681_v42 }
0x1048   :  { %1857 = vrot.lane.b32.xlu1 %v1683_v13, %s6342_s3 }
0x10aa   :  { %v1688_v14 = vpop.permute.xlu0 %1687 }
0x10ab   :  { %5467 = vmatmul.mubr.msk.f32.vlgmr.msra.gmra.mrb[12].mxu1 %vm215_vm2, %v1688_v14 }
0x10ac   :  { %5845 = vmatpush3.bf16.msra.mxu1 %v6538_v36  ;;  %5477 = vmatprep.mubr.msk.f32.mxu1 %vm6339_vm0, %v6340_v1 }
0x10ad   :  { %5846 = vmatprep.subr.bf16.mxu1 %v6338_v0 }
0x10b0   :  { %5848 = vmatpush3.bf16.msra.mxu1 %v6542_v37 }
0x10b1   :  { %5849 = vmatprep.subr.bf16.mxu1 %v6338_v0 }
0x10b3   :  { %5478 = vmatmul.mubr.msk.f32.vlgmr.msra.gmra.mrb[14].mxu1 %vm215_vm2, %v1688_v14 }
0x10b4   :  { %5851 = vmatpush3.bf16.msra.mxu1 %v6565_v47  ;;  %5488 = vmatprep.mubr.msk.f32.mxu1 %vm6339_vm0, %v6340_v1 }
0x10b5   :  { %5852 = vmatprep.subr.bf16.mxu1 %v6338_v0 }
0x10b8   :  { %5854 = vmatpush3.bf16.msra.mxu1 %v6576_v51 }
0x10b9   :  { %5873 = vmatprep.subr.bf16.mxu1 %v6338_v0 }
0x10ba   :  { %v1858_v16 = vpop.permute.xlu1 %1857 }
0x10bb   :  { %5489 = vmatmul.mubr.msk.f32.vlgmr.msra.gmra.mrb[14].mxu1 %vm215_vm2, %v1858_v16 }
0x10bc   :  { %5875 = vmatpush3.bf16.msra.mxu1 %v6538_v36  ;;  %5532 = vmatprep.mubr.msk.f32.mxu1 %vm6339_vm0, %v6340_v1 }
0x10bd   :  { %5876 = vmatprep.subr.bf16.mxu1 %v6338_v0 }
0x10c0   :  { %5878 = vmatpush3.bf16.msra.mxu1 %v6542_v37 }
0x10c1   :  { %5879 = vmatprep.subr.bf16.mxu1 %v6338_v0 }
0x117e   :  { %v1757_v18 = vpop.f32.mrb[12].mxu1 }
0x117f   :  { %v1761_v19 = vadd.f32 %v1757_v18, %v196_v17  ;;  %v5468_v20 = vpop.f32.mrb[13].mxu1 }
0x1181   :  { %6120 = vtanh.f32 %v1761_v19  ;;  %v4992_v26 = vmul.f32 -1.442695, %v1761_v19 }
0x118b   :  { %v6121_v21 = vpop.eup %6120 }
0x118c   :  { %1771 = vrot.lane.b32.xlu0 %v6121_v21, %s6341_s20 }
0x118e   :  { %v1927_v22 = vpop.f32.mrb[14].mxu1 }
0x118f   :  { %v5974_v23 = vadd.f32 %v6601_v56, %v1927_v22  ;;  %v5490_v24 = vpop.f32.mrb[15].mxu1 }
0x1191   :  { %6122 = vtanh.f32 %v5974_v23  ;;  %v4995_v28 = vmul.f32 -1.442695, %v5974_v23 }
0x1192   :  { %6124 = vpow2.f32 %v4992_v26 }
0x1193   :  { %6126 = vpow2.f32 %v4995_v28 }
0x119b   :  { %v6123_v25 = vpop.eup %6122 }
0x119c   :  { %1941 = vrot.lane.b32.xlu1 %v6123_v25, %s6341_s20  ;;  %v6125_v27 = vpop.eup %6124 }
0x119d   :  { %v1765_v41 = vadd.f32 1.0, %v6125_v27  ;;  %v6127_v15 = vpop.eup %6126 }
0x119e   :  { %v1935_v32 = vadd.f32 1.0, %v6127_v15 }
0x119f   :  { %6128 = vrcp.f32 %v1765_v41 }
0x11a0   :  { %6130 = vrcp.f32 %v1935_v32 }
0x11a9   :  { %v6129_v29 = vpop.eup %6128 }
0x11aa   :  { %v6131_v33 = vpop.eup %6130  ;;  %v1769_v38 = vmul.f32 %v6129_v29, %v6768_v63 }
0x11ab   :  { %v1939_v5 = vmul.f32 %v6131_v33, %v6773_v6 }
0x11fe   :  { %v1772_v30 = vpop.permute.xlu0 %1771 }
0x11ff   :  { %v1774_v31 = vmul.f32 %v6129_v29, %v1772_v30 }
0x1201   :  { %1776 = vrot.lane.b32.xlu0 %v1774_v31, %s6342_s3 }
0x120e   :  { %v1942_v34 = vpop.permute.xlu1 %1941 }
0x120f   :  { %v1944_v35 = vmul.f32 %v6131_v33, %v1942_v34 }
0x1211   :  { %1946 = vrot.lane.b32.xlu1 %v1944_v35, %s6342_s3 }
0x1273   :  { %v1777_v39 = vpop.permute.xlu0 %1776 }
0x1274   :  { %v6808_v40 = vadd.f32 %v1777_v39, %v1769_v38  ;;  %v2404_v39 = vld [vmem:[%s7171_s7 + $0x8] sm:$0xff] }
0x1276   :  { %6132 = vtanh.f32 %v6808_v40 }
0x1280   :  { %v6133_v45 = vpop.eup %6132 }
0x1281   :  { %1782 = vrot.lane.b32.xlu0 %v6133_v45, %s6341_s20 }
0x1283   :  { %v1947_v46 = vpop.permute.xlu1 %1946 }
0x1284   :  { %v6813_v48 = vadd.f32 %v1947_v46, %v1939_v5  ;;  %v2406_v5 = vld [vmem:[%s7171_s7 + $0x18] sm:$0xff] }
0x1286   :  { %6134 = vtanh.f32 %v6813_v48 }
0x1290   :  { %v6135_v49 = vpop.eup %6134 }
0x1291   :  { %1952 = vrot.lane.b32.xlu1 %v6135_v49, %s6341_s20 }
0x12f3   :  { %v1783_v10 = vpop.permute.xlu0 %1782 }
0x12f4   :  { %v1785_v12 = vmul.f32 %v6129_v29, %v1783_v10 }
0x12f6   :  { %1959 = vrot.lane.b32.xlu0 %v1785_v12, %s6342_s3 }
0x1303   :  { %v1953_v50 = vpop.permute.xlu1 %1952 }
0x1304   :  { %v1955_v44 = vmul.f32 %v6131_v33, %v1953_v50  ;;  %v2489_v50 = vld [vmem:[%s7173_s9] sm:$0xff] }
0x1306   :  { %2129 = vrot.lane.b32.xlu1 %v1955_v44, %s6342_s3  ;;  %v2571_v44 = vld [vmem:[%s7175_s11] sm:$0xff] }
0x1368   :  { %v1960_v52 = vpop.permute.xlu0 %1959 }
0x1369   :  { %5500 = vmatmul.mubr.msk.f32.vlgmr.msra.gmra.mrb[18].mxu0 %vm215_vm2, %v1960_v52 }
0x136a   :  { %5863 = vmatpush3.bf16.msra.mxu0 %v6538_v36  ;;  %5510 = vmatprep.mubr.msk.f32.mxu0 %vm6339_vm0, %v6340_v1 }
0x136b   :  { %5864 = vmatprep.subr.bf16.mxu0 %v6338_v0 }
0x136e   :  { %5866 = vmatpush3.bf16.msra.mxu0 %v6542_v37  ;;  %v199_v37 = vadd.f32 %v6555_v43, %v6505_v11 }
0x136f   :  { %5867 = vmatprep.subr.bf16.mxu0 %v6338_v0 }
0x1371   :  { %5511 = vmatmul.mubr.msk.f32.vlgmr.msra.gmra.mrb[20].mxu0 %vm215_vm2, %v1960_v52  ;;  %v2572_v52 = vld [vmem:[%s7175_s11 + $0x8] sm:$0xff] }
0x1372   :  { %5869 = vmatpush3.bf16.msra.mxu0 %v6565_v47  ;;  %5521 = vmatprep.mubr.msk.f32.mxu0 %vm6339_vm0, %v6340_v1 }
0x1373   :  { %5870 = vmatprep.subr.bf16.mxu0 %v6338_v0 }
0x1376   :  { %5872 = vmatpush3.bf16.msra.mxu0 %v6576_v51 }
0x1377   :  { %5885 = vmatprep.subr.bf16.mxu0 %v6338_v0 }
0x1378   :  { %v2130_v36 = vpop.permute.xlu1 %2129 }
0x1379   :  { %5522 = vmatmul.mubr.msk.f32.vlgmr.msra.gmra.mrb[20].mxu0 %vm215_vm2, %v2130_v36  ;;  %v5892_v36 = vpack.c.bf16 %v2572_v52, %v2571_v44 }
0x137a   :  { %5554 = vmatprep.mubr.msk.f32.mxu0 %vm6339_vm0, %v6340_v1 }
0x143c   :  { %v2029_v53 = vpop.f32.mrb[18].mxu0 }
0x143d   :  { %v2033_v54 = vadd.f32 %v2029_v53, %v199_v37  ;;  %v5501_v55 = vpop.f32.mrb[19].mxu0  ;;  %v5004_v37 = vld [vmem:[%s7172_s8] ss:$0 sm:$0xff] }
0x143f   :  { %6136 = vtanh.f32 %v2033_v54  ;;  %v4997_v62 = vmul.f32 -1.442695, %v2033_v54 }
0x1449   :  { %v6137_v57 = vpop.eup %6136 }
0x144a   :  { %2043 = vrot.lane.b32.xlu0 %v6137_v57, %s6341_s20  ;;  %v2573_v57 = vld [vmem:[%s7175_s11 + $0x10] sm:$0xff] }
0x144c   :  { %v2199_v58 = vpop.f32.mrb[20].mxu0 }
0x144d   :  { %v5975_v59 = vadd.f32 %v6601_v56, %v2199_v58  ;;  %v5523_v60 = vpop.f32.mrb[21].mxu0  ;;  %v2574_v58 = vld [vmem:[%s7175_s11 + $0x18] sm:$0xff] }
0x144e   :  { %v2658_v60 = vld [vmem:[%s7176_s12] sm:$0xff] }
0x144f   :  { %6138 = vtanh.f32 %v5975_v59  ;;  %v5000_v2 = vmul.f32 -1.442695, %v5975_v59  ;;  %v5895_v59 = vpack.c.bf16 %v2574_v58, %v2573_v57 }
0x1450   :  { %6140 = vpow2.f32 %v4997_v62 }
0x1451   :  { %6142 = vpow2.f32 %v5000_v2 }
0x1459   :  { %v6139_v61 = vpop.eup %6138 }
0x145a   :  { %2213 = vrot.lane.b32.xlu1 %v6139_v61, %s6341_s20  ;;  %v6141_v63 = vpop.eup %6140  ;;  %v2659_v61 = vld [vmem:[%s7176_s12 + $0x8] sm:$0xff]  ;;  %s6344_s12 = smov 16  }
0x145b   :  { %v2037_v11 = vadd.f32 1.0, %v6141_v63  ;;  %v6143_v43 = vpop.eup %6142  ;;  %v6910_v62 = vpack.c.bf16 %v2659_v61, %v2658_v60  ;;  %v5006_v63 = vld [vmem:[%s7174_s10] ss:$0 sm:$0xff]  ;;  %s6343_s10 = smov 96  }
0x145c   :  { %v2207_v7 = vadd.f32 1.0, %v6143_v43 }
0x145d   :  { %6144 = vrcp.f32 %v2037_v11 }
0x145e   :  { %6146 = vrcp.f32 %v2207_v7 }
0x1467   :  { %v6145_v3 = vpop.eup %6144 }
0x1468   :  { %v6147_v8 = vpop.eup %6146  ;;  %v2041_v13 = vmul.f32 %v6145_v3, %v6808_v40  ;;  %v2405_v40 = vld [vmem:[%s7171_s7 + $0x10] sm:$0xff] }
0x1469   :  { %v2211_v18 = vmul.f32 %v6147_v8, %v6813_v48  ;;  %v5889_v46 = vpack.c.bf16 %v2406_v5, %v2405_v40 }
0x14bc   :  { %v2044_v4 = vpop.permute.xlu0 %2043 }
0x14bd   :  { %v2046_v6 = vmul.f32 %v6145_v3, %v2044_v4 }
0x14bf   :  { %2048 = vrot.lane.b32.xlu0 %v2046_v6, %s6342_s3  ;;  %v5008_v6 = vld [vmem:[#allocation4] ss:$0 sm:$0xff] }
0x14cc   :  { %v2214_v9 = vpop.permute.xlu1 %2213 }
0x14cd   :  { %v2216_v42 = vmul.f32 %v6147_v8, %v2214_v9 }
0x14cf   :  { %2218 = vrot.lane.b32.xlu1 %v2216_v42, %s6342_s3 }
0x1531   :  { %v2049_v14 = vpop.permute.xlu0 %2048 }
0x1532   :  { %v2051_v16 = vadd.f32 %v2049_v14, %v2041_v13 }
0x1534   :  { %6148 = vtanh.f32 %v2051_v16 }
0x153e   :  { %v6149_v17 = vpop.eup %6148 }
0x153f   :  { %2054 = vrot.lane.b32.xlu0 %v6149_v17, %s6341_s20 }
0x1541   :  { %v2219_v19 = vpop.permute.xlu1 %2218 }
0x1542   :  { %v2221_v20 = vadd.f32 %v2219_v19, %v2211_v18 }
0x1544   :  { %6150 = vtanh.f32 %v2221_v20 }
0x154e   :  { %v6151_v21 = vpop.eup %6150 }
0x154f   :  { %2224 = vrot.lane.b32.xlu1 %v6151_v21, %s6341_s20 }
0x15b1   :  { %v2055_v22 = vpop.permute.xlu0 %2054 }
0x15b2   :  { %v2057_v23 = vmul.f32 %v6145_v3, %v2055_v22 }
0x15b4   :  { %2229 = vrot.lane.b32.xlu0 %v2057_v23, %s6342_s3 }
0x15c1   :  { %v2225_v24 = vpop.permute.xlu1 %2224 }
0x15c2   :  { %v2227_v25 = vmul.f32 %v6147_v8, %v2225_v24 }
0x15c4   :  { %2304 = vrot.lane.b32.xlu1 %v2227_v25, %s6342_s3  ;;  %v2857_v25 = vld [vmem:[%s7178_s14] sm:$0xff] }
0x1626   :  { %v2230_v26 = vpop.permute.xlu0 %2229 }
0x1627   :  { %5533 = vmatmul.mubr.msk.f32.vlgmr.msra.gmra.mrb[16].mxu1 %vm215_vm2, %v2230_v26  ;;  %v2858_v26 = vld [vmem:[%s7178_s14 + $0x8] sm:$0xff] }
0x1628   :  { %5881 = vmatpush3.bf16.msra.mxu1 %v6565_v47  ;;  %5543 = vmatprep.mubr.msk.f32.mxu1 %vm6339_vm0, %v6340_v1 }
0x1629   :  { %5882 = vmatprep.subr.bf16.mxu1 %v6338_v0 }
0x162c   :  { %5884 = vmatpush3.bf16.msra.mxu1 %v6576_v51 }
0x162d   :  { %5557 = vmatprep.subr.mxu1 %v6340_v1 }
0x1636   :  { %v2305_v27 = vpop.permute.xlu1 %2304 }
0x1637   :  { %5544 = vmatmul.mubr.msk.f32.vlgmr.msra.gmra.mrb[16].mxu1 %vm215_vm2, %v2305_v27  ;;  %v6936_v27 = vpack.c.bf16 %v2858_v26, %v2857_v25 }
0x1638   :  { %5559 = vmatprep.mubr.msk.f32.mxu1 %vm6339_vm0, %v6340_v1  ;;  %5558 = vmatpush3.msra.mxu1 %v2489_v50 }
0x1639   :  { %5897 = vmatprep.subr.bf16.mxu1 %v6338_v0 }
0x170a   :  { %v2374_v28 = vpop.f32.mrb[16].mxu1 }
0x170b   :  { %v5976_v41 = vadd.f32 %v6601_v56, %v2374_v28  ;;  %v5545_v15 = vpop.f32.mrb[17].mxu1  ;;  %v2403_v56 = vld [vmem:[%s7171_s7] sm:$0xff] }
0x170c   :  { %v5886_v45 = vpack.c.bf16 %v2404_v39, %v2403_v56 }
0x170d   :  { %6152 = vtanh.f32 %v5976_v41  ;;  %v5003_v29 = vmul.f32 -1.442695, %v5976_v41 }
0x170e   :  { %5887 = vmatpush3.bf16.msra.mxu0 %v5886_v45 }
0x170f   :  { %6154 = vpow2.f32 %v5003_v29  ;;  %5888 = vmatprep.subr.bf16.mxu0 %v6338_v0  ;;  %v2937_v29 = vld [vmem:[%s7179_s15 + $0x8] sm:$0xff] }
0x1712   :  { %5890 = vmatpush3.bf16.msra.mxu0 %v5889_v46 }
0x1713   :  { %5891 = vmatprep.subr.bf16.mxu0 %v6338_v0 }
0x1717   :  { %v6153_v47 = vpop.eup %6152 }
0x1718   :  { %2388 = vrot.lane.b32.xlu0 %v6153_v47, %s6341_s20  ;;  %v2936_v47 = vld [vmem:[%s7179_s15] sm:$0xff] }
0x1719   :  { %v6155_v30 = vpop.eup %6154 }
0x171a   :  { %v2382_v51 = vadd.f32 1.0, %v6155_v30  ;;  %v6948_v30 = vpack.c.bf16 %v2937_v29, %v2936_v47 }
0x171c   :  { %6156 = vrcp.f32 %v2382_v51 }
0x1726   :  { %v6157_v31 = vpop.eup %6156 }
0x1727   :  { %v2386_v34 = vmul.f32 %v6157_v31, %v2221_v20 }
0x178a   :  { %v2389_v32 = vpop.permute.xlu0 %2388 }
0x178b   :  { %v2391_v33 = vmul.f32 %v6157_v31, %v2389_v32 }
0x178d   :  { %2393 = vrot.lane.b32.xlu1 %v2391_v33, %s6342_s3 }
0x17ff   :  { %v2394_v35 = vpop.permute.xlu1 %2393 }
0x1800   :  { %v2396_v38 = vadd.f32 %v2394_v35, %v2386_v34  ;;  %v6966_v34 = vld [vmem:[#allocation6] ss:$0 sm:$0xff] }
0x1802   :  { %6158 = vtanh.f32 %v2396_v38 }
0x180c   :  { %v6159_v48 = vpop.eup %6158 }
0x180d   :  { %2399 = vrot.lane.b32.xlu0 %v6159_v48, %s6341_s20 }
0x187f   :  { %v2400_v49 = vpop.permute.xlu0 %2399 }
0x1880   :  { %v2402_v10 = vmul.f32 %v6157_v31, %v2400_v49 }
0x1882   :  { %2415 = vrot.lane.b32.xlu1 %v2402_v10, %s6342_s3 }
0x18f4   :  { %v2416_v12 = vpop.permute.xlu1 %2415 }
0x18f5   :  { %5555 = vmatmul.mubr.msk.f32.vlgmr.msra.gmra.mrb[22].mxu0 %vm215_vm2, %v2416_v12 }
0x18f6   :  { %5570 = vmatprep.mubr.msk.f32.mxu0 %vm6339_vm0, %v6340_v1  ;;  %5893 = vmatpush3.bf16.msra.mxu0 %v5892_v36 }
0x18f7   :  { %5894 = vmatprep.subr.bf16.mxu0 %v6338_v0 }
0x18fa   :  { %5896 = vmatpush3.bf16.msra.mxu0 %v5895_v59 }
0x18fb   :  { %5903 = vmatprep.subr.bf16.mxu0 %v6338_v0 }
0x19c8   :  { %v2485_v53 = vpop.f32.mrb[22].mxu0 }
0x19c9   :  { %v2486_v54 = vadd.f32 %v5004_v37, %v2485_v53  ;;  %v5556_v55 = vpop.f32.mrb[23].mxu0 }
0x19cb   :  { %5560 = vmatmul.mubr.msk.f32.vlgmr.msra.gmra.mrb[18].mxu1 %vm2497_vm3, %v2486_v54 }
0x19cc   :  { %5577 = vmatprep.mubr.msk.f32.mxu1 %vm6339_vm0, %v6340_v1  ;;  %5899 = vmatpush3.bf16.msra.mxu1 %v6910_v62 }
0x19cd   :  { %5900 = vmatprep.subr.bf16.mxu1 %v6338_v0 }
0x19cf   :  { %5578 = vmatmul.mubr.f32.vlgmr.msra.gmra.mrb[20].mxu1 %v6340_v1 }
0x19d0   :  { %5902 = vmatpush3.bf16.msra.mxu1 %v6910_v62  ;;  %5584 = vmatprep.mubr.msk.f32.mxu1 %vm6339_vm0, %v6340_v1 }
0x19d1   :  { %5909 = vmatprep.subr.bf16.mxu1 %v6338_v0 }
0x1a9e   :  { %v2567_v2 = vpop.f32.mrb[18].mxu1 }
0x1a9f   :  { %v2568_v11 = vadd.f32 %v5006_v63, %v2567_v2  ;;  %v5561_v43 = vpop.f32.mrb[19].mxu1 }
0x1aa1   :  { %5571 = vmatmul.mubr.msk.f32.vlgmr.msra.gmra.mrb[24].mxu0 %vm215_vm2, %v2568_v11 }
0x1aa2   :  { %5591 = vmatprep.mubr.msk.f32.mxu0 %vm6339_vm0, %v6340_v1  ;;  %v2728_v3 = vpop.f32.mrb[20].mxu1  ;;  %5905 = vmatpush3.bf16.msra.mxu0 %v6936_v27 }
0x1aa3   :  { %v5579_v4 = vpop.f32.mrb[21].mxu1  ;;  %5906 = vmatprep.subr.bf16.mxu0 %v6338_v0 }
0x1b74   :  { %v2651_v7 = vpop.f32.mrb[24].mxu0 }
0x1b75   :  { %v2652_v8 = vadd.f32 %v5008_v6, %v2651_v7  ;;  %v5572_v9 = vpop.f32.mrb[25].mxu0 }
0x1b77   :  { %2656 = vst.msk [vmem:[#allocation3] sm:$0xff] %vm2655_vm4, %v2652_v8 }
0x1b7e   :  { %v6925_v42 = vld [vmem:[#allocation3] sm:$0xff] }
0x1b7f   :  { %v2732_v13 = vadd.f32 %v2728_v3, %v6925_v42 }
0x1b81   :  { %6160 = vtanh.f32 %v2732_v13  ;;  %v5010_v16 = vmul.f32 -1.442695, %v2732_v13 }
0x1b83   :  { %6162 = vpow2.f32 %v5010_v16 }
0x1b8b   :  { %v6161_v14 = vpop.eup %6160 }
0x1b8c   :  { %2742 = vrot.lane.b32.xlu0 %v6161_v14, %s6343_s10 }
0x1b8d   :  { %v6163_v17 = vpop.eup %6162 }
0x1b8e   :  { %v2736_v18 = vadd.f32 1.0, %v6163_v17 }
0x1b90   :  { %6164 = vrcp.f32 %v2736_v18 }
0x1b9a   :  { %v6165_v19 = vpop.eup %6164 }
0x1b9b   :  { %v2740_v22 = vmul.f32 0.0, %v6165_v19 }
0x1bfe   :  { %v2743_v20 = vpop.permute.xlu0 %2742 }
0x1bff   :  { %v2745_v21 = vmul.f32 %v6165_v19, %v2743_v20 }
0x1c01   :  { %2747 = vrot.lane.b32.xlu1 %v2745_v21, %s6344_s12 }
0x1c73   :  { %v2748_v23 = vpop.permute.xlu1 %2747 }
0x1c74   :  { %v2750_v24 = vadd.f32 %v2748_v23, %v2740_v22 }
0x1c76   :  { %6166 = vtanh.f32 %v2750_v24 }
0x1c80   :  { %v6167_v28 = vpop.eup %6166 }
0x1c81   :  { %2753 = vrot.lane.b32.xlu0 %v6167_v28, %s6342_s3 }
0x1cf3   :  { %v2754_v41 = vpop.permute.xlu0 %2753 }
0x1cf4   :  { %v2756_v15 = vmul.f32 %v6165_v19, %v2754_v41 }
0x1cf6   :  { %2758 = vrot.lane.b32.xlu1 %v2756_v15, %s6345_s28 }
0x1d68   :  { %v2759_v51 = vpop.permute.xlu1 %2758 }
0x1d69   :  { %5585 = vmatmul.mubr.msk.f32.vlgmr.msra.gmra.mrb[22].mxu1 %vm124_vm1, %v2759_v51  ;;  %5592 = vmatmul.mubr.msk.f32.vlgmr.msra.gmra.mrb[26].mxu0 %vm124_vm1, %v2759_v51 }
0x1d6a   :  { %5908 = vmatpush3.bf16.msra.mxu0 %v6948_v30  ;;  %5598 = vmatprep.mubr.msk.f32.mxu0 %vm6339_vm0, %v6340_v1 }
0x1d6b   :  { %5911 = vmatpush3.bf16.msra.mxu1 %v6910_v62  ;;  %5605 = vmatprep.mubr.msk.f32.mxu1 %vm6339_vm0, %v6340_v1 }
0x1d6c   :  { %5912 = vmatprep.subr.bf16.mxu1 %v6338_v0  ;;  %5918 = vmatprep.subr.bf16.mxu0 %v6338_v0 }
0x1d71   :  { %5599 = vmatmul.mubr.f32.vlgmr.msra.gmra.mrb[26].mxu0 %v6340_v1 }
0x1d72   :  { %5920 = vmatpush3.bf16.msra.mxu0 %v6910_v62  ;;  %5626 = vmatprep.mubr.msk.f32.mxu0 %vm6339_vm0, %v6340_v1 }
0x1d73   :  { %5921 = vmatprep.subr.bf16.mxu0 %v6338_v0 }
0x1e3c   :  { %v2828_v31 = vpop.f32.mrb[22].mxu1 }
0x1e3d   :  { %v2832_v32 = vadd.f32 %v2828_v31, %v6925_v42  ;;  %v5586_v33 = vpop.f32.mrb[23].mxu1 }
0x1e3f   :  { %6168 = vtanh.f32 %v2832_v32  ;;  %v5012_v45 = vmul.f32 -1.442695, %v2832_v32 }
0x1e44   :  { %v3004_v35 = vpop.f32.mrb[26].mxu0 }
0x1e45   :  { %v5977_v38 = vadd.f32 %v6966_v34, %v3004_v35  ;;  %v5600_v56 = vpop.f32.mrb[27].mxu0 }
0x1e47   :  { %6170 = vtanh.f32 %v5977_v38  ;;  %v5015_v5 = vmul.f32 -1.442695, %v5977_v38 }
0x1e48   :  { %6172 = vpow2.f32 %v5012_v45 }
0x1e49   :  { %v6169_v39 = vpop.eup %6168  ;;  %6174 = vpow2.f32 %v5015_v5 }
0x1e4a   :  { %2842 = vrot.lane.b32.xlu0 %v6169_v39, %s6343_s10 }
0x1e51   :  { %v6171_v40 = vpop.eup %6170 }
0x1e52   :  { %3018 = vrot.lane.b32.xlu1 %v6171_v40, %s6343_s10  ;;  %v6173_v46 = vpop.eup %6172 }
0x1e53   :  { %v2836_v48 = vadd.f32 1.0, %v6173_v46  ;;  %v6175_v49 = vpop.eup %6174 }
0x1e54   :  { %v3012_v10 = vadd.f32 1.0, %v6175_v49 }
0x1e55   :  { %6176 = vrcp.f32 %v2836_v48 }
0x1e56   :  { %6178 = vrcp.f32 %v3012_v10 }
0x1e5f   :  { %v6177_v12 = vpop.eup %6176 }
0x1e60   :  { %v6179_v52 = vpop.eup %6178  ;;  %v2840_v53 = vmul.f32 %v6177_v12, %v2750_v24 }
0x1e61   :  { %v3016_v57 = vmul.f32 0.0, %v6179_v52 }
0x1ebc   :  { %v2843_v50 = vpop.permute.xlu0 %2842 }
0x1ebd   :  { %v2845_v44 = vmul.f32 %v6177_v12, %v2843_v50 }
0x1ebf   :  { %2847 = vrot.lane.b32.xlu0 %v2845_v44, %s6344_s12 }
0x1ec4   :  { %v3019_v36 = vpop.permute.xlu1 %3018 }
0x1ec5   :  { %v3021_v37 = vmul.f32 %v6179_v52, %v3019_v36 }
0x1ec7   :  { %3023 = vrot.lane.b32.xlu1 %v3021_v37, %s6344_s12 }
0x1f31   :  { %v2848_v54 = vpop.permute.xlu0 %2847 }
0x1f32   :  { %v2850_v55 = vadd.f32 %v2848_v54, %v2840_v53 }
0x1f34   :  { %6180 = vtanh.f32 %v2850_v55 }
0x1f39   :  { %v3024_v58 = vpop.permute.xlu1 %3023 }
0x1f3a   :  { %v3026_v59 = vadd.f32 %v3024_v58, %v3016_v57 }
0x1f3c   :  { %6182 = vtanh.f32 %v3026_v59 }
0x1f3e   :  { %v6181_v60 = vpop.eup %6180 }
0x1f3f   :  { %2853 = vrot.lane.b32.xlu0 %v6181_v60, %s6342_s3 }
0x1f46   :  { %v6183_v61 = vpop.eup %6182 }
0x1f47   :  { %3029 = vrot.lane.b32.xlu1 %v6183_v61, %s6342_s3 }
0x1fb1   :  { %v2854_v63 = vpop.permute.xlu0 %2853 }
0x1fb2   :  { %v2856_v2 = vmul.f32 %v6177_v12, %v2854_v63 }
0x1fb4   :  { %3042 = vrot.lane.b32.xlu0 %v2856_v2, %s6345_s28 }
0x1fb9   :  { %v3030_v11 = vpop.permute.xlu1 %3029 }
0x1fba   :  { %v3032_v43 = vmul.f32 %v6179_v52, %v3030_v11 }
0x1fbc   :  { %3034 = vrot.lane.b32.xlu1 %v3032_v43, %s6345_s28 }
0x2026   :  { %v3043_v3 = vpop.permute.xlu0 %3042 }
0x2027   :  { %5606 = vmatmul.mubr.msk.f32.vlgmr.msra.gmra.mrb[24].mxu1 %vm124_vm1, %v3043_v3 }
0x2028   :  { %5914 = vmatpush3.bf16.msra.mxu1 %v6936_v27  ;;  %5612 = vmatprep.mubr.msk.f32.mxu1 %vm6339_vm0, %v6340_v1 }
0x2029   :  { %5915 = vmatprep.subr.bf16.mxu1 %v6338_v0 }
0x202b   :  { %5613 = vmatmul.mubr.msk.f32.vlgmr.msra.gmra.mrb[26].mxu1 %vm124_vm1, %v3043_v3 }
0x202c   :  { %5917 = vmatpush3.bf16.msra.mxu1 %v6948_v30  ;;  %5619 = vmatprep.mubr.msk.f32.mxu1 %vm6339_vm0, %v6340_v1 }
0x202d   :  { %5927 = vmatprep.subr.bf16.mxu1 %v6338_v0 }
0x202e   :  { %v3035_v4 = vpop.permute.xlu1 %3034 }
0x202f   :  { %3037 = vst.msk [vmem:[%s7181_s17] sm:$0xff] %vm124_vm1, %v3035_v4 }
0x2033   :  { %5620 = vmatmul.mubr.msk.f32.vlgmr.msra.gmra.mrb[26].mxu1 %vm124_vm1, %v3035_v4 }
0x2034   :  { %5929 = vmatpush3.bf16.msra.mxu1 %v6910_v62  ;;  %5647 = vmatprep.mubr.msk.f32.mxu1 %vm6339_vm0, %v6340_v1 }
0x2035   :  { %5930 = vmatprep.subr.bf16.mxu1 %v6338_v0 }
0x20fa   :  { %v3112_v6 = vpop.f32.mrb[24].mxu1 }
0x20fb   :  { %v3116_v7 = vadd.f32 %v3112_v6, %v6925_v42  ;;  %v5607_v8 = vpop.f32.mrb[25].mxu1 }
0x20fd   :  { %6184 = vtanh.f32 %v3116_v7  ;;  %v5017_v18 = vmul.f32 -1.442695, %v3116_v7 }
0x2106   :  { %v3290_v9 = vpop.f32.mrb[26].mxu1 }
0x2107   :  { %v6185_v13 = vpop.eup %6184  ;;  %v5978_v14 = vadd.f32 %v6966_v34, %v3290_v9  ;;  %v5621_v16 = vpop.f32.mrb[27].mxu1 }
0x2108   :  { %3126 = vrot.lane.b32.xlu0 %v6185_v13, %s6343_s10 }
0x2109   :  { %6186 = vtanh.f32 %v5978_v14  ;;  %v5021_v19 = vmul.f32 -1.442695, %v5978_v14 }
0x210a   :  { %6188 = vpow2.f32 %v5017_v18 }
0x210b   :  { %6190 = vpow2.f32 %v5021_v19 }
0x2113   :  { %v6187_v17 = vpop.eup %6186 }
0x2114   :  { %3304 = vrot.lane.b32.xlu1 %v6187_v17, %s6343_s10  ;;  %v6189_v20 = vpop.eup %6188 }
0x2115   :  { %v3120_v21 = vadd.f32 1.0, %v6189_v20  ;;  %v6191_v22 = vpop.eup %6190 }
0x2116   :  { %v3298_v23 = vadd.f32 1.0, %v6191_v22 }
0x2117   :  { %6192 = vrcp.f32 %v3120_v21 }
0x2118   :  { %6194 = vrcp.f32 %v3298_v23 }
0x2121   :  { %v6193_v24 = vpop.eup %6192 }
0x2122   :  { %v6195_v28 = vpop.eup %6194  ;;  %v3124_v47 = vmul.f32 %v6193_v24, %v2850_v55 }
0x2123   :  { %v3302_v31 = vmul.f32 %v6195_v28, %v3026_v59 }
0x217a   :  { %v3127_v25 = vpop.permute.xlu0 %3126 }
0x217b   :  { %v3129_v26 = vmul.f32 %v6193_v24, %v3127_v25 }
0x217d   :  { %3131 = vrot.lane.b32.xlu0 %v3129_v26, %s6344_s12 }
0x2186   :  { %v3305_v41 = vpop.permute.xlu1 %3304 }
0x2187   :  { %v3307_v15 = vmul.f32 %v6195_v28, %v3305_v41 }
0x2189   :  { %3309 = vrot.lane.b32.xlu1 %v3307_v15, %s6344_s12 }
0x21ef   :  { %v3132_v29 = vpop.permute.xlu0 %3131 }
0x21f0   :  { %v3134_v51 = vadd.f32 %v3132_v29, %v3124_v47 }
0x21f2   :  { %6196 = vtanh.f32 %v3134_v51 }
0x21fb   :  { %v3310_v32 = vpop.permute.xlu1 %3309 }
0x21fc   :  { %v6197_v33 = vpop.eup %6196  ;;  %v3312_v35 = vadd.f32 %v3310_v32, %v3302_v31 }
0x21fd   :  { %3137 = vrot.lane.b32.xlu0 %v6197_v33, %s6342_s3 }
0x21fe   :  { %6198 = vtanh.f32 %v3312_v35 }
0x2208   :  { %v6199_v38 = vpop.eup %6198 }
0x2209   :  { %3315 = vrot.lane.b32.xlu1 %v6199_v38, %s6342_s3 }
0x226f   :  { %v3138_v56 = vpop.permute.xlu0 %3137 }
0x2270   :  { %v3140_v39 = vmul.f32 %v6193_v24, %v3138_v56 }
0x2272   :  { %3329 = vrot.lane.b32.xlu0 %v3140_v39, %s6345_s28 }
0x227b   :  { %v3316_v40 = vpop.permute.xlu1 %3315 }
0x227c   :  { %v3318_v45 = vmul.f32 %v6195_v28, %v3316_v40 }
0x227e   :  { %3320 = vrot.lane.b32.xlu1 %v3318_v45, %s6345_s28 }
0x22e4   :  { %v3330_v5 = vpop.permute.xlu0 %3329 }
0x22e5   :  { %5627 = vmatmul.mubr.msk.f32.vlgmr.msra.gmra.mrb[28].mxu0 %vm124_vm1, %v3330_v5 }
0x22e6   :  { %5923 = vmatpush3.bf16.msra.mxu0 %v6936_v27  ;;  %5633 = vmatprep.mubr.msk.f32.mxu0 %vm6339_vm0, %v6340_v1 }
0x22e7   :  { %5924 = vmatprep.subr.bf16.mxu0 %v6338_v0 }
0x22e9   :  { %5634 = vmatmul.mubr.msk.f32.vlgmr.msra.gmra.mrb[30].mxu0 %vm124_vm1, %v3330_v5 }
0x22ea   :  { %5926 = vmatpush3.bf16.msra.mxu0 %v6948_v30  ;;  %5640 = vmatprep.mubr.msk.f32.mxu0 %vm6339_vm0, %v6340_v1 }
0x22eb   :  { %5936 = vmatprep.subr.bf16.mxu0 %v6338_v0 }
0x22f0   :  { %v3321_v46 = vpop.permute.xlu1 %3320 }
0x22f1   :  { %5022 = vst.msk [vmem:[%s7181_s17 + $0x8] sm:$0xff] %vm124_vm1, %v3321_v46  ;;  %5641 = vmatmul.mubr.msk.f32.vlgmr.msra.gmra.mrb[30].mxu0 %vm124_vm1, %v3321_v46 }
0x22f2   :  { %5938 = vmatpush3.bf16.msra.mxu0 %v6910_v62  ;;  %5668 = vmatprep.mubr.msk.f32.mxu0 %vm6339_vm0, %v6340_v1 }
0x22f3   :  { %5939 = vmatprep.subr.bf16.mxu0 %v6338_v0 }
0x23b8   :  { %v3399_v48 = vpop.f32.mrb[28].mxu0 }
0x23b9   :  { %v3403_v49 = vadd.f32 %v3399_v48, %v6925_v42  ;;  %v5628_v10 = vpop.f32.mrb[29].mxu0 }
0x23bb   :  { %6200 = vtanh.f32 %v3403_v49  ;;  %v5024_v37 = vmul.f32 -1.442695, %v3403_v49 }
0x23c4   :  { %v3577_v12 = vpop.f32.mrb[30].mxu0 }
0x23c5   :  { %v6201_v50 = vpop.eup %6200  ;;  %v5979_v44 = vadd.f32 %v6966_v34, %v3577_v12  ;;  %v5642_v52 = vpop.f32.mrb[31].mxu0 }
0x23c6   :  { %3413 = vrot.lane.b32.xlu0 %v6201_v50, %s6343_s10 }
0x23c7   :  { %6202 = vtanh.f32 %v5979_v44  ;;  %v5028_v53 = vmul.f32 -1.442695, %v5979_v44 }
0x23c8   :  { %6204 = vpow2.f32 %v5024_v37 }
0x23c9   :  { %6206 = vpow2.f32 %v5028_v53 }
0x23d1   :  { %v6203_v36 = vpop.eup %6202 }
0x23d2   :  { %3591 = vrot.lane.b32.xlu1 %v6203_v36, %s6343_s10  ;;  %v6205_v54 = vpop.eup %6204 }
0x23d3   :  { %v3407_v55 = vadd.f32 1.0, %v6205_v54  ;;  %v6207_v57 = vpop.eup %6206 }
0x23d4   :  { %v3585_v58 = vadd.f32 1.0, %v6207_v57 }
0x23d5   :  { %6208 = vrcp.f32 %v3407_v55 }
0x23d6   :  { %6210 = vrcp.f32 %v3585_v58 }
0x23df   :  { %v6209_v59 = vpop.eup %6208 }
0x23e0   :  { %v6211_v63 = vpop.eup %6210  ;;  %v3411_v43 = vmul.f32 %v6209_v59, %v3134_v51 }
0x23e1   :  { %v3589_v6 = vmul.f32 %v6211_v63, %v3312_v35 }
0x2438   :  { %v3414_v60 = vpop.permute.xlu0 %3413 }
0x2439   :  { %v3416_v61 = vmul.f32 %v6209_v59, %v3414_v60 }
0x243b   :  { %3418 = vrot.lane.b32.xlu0 %v3416_v61, %s6344_s12 }
0x2444   :  { %v3592_v2 = vpop.permute.xlu1 %3591 }
0x2445   :  { %v3594_v11 = vmul.f32 %v6211_v63, %v3592_v2 }
0x2447   :  { %3596 = vrot.lane.b32.xlu1 %v3594_v11, %s6344_s12 }
0x24ad   :  { %v3419_v3 = vpop.permute.xlu0 %3418 }
0x24ae   :  { %v3421_v4 = vadd.f32 %v3419_v3, %v3411_v43 }
0x24b0   :  { %6212 = vtanh.f32 %v3421_v4 }
0x24b9   :  { %v3597_v7 = vpop.permute.xlu1 %3596 }
0x24ba   :  { %v6213_v8 = vpop.eup %6212  ;;  %v3599_v9 = vadd.f32 %v3597_v7, %v3589_v6 }
0x24bb   :  { %3424 = vrot.lane.b32.xlu0 %v6213_v8, %s6342_s3 }
0x24bc   :  { %6214 = vtanh.f32 %v3599_v9 }
0x24c6   :  { %v6215_v13 = vpop.eup %6214 }
0x24c7   :  { %3602 = vrot.lane.b32.xlu1 %v6215_v13, %s6342_s3 }
0x252d   :  { %v3425_v14 = vpop.permute.xlu0 %3424 }
0x252e   :  { %v3427_v16 = vmul.f32 %v6209_v59, %v3425_v14 }
0x2530   :  { %3616 = vrot.lane.b32.xlu0 %v3427_v16, %s6345_s28 }
0x2539   :  { %v3603_v17 = vpop.permute.xlu1 %3602 }
0x253a   :  { %v3605_v18 = vmul.f32 %v6211_v63, %v3603_v17 }
0x253c   :  { %3607 = vrot.lane.b32.xlu1 %v3605_v18, %s6345_s28 }
0x25a2   :  { %v3617_v19 = vpop.permute.xlu0 %3616 }
0x25a3   :  { %5648 = vmatmul.mubr.msk.f32.vlgmr.msra.gmra.mrb[28].mxu1 %vm124_vm1, %v3617_v19 }
0x25a4   :  { %5932 = vmatpush3.bf16.msra.mxu1 %v6936_v27  ;;  %5654 = vmatprep.mubr.msk.f32.mxu1 %vm6339_vm0, %v6340_v1 }
0x25a5   :  { %5933 = vmatprep.subr.bf16.mxu1 %v6338_v0 }
0x25a7   :  { %5655 = vmatmul.mubr.msk.f32.vlgmr.msra.gmra.mrb[30].mxu1 %vm124_vm1, %v3617_v19 }
0x25a8   :  { %5935 = vmatpush3.bf16.msra.mxu1 %v6948_v30  ;;  %5661 = vmatprep.mubr.msk.f32.mxu1 %vm6339_vm0, %v6340_v1 }
0x25a9   :  { %5945 = vmatprep.subr.bf16.mxu1 %v6338_v0 }
0x25ae   :  { %v3608_v20 = vpop.permute.xlu1 %3607 }
0x25af   :  { %5029 = vst.msk [vmem:[%s7181_s17 + $0x10] sm:$0xff] %vm124_vm1, %v3608_v20  ;;  %5662 = vmatmul.mubr.msk.f32.vlgmr.msra.gmra.mrb[30].mxu1 %vm124_vm1, %v3608_v20 }
0x25b0   :  { %5947 = vmatpush3.bf16.msra.mxu1 %v6910_v62  ;;  %5689 = vmatprep.mubr.msk.f32.mxu1 %vm6339_vm0, %v6340_v1 }
0x25b1   :  { %5948 = vmatprep.subr.bf16.mxu1 %v6338_v0 }
0x2676   :  { %v3686_v21 = vpop.f32.mrb[28].mxu1 }
0x2677   :  { %v3690_v22 = vadd.f32 %v3686_v21, %v6925_v42  ;;  %v5649_v23 = vpop.f32.mrb[29].mxu1 }
0x2679   :  { %6216 = vtanh.f32 %v3690_v22  ;;  %v5031_v15 = vmul.f32 -1.442695, %v3690_v22 }
0x2682   :  { %v3864_v24 = vpop.f32.mrb[30].mxu1 }
0x2683   :  { %v6217_v25 = vpop.eup %6216  ;;  %v5980_v26 = vadd.f32 %v6966_v34, %v3864_v24  ;;  %v5663_v28 = vpop.f32.mrb[31].mxu1 }
0x2684   :  { %3700 = vrot.lane.b32.xlu0 %v6217_v25, %s6343_s10 }
0x2685   :  { %6218 = vtanh.f32 %v5980_v26  ;;  %v5035_v47 = vmul.f32 -1.442695, %v5980_v26 }
0x2686   :  { %6220 = vpow2.f32 %v5031_v15 }
0x2687   :  { %6222 = vpow2.f32 %v5035_v47 }
0x268f   :  { %v6219_v41 = vpop.eup %6218 }
0x2690   :  { %3878 = vrot.lane.b32.xlu1 %v6219_v41, %s6343_s10  ;;  %v6221_v29 = vpop.eup %6220 }
0x2691   :  { %v3694_v51 = vadd.f32 1.0, %v6221_v29  ;;  %v6223_v31 = vpop.eup %6222 }
0x2692   :  { %v3872_v32 = vadd.f32 1.0, %v6223_v31 }
0x2693   :  { %6224 = vrcp.f32 %v3694_v51 }
0x2694   :  { %6226 = vrcp.f32 %v3872_v32 }
0x269d   :  { %v6225_v33 = vpop.eup %6224 }
0x269e   :  { %v6227_v56 = vpop.eup %6226  ;;  %v3698_v45 = vmul.f32 %v6225_v33, %v3421_v4 }
0x269f   :  { %v3876_v48 = vmul.f32 %v6227_v56, %v3599_v9 }
0x26f6   :  { %v3701_v35 = vpop.permute.xlu0 %3700 }
0x26f7   :  { %v3703_v38 = vmul.f32 %v6225_v33, %v3701_v35 }
0x26f9   :  { %3705 = vrot.lane.b32.xlu0 %v3703_v38, %s6344_s12 }
0x2702   :  { %v3879_v39 = vpop.permute.xlu1 %3878 }
0x2703   :  { %v3881_v40 = vmul.f32 %v6227_v56, %v3879_v39 }
0x2705   :  { %3883 = vrot.lane.b32.xlu1 %v3881_v40, %s6344_s12 }
0x276b   :  { %v3706_v5 = vpop.permute.xlu0 %3705 }
0x276c   :  { %v3708_v46 = vadd.f32 %v3706_v5, %v3698_v45 }
0x276e   :  { %6228 = vtanh.f32 %v3708_v46 }
0x2777   :  { %v3884_v49 = vpop.permute.xlu1 %3883 }
0x2778   :  { %v6229_v10 = vpop.eup %6228  ;;  %v3886_v12 = vadd.f32 %v3884_v49, %v3876_v48 }
0x2779   :  { %3711 = vrot.lane.b32.xlu0 %v6229_v10, %s6342_s3 }
0x277a   :  { %6230 = vtanh.f32 %v3886_v12 }
0x2784   :  { %v6231_v50 = vpop.eup %6230 }
0x2785   :  { %3889 = vrot.lane.b32.xlu1 %v6231_v50, %s6342_s3 }
0x27eb   :  { %v3712_v44 = vpop.permute.xlu0 %3711 }
0x27ec   :  { %v3714_v52 = vmul.f32 %v6225_v33, %v3712_v44 }
0x27ee   :  { %3903 = vrot.lane.b32.xlu0 %v3714_v52, %s6345_s28 }
0x27f7   :  { %v3890_v36 = vpop.permute.xlu1 %3889 }
0x27f8   :  { %v3892_v37 = vmul.f32 %v6227_v56, %v3890_v36 }
0x27fa   :  { %3894 = vrot.lane.b32.xlu1 %v3892_v37, %s6345_s28 }
0x2860   :  { %v3904_v53 = vpop.permute.xlu0 %3903 }
0x2861   :  { %5669 = vmatmul.mubr.msk.f32.vlgmr.msra.gmra.mrb[32].mxu0 %vm124_vm1, %v3904_v53 }
0x2862   :  { %5941 = vmatpush3.bf16.msra.mxu0 %v6936_v27  ;;  %5675 = vmatprep.mubr.msk.f32.mxu0 %vm6339_vm0, %v6340_v1 }
0x2863   :  { %5942 = vmatprep.subr.bf16.mxu0 %v6338_v0 }
0x2865   :  { %5676 = vmatmul.mubr.msk.f32.vlgmr.msra.gmra.mrb[34].mxu0 %vm124_vm1, %v3904_v53 }
0x2866   :  { %5944 = vmatpush3.bf16.msra.mxu0 %v6948_v30  ;;  %5682 = vmatprep.mubr.msk.f32.mxu0 %vm6339_vm0, %v6340_v1 }
0x2867   :  { %5954 = vmatprep.subr.bf16.mxu0 %v6338_v0 }
0x286c   :  { %v3895_v54 = vpop.permute.xlu1 %3894 }
0x286d   :  { %5036 = vst.msk [vmem:[%s7181_s17 + $0x18] sm:$0xff] %vm124_vm1, %v3895_v54  ;;  %5683 = vmatmul.mubr.msk.f32.vlgmr.msra.gmra.mrb[34].mxu0 %vm124_vm1, %v3895_v54 }
0x286e   :  { %5956 = vmatpush3.bf16.msra.mxu0 %v6910_v62  ;;  %5710 = vmatprep.mubr.msk.f32.mxu0 %vm6339_vm0, %v6340_v1 }
0x286f   :  { %5957 = vmatprep.subr.bf16.mxu0 %v6338_v0 }
0x2934   :  { %v3973_v55 = vpop.f32.mrb[32].mxu0 }
0x2935   :  { %v3977_v57 = vadd.f32 %v3973_v55, %v6925_v42  ;;  %v5670_v58 = vpop.f32.mrb[33].mxu0 }
0x2937   :  { %6232 = vtanh.f32 %v3977_v57  ;;  %v5038_v62 = vmul.f32 -1.442695, %v3977_v57 }
0x2940   :  { %v4151_v59 = vpop.f32.mrb[34].mxu0 }
0x2941   :  { %v6233_v60 = vpop.eup %6232  ;;  %v5981_v61 = vadd.f32 %v6966_v34, %v4151_v59  ;;  %v5684_v63 = vpop.f32.mrb[35].mxu0 }
0x2942   :  { %3987 = vrot.lane.b32.xlu0 %v6233_v60, %s6343_s10 }
0x2943   :  { %6234 = vtanh.f32 %v5981_v61  ;;  %v5042_v11 = vmul.f32 -1.442695, %v5981_v61 }
0x2944   :  { %6236 = vpow2.f32 %v5038_v62 }
0x2945   :  { %6238 = vpow2.f32 %v5042_v11 }
0x294d   :  { %v6235_v2 = vpop.eup %6234 }
0x294e   :  { %4165 = vrot.lane.b32.xlu1 %v6235_v2, %s6343_s10  ;;  %v6237_v43 = vpop.eup %6236 }
0x294f   :  { %v3981_v3 = vadd.f32 1.0, %v6237_v43  ;;  %v6239_v4 = vpop.eup %6238 }
0x2950   :  { %v4159_v6 = vadd.f32 1.0, %v6239_v4 }
0x2951   :  { %6240 = vrcp.f32 %v3981_v3 }
0x2952   :  { %6242 = vrcp.f32 %v4159_v6 }
0x295b   :  { %v6241_v7 = vpop.eup %6240 }
0x295c   :  { %v6243_v13 = vpop.eup %6242  ;;  %v3985_v17 = vmul.f32 %v6241_v7, %v3708_v46 }
0x295d   :  { %v4163_v20 = vmul.f32 %v6243_v13, %v3886_v12 }
0x29b4   :  { %v3988_v8 = vpop.permute.xlu0 %3987 }
0x29b5   :  { %v3990_v9 = vmul.f32 %v6241_v7, %v3988_v8 }
0x29b7   :  { %3992 = vrot.lane.b32.xlu0 %v3990_v9, %s6344_s12 }
0x29c0   :  { %v4166_v14 = vpop.permute.xlu1 %4165 }
0x29c1   :  { %v4168_v16 = vmul.f32 %v6243_v13, %v4166_v14 }
0x29c3   :  { %4170 = vrot.lane.b32.xlu1 %v4168_v16, %s6344_s12 }
0x2a29   :  { %v3993_v18 = vpop.permute.xlu0 %3992 }
0x2a2a   :  { %v3995_v19 = vadd.f32 %v3993_v18, %v3985_v17 }
0x2a2c   :  { %6244 = vtanh.f32 %v3995_v19 }
0x2a35   :  { %v4171_v21 = vpop.permute.xlu1 %4170 }
0x2a36   :  { %v6245_v22 = vpop.eup %6244  ;;  %v4173_v23 = vadd.f32 %v4171_v21, %v4163_v20 }
0x2a37   :  { %3998 = vrot.lane.b32.xlu0 %v6245_v22, %s6342_s3 }
0x2a38   :  { %6246 = vtanh.f32 %v4173_v23 }
0x2a42   :  { %v6247_v24 = vpop.eup %6246 }
0x2a43   :  { %4176 = vrot.lane.b32.xlu1 %v6247_v24, %s6342_s3 }
0x2aa9   :  { %v3999_v25 = vpop.permute.xlu0 %3998 }
0x2aaa   :  { %v4001_v26 = vmul.f32 %v6241_v7, %v3999_v25 }
0x2aac   :  { %4190 = vrot.lane.b32.xlu0 %v4001_v26, %s6345_s28 }
0x2ab5   :  { %v4177_v28 = vpop.permute.xlu1 %4176 }
0x2ab6   :  { %v4179_v41 = vmul.f32 %v6243_v13, %v4177_v28 }
0x2ab8   :  { %4181 = vrot.lane.b32.xlu1 %v4179_v41, %s6345_s28 }
0x2b1e   :  { %v4191_v15 = vpop.permute.xlu0 %4190 }
0x2b1f   :  { %5690 = vmatmul.mubr.msk.f32.vlgmr.msra.gmra.mrb[32].mxu1 %vm124_vm1, %v4191_v15 }
0x2b20   :  { %5950 = vmatpush3.bf16.msra.mxu1 %v6936_v27  ;;  %5696 = vmatprep.mubr.msk.f32.mxu1 %vm6339_vm0, %v6340_v1 }
0x2b21   :  { %5951 = vmatprep.subr.bf16.mxu1 %v6338_v0 }
0x2b23   :  { %5697 = vmatmul.mubr.msk.f32.vlgmr.msra.gmra.mrb[34].mxu1 %vm124_vm1, %v4191_v15 }
0x2b24   :  { %5953 = vmatpush3.bf16.msra.mxu1 %v6948_v30  ;;  %5703 = vmatprep.mubr.msk.f32.mxu1 %vm6339_vm0, %v6340_v1 }
0x2b25   :  { %5963 = vmatprep.subr.bf16.mxu1 %v6338_v0 }
0x2b2a   :  { %v4182_v47 = vpop.permute.xlu1 %4181 }
0x2b2b   :  { %5043 = vst.msk [vmem:[%s7181_s17 + $0x20] sm:$0xff] %vm124_vm1, %v4182_v47  ;;  %5704 = vmatmul.mubr.msk.f32.vlgmr.msra.gmra.mrb[34].mxu1 %vm124_vm1, %v4182_v47 }
0x2b2c   :  { %5965 = vmatpush3.bf16.msra.mxu1 %v6936_v27  ;;  %5731 = vmatprep.mubr.msk.f32.mxu1 %vm6339_vm0, %v6340_v1 }
0x2b2d   :  { %5966 = vmatprep.subr.bf16.mxu1 %v6338_v0 }
0x2bf2   :  { %v4260_v29 = vpop.f32.mrb[32].mxu1 }
0x2bf3   :  { %v4264_v51 = vadd.f32 %v4260_v29, %v6925_v42  ;;  %v5691_v31 = vpop.f32.mrb[33].mxu1 }
0x2bf5   :  { %6248 = vtanh.f32 %v4264_v51  ;;  %v5045_v39 = vmul.f32 -1.442695, %v4264_v51 }
0x2bfe   :  { %v4438_v32 = vpop.f32.mrb[34].mxu1 }
0x2bff   :  { %v6249_v33 = vpop.eup %6248  ;;  %v5982_v35 = vadd.f32 %v6966_v34, %v4438_v32  ;;  %v5705_v38 = vpop.f32.mrb[35].mxu1 }
0x2c00   :  { %4274 = vrot.lane.b32.xlu0 %v6249_v33, %s6343_s10 }
0x2c01   :  { %6250 = vtanh.f32 %v5982_v35  ;;  %v5049_v40 = vmul.f32 -1.442695, %v5982_v35 }
0x2c02   :  { %6252 = vpow2.f32 %v5045_v39 }
0x2c03   :  { %6254 = vpow2.f32 %v5049_v40 }
0x2c0b   :  { %v6251_v56 = vpop.eup %6250 }
0x2c0c   :  { %4452 = vrot.lane.b32.xlu1 %v6251_v56, %s6343_s10  ;;  %v6253_v45 = vpop.eup %6252 }
0x2c0d   :  { %v4268_v5 = vadd.f32 1.0, %v6253_v45  ;;  %v6255_v46 = vpop.eup %6254 }
0x2c0e   :  { %v4446_v48 = vadd.f32 1.0, %v6255_v46 }
0x2c0f   :  { %6256 = vrcp.f32 %v4268_v5 }
0x2c10   :  { %6258 = vrcp.f32 %v4446_v48 }
0x2c19   :  { %v6257_v49 = vpop.eup %6256 }
0x2c1a   :  { %v6259_v50 = vpop.eup %6258  ;;  %v4272_v36 = vmul.f32 %v6257_v49, %v3995_v19 }
0x2c1b   :  { %v4450_v54 = vmul.f32 %v6259_v50, %v4173_v23 }
0x2c72   :  { %v4275_v10 = vpop.permute.xlu0 %4274 }
0x2c73   :  { %v4277_v12 = vmul.f32 %v6257_v49, %v4275_v10 }
0x2c75   :  { %4279 = vrot.lane.b32.xlu0 %v4277_v12, %s6344_s12 }
0x2c7e   :  { %v4453_v44 = vpop.permute.xlu1 %4452 }
0x2c7f   :  { %v4455_v52 = vmul.f32 %v6259_v50, %v4453_v44 }
0x2c81   :  { %4457 = vrot.lane.b32.xlu1 %v4455_v52, %s6344_s12 }
0x2ce7   :  { %v4280_v37 = vpop.permute.xlu0 %4279 }
0x2ce8   :  { %v4282_v53 = vadd.f32 %v4280_v37, %v4272_v36 }
0x2cea   :  { %6260 = vtanh.f32 %v4282_v53 }
0x2cf3   :  { %v4458_v55 = vpop.permute.xlu1 %4457 }
0x2cf4   :  { %v6261_v57 = vpop.eup %6260  ;;  %v4460_v58 = vadd.f32 %v4458_v55, %v4450_v54 }
0x2cf5   :  { %4285 = vrot.lane.b32.xlu0 %v6261_v57, %s6342_s3 }
0x2cf6   :  { %6262 = vtanh.f32 %v4460_v58 }
0x2d00   :  { %v6263_v59 = vpop.eup %6262 }
0x2d01   :  { %4463 = vrot.lane.b32.xlu1 %v6263_v59, %s6342_s3 }
0x2d67   :  { %v4286_v60 = vpop.permute.xlu0 %4285 }
0x2d68   :  { %v4288_v61 = vmul.f32 %v6257_v49, %v4286_v60 }
0x2d6a   :  { %4477 = vrot.lane.b32.xlu0 %v4288_v61, %s6345_s28 }
0x2d73   :  { %v4464_v63 = vpop.permute.xlu1 %4463 }
0x2d74   :  { %v4466_v2 = vmul.f32 %v6259_v50, %v4464_v63 }
0x2d76   :  { %4468 = vrot.lane.b32.xlu1 %v4466_v2, %s6345_s28 }
0x2ddc   :  { %v4478_v62 = vpop.permute.xlu0 %4477 }
0x2ddd   :  { %5711 = vmatmul.mubr.msk.f32.vlgmr.msra.gmra.mrb[36].mxu0 %vm124_vm1, %v4478_v62 }
0x2dde   :  { %5959 = vmatpush3.bf16.msra.mxu0 %v6936_v27  ;;  %5717 = vmatprep.mubr.msk.f32.mxu0 %vm6339_vm0, %v6340_v1 }
0x2ddf   :  { %5960 = vmatprep.subr.bf16.mxu0 %v6338_v0 }
0x2de1   :  { %5718 = vmatmul.mubr.msk.f32.vlgmr.msra.gmra.mrb[38].mxu0 %vm124_vm1, %v4478_v62 }
0x2de2   :  { %5962 = vmatpush3.bf16.msra.mxu0 %v6948_v30  ;;  %5724 = vmatprep.mubr.msk.f32.mxu0 %vm6339_vm0, %v6340_v1 }
0x2de8   :  { %v4469_v11 = vpop.permute.xlu1 %4468 }
0x2de9   :  { %5050 = vst.msk [vmem:[%s7181_s17 + $0x28] sm:$0xff] %vm124_vm1, %v4469_v11  ;;  %5725 = vmatmul.mubr.msk.f32.vlgmr.msra.gmra.mrb[38].mxu0 %vm124_vm1, %v4469_v11 }
0x2eb0   :  { %v4547_v27 = vpop.f32.mrb[36].mxu0 }
0x2eb1   :  { %v4551_v43 = vadd.f32 %v4547_v27, %v6925_v42  ;;  %v5712_v3 = vpop.f32.mrb[37].mxu0 }
0x2eb3   :  { %6264 = vtanh.f32 %v4551_v43  ;;  %v5052_v9 = vmul.f32 -1.442695, %v4551_v43 }
0x2ebc   :  { %v4725_v0 = vpop.f32.mrb[38].mxu0 }
0x2ebd   :  { %v6265_v4 = vpop.eup %6264  ;;  %v5983_v6 = vadd.f32 %v6966_v34, %v4725_v0  ;;  %v5726_v7 = vpop.f32.mrb[39].mxu0 }
0x2ebe   :  { %4561 = vrot.lane.b32.xlu0 %v6265_v4, %s6343_s10 }
0x2ebf   :  { %6266 = vtanh.f32 %v5983_v6  ;;  %v5056_v13 = vmul.f32 -1.442695, %v5983_v6 }
0x2ec0   :  { %6268 = vpow2.f32 %v5052_v9 }
0x2ec1   :  { %6270 = vpow2.f32 %v5056_v13 }
0x2ec9   :  { %v6267_v8 = vpop.eup %6266 }
0x2eca   :  { %4739 = vrot.lane.b32.xlu1 %v6267_v8, %s6343_s10  ;;  %v6269_v14 = vpop.eup %6268 }
0x2ecb   :  { %v4555_v16 = vadd.f32 1.0, %v6269_v14  ;;  %v6271_v42 = vpop.eup %6270 }
0x2ecc   :  { %v4733_v17 = vadd.f32 1.0, %v6271_v42 }
0x2ecd   :  { %6272 = vrcp.f32 %v4555_v16 }
0x2ece   :  { %6274 = vrcp.f32 %v4733_v17 }
0x2ed7   :  { %v6273_v18 = vpop.eup %6272 }
0x2ed8   :  { %v6275_v21 = vpop.eup %6274  ;;  %v4559_v24 = vmul.f32 %v6273_v18, %v4282_v53 }
0x2ed9   :  { %v4737_v28 = vmul.f32 %v6275_v21, %v4460_v58 }
0x2f30   :  { %v4562_v19 = vpop.permute.xlu0 %4561 }
0x2f31   :  { %v4564_v20 = vmul.f32 %v6273_v18, %v4562_v19 }
0x2f33   :  { %4566 = vrot.lane.b32.xlu0 %v4564_v20, %s6344_s12 }
0x2f3c   :  { %v4740_v22 = vpop.permute.xlu1 %4739 }
0x2f3d   :  { %v4742_v23 = vmul.f32 %v6275_v21, %v4740_v22 }
0x2f3f   :  { %4744 = vrot.lane.b32.xlu1 %v4742_v23, %s6344_s12 }
0x2fa5   :  { %v4567_v25 = vpop.permute.xlu0 %4566 }
0x2fa6   :  { %v4569_v26 = vadd.f32 %v4567_v25, %v4559_v24 }
0x2fa8   :  { %6276 = vtanh.f32 %v4569_v26 }
0x2fb1   :  { %v4745_v41 = vpop.permute.xlu1 %4744 }
0x2fb2   :  { %v6277_v15 = vpop.eup %6276  ;;  %v4747_v47 = vadd.f32 %v4745_v41, %v4737_v28 }
0x2fb3   :  { %4572 = vrot.lane.b32.xlu0 %v6277_v15, %s6342_s3 }
0x2fb4   :  { %6278 = vtanh.f32 %v4747_v47 }
0x2fbe   :  { %v6279_v29 = vpop.eup %6278 }
0x2fbf   :  { %4750 = vrot.lane.b32.xlu1 %v6279_v29, %s6342_s3 }
0x3025   :  { %v4573_v51 = vpop.permute.xlu0 %4572 }
0x3026   :  { %v4575_v31 = vmul.f32 %v6273_v18, %v4573_v51 }
0x3028   :  { %4770 = vrot.lane.b32.xlu0 %v4575_v31, %s6345_s28 }
0x3031   :  { %v4751_v32 = vpop.permute.xlu1 %4750 }
0x3032   :  { %v4753_v33 = vmul.f32 %v6275_v21, %v4751_v32 }
0x3034   :  { %4755 = vrot.lane.b32.xlu1 %v4753_v33, %s6345_s28 }
0x309a   :  { %v4771_v35 = vpop.permute.xlu0 %4770 }
0x309b   :  { %5732 = vmatmul.mubr.msk.f32.vlgmr.msra.gmra.mrb[36].mxu1 %vm124_vm1, %v4771_v35 }
0x309c   :  { %5968 = vmatpush3.bf16.msra.mxu1 %v6948_v30  ;;  %5738 = vmatprep.mubr.msk.f32.mxu1 %vm6339_vm0, %v6340_v1 }
0x30a6   :  { %v4756_v38 = vpop.permute.xlu1 %4755 }
0x30a7   :  { %5057 = vst.msk [vmem:[%s7181_s17 + $0x30] sm:$0xff] %vm124_vm1, %v4756_v38  ;;  %5739 = vmatmul.mubr.msk.f32.vlgmr.msra.gmra.mrb[36].mxu1 %vm124_vm1, %v4756_v38 }
0x317a   :  { %v4914_v56 = vpop.f32.mrb[36].mxu1 }
0x317b   :  { %v5984_v39 = vadd.f32 %v6966_v34, %v4914_v56  ;;  %v5740_v40 = vpop.f32.mrb[37].mxu1 }
0x317d   :  { %6280 = vtanh.f32 %v5984_v39  ;;  %v5061_v30 = vmul.f32 -1.442695, %v5984_v39 }
0x317f   :  { %6282 = vpow2.f32 %v5061_v30 }
0x3187   :  { %v6281_v45 = vpop.eup %6280 }
0x3188   :  { %4928 = vrot.lane.b32.xlu0 %v6281_v45, %s6343_s10 }
0x3189   :  { %v6283_v5 = vpop.eup %6282 }
0x318a   :  { %v4922_v1 = vadd.f32 1.0, %v6283_v5 }
0x318c   :  { %6284 = vrcp.f32 %v4922_v1 }
0x3196   :  { %v6285_v46 = vpop.eup %6284 }
0x3197   :  { %v4926_v10 = vmul.f32 %v6285_v46, %v4747_v47 }
0x31fa   :  { %v4929_v48 = vpop.permute.xlu0 %4928 }
0x31fb   :  { %v4931_v49 = vmul.f32 %v6285_v46, %v4929_v48 }
0x31fd   :  { %4933 = vrot.lane.b32.xlu1 %v4931_v49, %s6344_s12 }
0x326f   :  { %v4934_v12 = vpop.permute.xlu1 %4933 }
0x3270   :  { %v4936_v50 = vadd.f32 %v4934_v12, %v4926_v10 }
0x3272   :  { %6286 = vtanh.f32 %v4936_v50 }
0x327c   :  { %v6287_v34 = vpop.eup %6286 }
0x327d   :  { %4939 = vrot.lane.b32.xlu0 %v6287_v34, %s6342_s3 }
0x32ef   :  { %v4940_v44 = vpop.permute.xlu0 %4939 }
0x32f0   :  { %v4942_v52 = vmul.f32 %v6285_v46, %v4940_v44 }
0x32f2   :  { %4944 = vrot.lane.b32.xlu1 %v4942_v52, %s6345_s28 }
0x3364   :  { %v4945_v36 = vpop.permute.xlu1 %4944 }
0x3365   :  { %5062 = vst.msk [vmem:[%s7181_s17 + $0x38] sm:$0xff] %vm124_vm1, %v4945_v36 }
0x3366   :  { %4953 = vsyncpa [#allocation5], 1 }
0x3367   :  { %4954 = vsyncpa [#allocation7], 1 }

</bundles_post_ra>
